<compile_context>
chip_gen: v6e
topology: v6e:2x2x1
jax: 0.10.0
libtpu: 0.0.40
codegen_flags: <defaults>
</compile_context>

<pallas_src>
import functools
import math

import jax
import jax.numpy as jnp
from jax import lax
from jax.experimental import pallas as pl
from jax.experimental.pallas import tpu as pltpu


# ----------------------------------------------------------------------------
# Kernel 1: fully fused TransformerEncoderLayer (one grid step per batch elem)
# ----------------------------------------------------------------------------
def _encoder_layer_kernel(x_ref, wqkv_ref, wout_ref, wff1_ref, wff2_ref,
                          ln1w_ref, ln2w_ref, o_ref, *, nh, scale, eps):
    f32 = jnp.float32
    bf16 = jnp.bfloat16

    x = x_ref[0]                                         # (S, D) bf16
    S, D = x.shape
    hd = D // nh

    # ---- fused QKV projection (bf16 MXU, f32 accumulate) ----
    qkv = jnp.dot(x, wqkv_ref[...], preferred_element_type=f32)      # (S, 3D)
    qkv = qkv.astype(bf16)

    # ---- in-kernel causal mask (is_causal=True): keep col <= row ----
    row = lax.broadcasted_iota(jnp.int32, (S, S), 0)
    col = lax.broadcasted_iota(jnp.int32, (S, S), 1)
    causal = col <= row

    wout = wout_ref[...]                                 # (D, D) bf16
    attn_out = jnp.zeros((S, D), dtype=f32)
    for h in range(nh):                                  # unrolled at trace time
        q = qkv[:, h * hd:(h + 1) * hd]                  # (S, hd)
        k = qkv[:, D + h * hd:D + (h + 1) * hd]          # (S, hd)
        v = qkv[:, 2 * D + h * hd:2 * D + (h + 1) * hd]  # (S, hd)
        # scores = q @ k.T * scale, masked, f32 softmax
        s = lax.dot_general(q, k, (((1,), (1,)), ((), ())),
                            preferred_element_type=f32) * scale      # (S, S)
        s = jnp.where(causal, s, -1e30)
        m = jnp.max(s, axis=-1, keepdims=True)
        p = jnp.exp(s - m)
        p = p * pl.reciprocal(jnp.sum(p, axis=-1, keepdims=True), approx=True)
        o_h = jnp.dot(p.astype(bf16), v, preferred_element_type=f32)  # (S, hd)
        # head-merge + out-projection fused:  concat_h(o_h) @ Wout == sum_h o_h @ Wout[h]
        attn_out = attn_out + jnp.dot(o_h.astype(bf16),
                                      wout[h * hd:(h + 1) * hd, :],
                                      preferred_element_type=f32)

    # ---- residual + LayerNorm1 (f32 stats, affine weight only, bias=False) ----
    z = x.astype(f32) + attn_out
    mu = jnp.mean(z, axis=-1, keepdims=True)
    var = jnp.mean(jnp.square(z - mu), axis=-1, keepdims=True)
    x1 = (z - mu) * lax.rsqrt(var + eps) * ln1w_ref[...]              # (S, D) f32

    # ---- feed-forward: W2 @ gelu(W1 @ x), exact erf-based GELU ----
    h1 = jnp.dot(x1.astype(bf16), wff1_ref[...],
                 preferred_element_type=f32)                          # (S, dff)
    h1 = 0.5 * h1 * (1.0 + lax.erf(h1 * (1.0 / math.sqrt(2.0))))
    ff = jnp.dot(h1.astype(bf16), wff2_ref[...],
                 preferred_element_type=f32)                          # (S, D)

    # ---- residual + LayerNorm2 ----
    z2 = x1 + ff
    mu2 = jnp.mean(z2, axis=-1, keepdims=True)
    var2 = jnp.mean(jnp.square(z2 - mu2), axis=-1, keepdims=True)
    x2 = (z2 - mu2) * lax.rsqrt(var2 + eps) * ln2w_ref[...]

    o_ref[0] = x2.astype(o_ref.dtype)


def pallas_encoder_layer(x, p, *, nhead, eps=1e-5):
    B, S, D = x.shape
    dff = p["w_ff1"].shape[1]

    def wspec(shape):
        return pl.BlockSpec(shape, lambda b: (0, 0))

    return pl.pallas_call(
        functools.partial(_encoder_layer_kernel, nh=nhead,
                          scale=1.0 / math.sqrt(D // nhead), eps=eps),
        out_shape=jax.ShapeDtypeStruct((B, S, D), x.dtype),
        grid_spec=pltpu.PrefetchScalarGridSpec(
            num_scalar_prefetch=0,
            grid=(B,),
            in_specs=[pl.BlockSpec((1, S, D), lambda b: (b, 0, 0)),
                      wspec((D, 3 * D)),
                      wspec((D, D)),
                      wspec((D, dff)),
                      wspec((dff, D)),
                      wspec((1, D)),
                      wspec((1, D))],
            out_specs=pl.BlockSpec((1, S, D), lambda b: (b, 0, 0))),
        compiler_params=pltpu.CompilerParams(
            dimension_semantics=("parallel",)),
    )(x, p["w_qkv"], p["w_out"], p["w_ff1"], p["w_ff2"],
      p["ln1_w"], p["ln2_w"])


# ----------------------------------------------------------------------------
# Kernel 2: fused final LayerNorm (eps=1e-6, with bias) + vocab head matmul
# ----------------------------------------------------------------------------
def _final_ln_head_kernel(x_ref, lnw_ref, lnb_ref, wh_ref, o_ref, *, eps):
    x = x_ref[...].astype(jnp.float32)                    # (tm, D)
    mu = jnp.mean(x, axis=-1, keepdims=True)
    var = jnp.mean(jnp.square(x - mu), axis=-1, keepdims=True)
    xn = (x - mu) * lax.rsqrt(var + eps) * lnw_ref[...] + lnb_ref[...]
    o_ref[...] = jnp.dot(xn.astype(jnp.bfloat16), wh_ref[...],
                         preferred_element_type=jnp.float32).astype(o_ref.dtype)


def pallas_final_ln_head(x2d, lnw, lnb, wh, *, eps=1e-6, tm=128):
    M, D = x2d.shape
    V = wh.shape[1]
    tm = min(tm, M)
    assert M % tm == 0
    return pl.pallas_call(
        functools.partial(_final_ln_head_kernel, eps=eps),
        out_shape=jax.ShapeDtypeStruct((M, V), jnp.float32),
        grid_spec=pltpu.PrefetchScalarGridSpec(
            num_scalar_prefetch=0,
            grid=(M // tm,),
            in_specs=[pl.BlockSpec((tm, D), lambda i: (i, 0)),
                      pl.BlockSpec((1, D), lambda i: (0, 0)),
                      pl.BlockSpec((1, D), lambda i: (0, 0)),
                      pl.BlockSpec((D, V), lambda i: (0, 0))],
            out_specs=pl.BlockSpec((tm, V), lambda i: (i, 0))),
        compiler_params=pltpu.CompilerParams(
            dimension_semantics=("parallel",)),
    )(x2d, lnw, lnb, wh)


# ----------------------------------------------------------------------------
# Model: parameter init + forward
# ----------------------------------------------------------------------------
def init_params(key, cfg):
    d, dff, vocab, seq, nl = (cfg["d_model"], cfg["dim_feedforward"],
                              cfg["vocab_size"], cfg["seq_len"], cfg["num_layers"])
    keys = iter(jax.random.split(key, 3 + 4 * nl))
    nrm = lambda k, shape, dt, s=0.02: (s * jax.random.normal(k, shape)).astype(dt)
    params = {
        "embedding": nrm(next(keys), (vocab, d), jnp.float32),
        "pos_encoding": jax.random.normal(next(keys), (1, seq, d)).astype(jnp.float32),
        "head_w": nrm(next(keys), (d, vocab), jnp.bfloat16),   # Linear, bias=False
        "final_ln_w": jnp.ones((1, d), jnp.float32),
        "final_ln_b": jnp.zeros((1, d), jnp.float32),
        "layers": [],
    }
    for _ in range(nl):
        params["layers"].append({
            "w_qkv": nrm(next(keys), (d, 3 * d), jnp.bfloat16),  # in_proj  (bias=False)
            "w_out": nrm(next(keys), (d, d), jnp.bfloat16),      # out_proj (bias=False)
            "w_ff1": nrm(next(keys), (d, dff), jnp.bfloat16),    # linear1  (bias=False)
            "w_ff2": nrm(next(keys), (dff, d), jnp.bfloat16),    # linear2  (bias=False)
            "ln1_w": jnp.ones((1, d), jnp.float32),              # LayerNorm(bias=False)
            "ln2_w": jnp.ones((1, d), jnp.float32),
        })
    return params


def transformer_forward(params, tokens, cfg):
    B, S = tokens.shape
    d = cfg["d_model"]
    # TODO(synk): embedding gather + positional add stays in plain JAX (XLA gather).
    x = jnp.take(params["embedding"], tokens, axis=0) + params["pos_encoding"]
    x = x.astype(jnp.bfloat16)                                  # (B, S, d)
    for lp in params["layers"]:
        x = pallas_encoder_layer(x, lp, nhead=cfg["nhead"])     # one fused call/layer
    x2d = x.reshape(B * S, d)
    logits = pallas_final_ln_head(x2d, params["final_ln_w"],
                                  params["final_ln_b"], params["head_w"])
    return logits.reshape(B, S, cfg["vocab_size"])


if __name__ == "__main__":
    # Small, TPU-tile-friendly version of the module's hyperparameters.
    cfg = dict(d_model=128, nhead=4, dim_feedforward=512,
               num_layers=2, seq_len=128, vocab_size=512)
    B = 2

    root = jax.random.PRNGKey(0)
    k_param, k_tok = jax.random.split(root)
    params = init_params(k_param, cfg)

    tokens = jax.random.randint(k_tok, (B, cfg["seq_len"]), 0,
                                cfg["vocab_size"], dtype=jnp.int32)

    fwd = jax.jit(functools.partial(transformer_forward, cfg=cfg))
    out = fwd(params, tokens)
    jax.block_until_ready(out)
    assert out.shape == (B, cfg["seq_len"], cfg["vocab_size"])
    assert out.dtype == jnp.float32
    print("KERNEL_OK")
</pallas_src>

<mosaic_0001>
module attributes {stable_mosaic.version = 11 : i64} {
  func.func @_final_ln_head_kernel(%arg0: i32, %arg1: memref<128x128xbf16, #tpu.memory_space<vmem>>, %arg2: memref<1x128xf32, #tpu.memory_space<vmem>>, %arg3: memref<1x128xf32, #tpu.memory_space<vmem>>, %arg4: memref<128x512xbf16, #tpu.memory_space<vmem>>, %arg5: memref<128x512xf32, #tpu.memory_space<vmem>>) attributes {dimension_semantics = [#tpu.dimension_semantics<parallel>], iteration_bounds = array<i64: 2>, scalar_prefetch = 0 : i64, scratch_operands = 0 : i64, tpu.core_type = #tpu.core_type<tc>, window_params = [{transform_indices = @transform_0, window_bounds = array<i64: 128, 128>}, {pipeline_mode = #tpu.pipeline_mode<synchronous>, transform_indices = @transform_1, window_bounds = array<i64: 1, 128>}, {pipeline_mode = #tpu.pipeline_mode<synchronous>, transform_indices = @transform_2, window_bounds = array<i64: 1, 128>}, {pipeline_mode = #tpu.pipeline_mode<synchronous>, transform_indices = @transform_3, window_bounds = array<i64: 128, 512>}, {transform_indices = @transform_4, window_bounds = array<i64: 128, 512>}]} {
    %c0 = arith.constant 0 : index
    %c0_0 = arith.constant 0 : index
    %0 = vector.load %arg1[%c0, %c0_0] : memref<128x128xbf16, #tpu.memory_space<vmem>>, vector<128x128xbf16>
    %1 = arith.extf %0 : vector<128x128xbf16> to vector<128x128xf32>
    %cst = arith.constant dense<0.000000e+00> : vector<128xf32>
    %2 = vector.multi_reduction <add>, %1, %cst [1] : vector<128x128xf32> to vector<128xf32>
    %3 = vector.shape_cast %2 : vector<128xf32> to vector<128x1xf32>
    %cst_1 = arith.constant 1.280000e+02 : f32
    %4 = vector.broadcast %cst_1 : f32 to vector<128x1xf32>
    %5 = arith.divf %3, %4 : vector<128x1xf32>
    %6 = vector.broadcast %5 : vector<128x1xf32> to vector<128x128xf32>
    %7 = arith.subf %1, %6 : vector<128x128xf32>
    %8 = arith.mulf %7, %7 : vector<128x128xf32>
    %cst_2 = arith.constant dense<0.000000e+00> : vector<128xf32>
    %9 = vector.multi_reduction <add>, %8, %cst_2 [1] : vector<128x128xf32> to vector<128xf32>
    %10 = vector.shape_cast %9 : vector<128xf32> to vector<128x1xf32>
    %cst_3 = arith.constant 1.280000e+02 : f32
    %11 = vector.broadcast %cst_3 : f32 to vector<128x1xf32>
    %12 = arith.divf %10, %11 : vector<128x1xf32>
    %13 = vector.broadcast %5 : vector<128x1xf32> to vector<128x128xf32>
    %14 = arith.subf %1, %13 : vector<128x128xf32>
    %cst_4 = arith.constant 9.99999997E-7 : f32
    %15 = vector.broadcast %cst_4 : f32 to vector<128x1xf32>
    %16 = arith.addf %12, %15 : vector<128x1xf32>
    %17 = math.rsqrt %16 : vector<128x1xf32>
    %18 = vector.broadcast %17 : vector<128x1xf32> to vector<128x128xf32>
    %19 = arith.mulf %14, %18 : vector<128x128xf32>
    %c0_5 = arith.constant 0 : index
    %c0_6 = arith.constant 0 : index
    %20 = vector.load %arg2[%c0_5, %c0_6] : memref<1x128xf32, #tpu.memory_space<vmem>>, vector<1x128xf32>
    %21 = vector.broadcast %20 : vector<1x128xf32> to vector<128x128xf32>
    %22 = arith.mulf %19, %21 : vector<128x128xf32>
    %c0_7 = arith.constant 0 : index
    %c0_8 = arith.constant 0 : index
    %23 = vector.load %arg3[%c0_7, %c0_8] : memref<1x128xf32, #tpu.memory_space<vmem>>, vector<1x128xf32>
    %24 = vector.broadcast %23 : vector<1x128xf32> to vector<128x128xf32>
    %25 = arith.addf %22, %24 : vector<128x128xf32>
    %26 = arith.truncf %25 : vector<128x128xf32> to vector<128x128xbf16>
    %c0_9 = arith.constant 0 : index
    %c0_10 = arith.constant 0 : index
    %27 = vector.load %arg4[%c0_9, %c0_10] : memref<128x512xbf16, #tpu.memory_space<vmem>>, vector<128x512xbf16>
    %cst_11 = arith.constant dense<0.000000e+00> : vector<128x512xf32>
    %28 = tpu.matmul %26, %27, %cst_11 {dimension_numbers = #tpu.dot_dimension_numbers<[1], [0], [0], [1], [0, 0, 1, 1], [], []>} : vector<128x128xbf16>, vector<128x512xbf16>, vector<128x512xf32> -> vector<128x512xf32>
    %c0_12 = arith.constant 0 : index
    %c0_13 = arith.constant 0 : index
    %29 = vector.load %arg5[%c0_12, %c0_13] : memref<128x512xf32, #tpu.memory_space<vmem>>, vector<128x512xf32>
    tpu.vector_store %arg5[%c0_12, %c0_13], %28 {strides = array<i32>} : memref<128x512xf32, #tpu.memory_space<vmem>>, vector<128x512xf32>,
    return
  }
  func.func @transform_0(%arg0: i32) -> (i32, i32) {
    %c0_i32 = arith.constant 0 : i32
    %c0_i32_0 = arith.constant 0 : i32
    return %arg0, %c0_i32 : i32, i32
  }
  func.func @transform_1(%arg0: i32) -> (i32, i32) {
    %c0_i32 = arith.constant 0 : i32
    %c0_i32_0 = arith.constant 0 : i32
    %c0_i32_1 = arith.constant 0 : i32
    return %c0_i32, %c0_i32_0 : i32, i32
  }
  func.func @transform_2(%arg0: i32) -> (i32, i32) {
    %c0_i32 = arith.constant 0 : i32
    %c0_i32_0 = arith.constant 0 : i32
    %c0_i32_1 = arith.constant 0 : i32
    return %c0_i32, %c0_i32_0 : i32, i32
  }
  func.func @transform_3(%arg0: i32) -> (i32, i32) {
    %c0_i32 = arith.constant 0 : i32
    %c0_i32_0 = arith.constant 0 : i32
    %c0_i32_1 = arith.constant 0 : i32
    return %c0_i32, %c0_i32_0 : i32, i32
  }
  func.func @transform_4(%arg0: i32) -> (i32, i32) {
    %c0_i32 = arith.constant 0 : i32
    %c0_i32_0 = arith.constant 0 : i32
    return %arg0, %c0_i32 : i32, i32
  }
}

module attributes {stable_mosaic.version = 11 : i64} {
  func.func @_encoder_layer_kernel(%arg0: i32, %arg1: memref<1x128x128xbf16, #tpu.memory_space<vmem>>, %arg2: memref<128x384xbf16, #tpu.memory_space<vmem>>, %arg3: memref<128x128xbf16, #tpu.memory_space<vmem>>, %arg4: memref<128x512xbf16, #tpu.memory_space<vmem>>, %arg5: memref<512x128xbf16, #tpu.memory_space<vmem>>, %arg6: memref<1x128xf32, #tpu.memory_space<vmem>>, %arg7: memref<1x128xf32, #tpu.memory_space<vmem>>, %arg8: memref<1x128x128xbf16, #tpu.memory_space<vmem>>) attributes {dimension_semantics = [#tpu.dimension_semantics<parallel>], iteration_bounds = array<i64: 2>, scalar_prefetch = 0 : i64, scratch_operands = 0 : i64, tpu.core_type = #tpu.core_type<tc>, window_params = [{transform_indices = @transform_0, window_bounds = array<i64: 1, 128, 128>}, {pipeline_mode = #tpu.pipeline_mode<synchronous>, transform_indices = @transform_1, window_bounds = array<i64: 128, 384>}, {pipeline_mode = #tpu.pipeline_mode<synchronous>, transform_indices = @transform_2, window_bounds = array<i64: 128, 128>}, {pipeline_mode = #tpu.pipeline_mode<synchronous>, transform_indices = @transform_3, window_bounds = array<i64: 128, 512>}, {pipeline_mode = #tpu.pipeline_mode<synchronous>, transform_indices = @transform_4, window_bounds = array<i64: 512, 128>}, {pipeline_mode = #tpu.pipeline_mode<synchronous>, transform_indices = @transform_5, window_bounds = array<i64: 1, 128>}, {pipeline_mode = #tpu.pipeline_mode<synchronous>, transform_indices = @transform_6, window_bounds = array<i64: 1, 128>}, {transform_indices = @transform_7, window_bounds = array<i64: 1, 128, 128>}]} {
    %c0 = arith.constant 0 : index
    %c0_0 = arith.constant 0 : index
    %c0_1 = arith.constant 0 : index
    %0 = vector.load %arg1[%c0, %c0_0, %c0_1] : memref<1x128x128xbf16, #tpu.memory_space<vmem>>, vector<1x128x128xbf16>
    %1 = vector.shape_cast %0 : vector<1x128x128xbf16> to vector<128x128xbf16>
    %c0_2 = arith.constant 0 : index
    %c0_3 = arith.constant 0 : index
    %2 = vector.load %arg2[%c0_2, %c0_3] : memref<128x384xbf16, #tpu.memory_space<vmem>>, vector<128x384xbf16>
    %cst = arith.constant dense<0.000000e+00> : vector<128x384xf32>
    %3 = tpu.matmul %1, %2, %cst {dimension_numbers = #tpu.dot_dimension_numbers<[1], [0], [0], [1], [0, 0, 1, 1], [], []>} : vector<128x128xbf16>, vector<128x384xbf16>, vector<128x384xf32> -> vector<128x384xf32>
    %4 = arith.truncf %3 : vector<128x384xf32> to vector<128x384xbf16>
    %5 = tpu.iota {dimensions = array<i32: 0>} : vector<128x128xi32>
    %6 = tpu.iota {dimensions = array<i32: 1>} : vector<128x128xi32>
    %7 = arith.cmpi sle, %6, %5 : vector<128x128xi32>
    %c0_4 = arith.constant 0 : index
    %c0_5 = arith.constant 0 : index
    %8 = vector.load %arg3[%c0_4, %c0_5] : memref<128x128xbf16, #tpu.memory_space<vmem>>, vector<128x128xbf16>
    %cst_6 = arith.constant 0.000000e+00 : f32
    %9 = vector.broadcast %cst_6 : f32 to vector<128x128xf32>
    %10 = vector.extract_strided_slice %4 {offsets = [0, 0], sizes = [128, 32], strides = [1, 1]} : vector<128x384xbf16> to vector<128x32xbf16>
    %11 = vector.extract_strided_slice %4 {offsets = [0, 128], sizes = [128, 32], strides = [1, 1]} : vector<128x384xbf16> to vector<128x32xbf16>
    %12 = vector.extract_strided_slice %4 {offsets = [0, 256], sizes = [128, 32], strides = [1, 1]} : vector<128x384xbf16> to vector<128x32xbf16>
    %cst_7 = arith.constant dense<0.000000e+00> : vector<128x128xf32>
    %13 = tpu.matmul %10, %11, %cst_7 {dimension_numbers = #tpu.dot_dimension_numbers<[1], [1], [0], [0], [0, 0, 1, 0], [], []>} : vector<128x32xbf16>, vector<128x32xbf16>, vector<128x128xf32> -> vector<128x128xf32>
    %cst_8 = arith.constant 0.176776692 : f32
    %14 = vector.broadcast %cst_8 : f32 to vector<128x128xf32>
    %15 = arith.mulf %13, %14 : vector<128x128xf32>
    %cst_9 = arith.constant -1.000000e+30 : f32
    %16 = vector.broadcast %cst_9 : f32 to vector<128x128xf32>
    %17 = arith.select %7, %15, %16 : vector<128x128xi1>, vector<128x128xf32>
    %cst_10 = arith.constant dense<0xFF800000> : vector<128xf32>
    %18 = vector.multi_reduction <maximumf>, %17, %cst_10 [1] : vector<128x128xf32> to vector<128xf32>
    %19 = vector.shape_cast %18 : vector<128xf32> to vector<128x1xf32>
    %20 = vector.broadcast %19 : vector<128x1xf32> to vector<128x128xf32>
    %21 = arith.subf %17, %20 : vector<128x128xf32>
    %22 = math.exp %21 : vector<128x128xf32>
    %cst_11 = arith.constant dense<0.000000e+00> : vector<128xf32>
    %23 = vector.multi_reduction <add>, %22, %cst_11 [1] : vector<128x128xf32> to vector<128xf32>
    %24 = vector.shape_cast %23 : vector<128xf32> to vector<128x1xf32>
    %25 = tpu.reciprocal %24 {approx = true} : vector<128x1xf32> -> vector<128x1xf32>
    %26 = vector.broadcast %25 : vector<128x1xf32> to vector<128x128xf32>
    %27 = arith.mulf %22, %26 : vector<128x128xf32>
    %28 = arith.truncf %27 : vector<128x128xf32> to vector<128x128xbf16>
    %cst_12 = arith.constant dense<0.000000e+00> : vector<128x32xf32>
    %29 = tpu.matmul %28, %12, %cst_12 {dimension_numbers = #tpu.dot_dimension_numbers<[1], [0], [0], [1], [0, 0, 1, 1], [], []>} : vector<128x128xbf16>, vector<128x32xbf16>, vector<128x32xf32> -> vector<128x32xf32>
    %30 = arith.truncf %29 : vector<128x32xf32> to vector<128x32xbf16>
    %31 = vector.extract_strided_slice %8 {offsets = [0, 0], sizes = [32, 128], strides = [1, 1]} : vector<128x128xbf16> to vector<32x128xbf16>
    %cst_13 = arith.constant dense<0.000000e+00> : vector<128x128xf32>
    %32 = tpu.matmul %30, %31, %cst_13 {dimension_numbers = #tpu.dot_dimension_numbers<[1], [0], [0], [1], [0, 0, 1, 1], [], []>} : vector<128x32xbf16>, vector<32x128xbf16>, vector<128x128xf32> -> vector<128x128xf32>
    %33 = arith.addf %9, %32 : vector<128x128xf32>
    %34 = vector.extract_strided_slice %4 {offsets = [0, 32], sizes = [128, 32], strides = [1, 1]} : vector<128x384xbf16> to vector<128x32xbf16>
    %35 = vector.extract_strided_slice %4 {offsets = [0, 160], sizes = [128, 32], strides = [1, 1]} : vector<128x384xbf16> to vector<128x32xbf16>
    %36 = vector.extract_strided_slice %4 {offsets = [0, 288], sizes = [128, 32], strides = [1, 1]} : vector<128x384xbf16> to vector<128x32xbf16>
    %cst_14 = arith.constant dense<0.000000e+00> : vector<128x128xf32>
    %37 = tpu.matmul %34, %35, %cst_14 {dimension_numbers = #tpu.dot_dimension_numbers<[1], [1], [0], [0], [0, 0, 1, 0], [], []>} : vector<128x32xbf16>, vector<128x32xbf16>, vector<128x128xf32> -> vector<128x128xf32>
    %cst_15 = arith.constant 0.176776692 : f32
    %38 = vector.broadcast %cst_15 : f32 to vector<128x128xf32>
    %39 = arith.mulf %37, %38 : vector<128x128xf32>
    %cst_16 = arith.constant -1.000000e+30 : f32
    %40 = vector.broadcast %cst_16 : f32 to vector<128x128xf32>
    %41 = arith.select %7, %39, %40 : vector<128x128xi1>, vector<128x128xf32>
    %cst_17 = arith.constant dense<0xFF800000> : vector<128xf32>
    %42 = vector.multi_reduction <maximumf>, %41, %cst_17 [1] : vector<128x128xf32> to vector<128xf32>
    %43 = vector.shape_cast %42 : vector<128xf32> to vector<128x1xf32>
    %44 = vector.broadcast %43 : vector<128x1xf32> to vector<128x128xf32>
    %45 = arith.subf %41, %44 : vector<128x128xf32>
    %46 = math.exp %45 : vector<128x128xf32>
    %cst_18 = arith.constant dense<0.000000e+00> : vector<128xf32>
    %47 = vector.multi_reduction <add>, %46, %cst_18 [1] : vector<128x128xf32> to vector<128xf32>
    %48 = vector.shape_cast %47 : vector<128xf32> to vector<128x1xf32>
    %49 = tpu.reciprocal %48 {approx = true} : vector<128x1xf32> -> vector<128x1xf32>
    %50 = vector.broadcast %49 : vector<128x1xf32> to vector<128x128xf32>
    %51 = arith.mulf %46, %50 : vector<128x128xf32>
    %52 = arith.truncf %51 : vector<128x128xf32> to vector<128x128xbf16>
    %cst_19 = arith.constant dense<0.000000e+00> : vector<128x32xf32>
    %53 = tpu.matmul %52, %36, %cst_19 {dimension_numbers = #tpu.dot_dimension_numbers<[1], [0], [0], [1], [0, 0, 1, 1], [], []>} : vector<128x128xbf16>, vector<128x32xbf16>, vector<128x32xf32> -> vector<128x32xf32>
    %54 = arith.truncf %53 : vector<128x32xf32> to vector<128x32xbf16>
    %55 = vector.extract_strided_slice %8 {offsets = [32, 0], sizes = [32, 128], strides = [1, 1]} : vector<128x128xbf16> to vector<32x128xbf16>
    %cst_20 = arith.constant dense<0.000000e+00> : vector<128x128xf32>
    %56 = tpu.matmul %54, %55, %cst_20 {dimension_numbers = #tpu.dot_dimension_numbers<[1], [0], [0], [1], [0, 0, 1, 1], [], []>} : vector<128x32xbf16>, vector<32x128xbf16>, vector<128x128xf32> -> vector<128x128xf32>
    %57 = arith.addf %33, %56 : vector<128x128xf32>
    %58 = vector.extract_strided_slice %4 {offsets = [0, 64], sizes = [128, 32], strides = [1, 1]} : vector<128x384xbf16> to vector<128x32xbf16>
    %59 = vector.extract_strided_slice %4 {offsets = [0, 192], sizes = [128, 32], strides = [1, 1]} : vector<128x384xbf16> to vector<128x32xbf16>
    %60 = vector.extract_strided_slice %4 {offsets = [0, 320], sizes = [128, 32], strides = [1, 1]} : vector<128x384xbf16> to vector<128x32xbf16>
    %cst_21 = arith.constant dense<0.000000e+00> : vector<128x128xf32>
    %61 = tpu.matmul %58, %59, %cst_21 {dimension_numbers = #tpu.dot_dimension_numbers<[1], [1], [0], [0], [0, 0, 1, 0], [], []>} : vector<128x32xbf16>, vector<128x32xbf16>, vector<128x128xf32> -> vector<128x128xf32>
    %cst_22 = arith.constant 0.176776692 : f32
    %62 = vector.broadcast %cst_22 : f32 to vector<128x128xf32>
    %63 = arith.mulf %61, %62 : vector<128x128xf32>
    %cst_23 = arith.constant -1.000000e+30 : f32
    %64 = vector.broadcast %cst_23 : f32 to vector<128x128xf32>
    %65 = arith.select %7, %63, %64 : vector<128x128xi1>, vector<128x128xf32>
    %cst_24 = arith.constant dense<0xFF800000> : vector<128xf32>
    %66 = vector.multi_reduction <maximumf>, %65, %cst_24 [1] : vector<128x128xf32> to vector<128xf32>
    %67 = vector.shape_cast %66 : vector<128xf32> to vector<128x1xf32>
    %68 = vector.broadcast %67 : vector<128x1xf32> to vector<128x128xf32>
    %69 = arith.subf %65, %68 : vector<128x128xf32>
    %70 = math.exp %69 : vector<128x128xf32>
    %cst_25 = arith.constant dense<0.000000e+00> : vector<128xf32>
    %71 = vector.multi_reduction <add>, %70, %cst_25 [1] : vector<128x128xf32> to vector<128xf32>
    %72 = vector.shape_cast %71 : vector<128xf32> to vector<128x1xf32>
    %73 = tpu.reciprocal %72 {approx = true} : vector<128x1xf32> -> vector<128x1xf32>
    %74 = vector.broadcast %73 : vector<128x1xf32> to vector<128x128xf32>
    %75 = arith.mulf %70, %74 : vector<128x128xf32>
    %76 = arith.truncf %75 : vector<128x128xf32> to vector<128x128xbf16>
    %cst_26 = arith.constant dense<0.000000e+00> : vector<128x32xf32>
    %77 = tpu.matmul %76, %60, %cst_26 {dimension_numbers = #tpu.dot_dimension_numbers<[1], [0], [0], [1], [0, 0, 1, 1], [], []>} : vector<128x128xbf16>, vector<128x32xbf16>, vector<128x32xf32> -> vector<128x32xf32>
    %78 = arith.truncf %77 : vector<128x32xf32> to vector<128x32xbf16>
    %79 = vector.extract_strided_slice %8 {offsets = [64, 0], sizes = [32, 128], strides = [1, 1]} : vector<128x128xbf16> to vector<32x128xbf16>
    %cst_27 = arith.constant dense<0.000000e+00> : vector<128x128xf32>
    %80 = tpu.matmul %78, %79, %cst_27 {dimension_numbers = #tpu.dot_dimension_numbers<[1], [0], [0], [1], [0, 0, 1, 1], [], []>} : vector<128x32xbf16>, vector<32x128xbf16>, vector<128x128xf32> -> vector<128x128xf32>
    %81 = arith.addf %57, %80 : vector<128x128xf32>
    %82 = vector.extract_strided_slice %4 {offsets = [0, 96], sizes = [128, 32], strides = [1, 1]} : vector<128x384xbf16> to vector<128x32xbf16>
    %83 = vector.extract_strided_slice %4 {offsets = [0, 224], sizes = [128, 32], strides = [1, 1]} : vector<128x384xbf16> to vector<128x32xbf16>
    %84 = vector.extract_strided_slice %4 {offsets = [0, 352], sizes = [128, 32], strides = [1, 1]} : vector<128x384xbf16> to vector<128x32xbf16>
    %cst_28 = arith.constant dense<0.000000e+00> : vector<128x128xf32>
    %85 = tpu.matmul %82, %83, %cst_28 {dimension_numbers = #tpu.dot_dimension_numbers<[1], [1], [0], [0], [0, 0, 1, 0], [], []>} : vector<128x32xbf16>, vector<128x32xbf16>, vector<128x128xf32> -> vector<128x128xf32>
    %cst_29 = arith.constant 0.176776692 : f32
    %86 = vector.broadcast %cst_29 : f32 to vector<128x128xf32>
    %87 = arith.mulf %85, %86 : vector<128x128xf32>
    %cst_30 = arith.constant -1.000000e+30 : f32
    %88 = vector.broadcast %cst_30 : f32 to vector<128x128xf32>
    %89 = arith.select %7, %87, %88 : vector<128x128xi1>, vector<128x128xf32>
    %cst_31 = arith.constant dense<0xFF800000> : vector<128xf32>
    %90 = vector.multi_reduction <maximumf>, %89, %cst_31 [1] : vector<128x128xf32> to vector<128xf32>
    %91 = vector.shape_cast %90 : vector<128xf32> to vector<128x1xf32>
    %92 = vector.broadcast %91 : vector<128x1xf32> to vector<128x128xf32>
    %93 = arith.subf %89, %92 : vector<128x128xf32>
    %94 = math.exp %93 : vector<128x128xf32>
    %cst_32 = arith.constant dense<0.000000e+00> : vector<128xf32>
    %95 = vector.multi_reduction <add>, %94, %cst_32 [1] : vector<128x128xf32> to vector<128xf32>
    %96 = vector.shape_cast %95 : vector<128xf32> to vector<128x1xf32>
    %97 = tpu.reciprocal %96 {approx = true} : vector<128x1xf32> -> vector<128x1xf32>
    %98 = vector.broadcast %97 : vector<128x1xf32> to vector<128x128xf32>
    %99 = arith.mulf %94, %98 : vector<128x128xf32>
    %100 = arith.truncf %99 : vector<128x128xf32> to vector<128x128xbf16>
    %cst_33 = arith.constant dense<0.000000e+00> : vector<128x32xf32>
    %101 = tpu.matmul %100, %84, %cst_33 {dimension_numbers = #tpu.dot_dimension_numbers<[1], [0], [0], [1], [0, 0, 1, 1], [], []>} : vector<128x128xbf16>, vector<128x32xbf16>, vector<128x32xf32> -> vector<128x32xf32>
    %102 = arith.truncf %101 : vector<128x32xf32> to vector<128x32xbf16>
    %103 = vector.extract_strided_slice %8 {offsets = [96, 0], sizes = [32, 128], strides = [1, 1]} : vector<128x128xbf16> to vector<32x128xbf16>
    %cst_34 = arith.constant dense<0.000000e+00> : vector<128x128xf32>
    %104 = tpu.matmul %102, %103, %cst_34 {dimension_numbers = #tpu.dot_dimension_numbers<[1], [0], [0], [1], [0, 0, 1, 1], [], []>} : vector<128x32xbf16>, vector<32x128xbf16>, vector<128x128xf32> -> vector<128x128xf32>
    %105 = arith.addf %81, %104 : vector<128x128xf32>
    %106 = arith.extf %1 : vector<128x128xbf16> to vector<128x128xf32>
    %107 = arith.addf %106, %105 : vector<128x128xf32>
    %cst_35 = arith.constant dense<0.000000e+00> : vector<128xf32>
    %108 = vector.multi_reduction <add>, %107, %cst_35 [1] : vector<128x128xf32> to vector<128xf32>
    %109 = vector.shape_cast %108 : vector<128xf32> to vector<128x1xf32>
    %cst_36 = arith.constant 1.280000e+02 : f32
    %110 = vector.broadcast %cst_36 : f32 to vector<128x1xf32>
    %111 = arith.divf %109, %110 : vector<128x1xf32>
    %112 = vector.broadcast %111 : vector<128x1xf32> to vector<128x128xf32>
    %113 = arith.subf %107, %112 : vector<128x128xf32>
    %114 = arith.mulf %113, %113 : vector<128x128xf32>
    %cst_37 = arith.constant dense<0.000000e+00> : vector<128xf32>
    %115 = vector.multi_reduction <add>, %114, %cst_37 [1] : vector<128x128xf32> to vector<128xf32>
    %116 = vector.shape_cast %115 : vector<128xf32> to vector<128x1xf32>
    %cst_38 = arith.constant 1.280000e+02 : f32
    %117 = vector.broadcast %cst_38 : f32 to vector<128x1xf32>
    %118 = arith.divf %116, %117 : vector<128x1xf32>
    %119 = vector.broadcast %111 : vector<128x1xf32> to vector<128x128xf32>
    %120 = arith.subf %107, %119 : vector<128x128xf32>
    %cst_39 = arith.constant 9.99999974E-6 : f32
    %121 = vector.broadcast %cst_39 : f32 to vector<128x1xf32>
    %122 = arith.addf %118, %121 : vector<128x1xf32>
    %123 = math.rsqrt %122 : vector<128x1xf32>
    %124 = vector.broadcast %123 : vector<128x1xf32> to vector<128x128xf32>
    %125 = arith.mulf %120, %124 : vector<128x128xf32>
    %c0_40 = arith.constant 0 : index
    %c0_41 = arith.constant 0 : index
    %126 = vector.load %arg6[%c0_40, %c0_41] : memref<1x128xf32, #tpu.memory_space<vmem>>, vector<1x128xf32>
    %127 = vector.broadcast %126 : vector<1x128xf32> to vector<128x128xf32>
    %128 = arith.mulf %125, %127 : vector<128x128xf32>
    %129 = arith.truncf %128 : vector<128x128xf32> to vector<128x128xbf16>
    %c0_42 = arith.constant 0 : index
    %c0_43 = arith.constant 0 : index
    %130 = vector.load %arg4[%c0_42, %c0_43] : memref<128x512xbf16, #tpu.memory_space<vmem>>, vector<128x512xbf16>
    %cst_44 = arith.constant dense<0.000000e+00> : vector<128x512xf32>
    %131 = tpu.matmul %129, %130, %cst_44 {dimension_numbers = #tpu.dot_dimension_numbers<[1], [0], [0], [1], [0, 0, 1, 1], [], []>} : vector<128x128xbf16>, vector<128x512xbf16>, vector<128x512xf32> -> vector<128x512xf32>
    %cst_45 = arith.constant 5.000000e-01 : f32
    %132 = vector.broadcast %cst_45 : f32 to vector<128x512xf32>
    %133 = arith.mulf %132, %131 : vector<128x512xf32>
    %cst_46 = arith.constant 0.707106769 : f32
    %134 = vector.broadcast %cst_46 : f32 to vector<128x512xf32>
    %135 = arith.mulf %131, %134 : vector<128x512xf32>
    %136 = math.erf %135 : vector<128x512xf32>
    %cst_47 = arith.constant 1.000000e+00 : f32
    %137 = vector.broadcast %cst_47 : f32 to vector<128x512xf32>
    %138 = arith.addf %137, %136 : vector<128x512xf32>
    %139 = arith.mulf %133, %138 : vector<128x512xf32>
    %140 = arith.truncf %139 : vector<128x512xf32> to vector<128x512xbf16>
    %c0_48 = arith.constant 0 : index
    %c0_49 = arith.constant 0 : index
    %141 = vector.load %arg5[%c0_48, %c0_49] : memref<512x128xbf16, #tpu.memory_space<vmem>>, vector<512x128xbf16>
    %cst_50 = arith.constant dense<0.000000e+00> : vector<128x128xf32>
    %142 = tpu.matmul %140, %141, %cst_50 {dimension_numbers = #tpu.dot_dimension_numbers<[1], [0], [0], [1], [0, 0, 1, 1], [], []>} : vector<128x512xbf16>, vector<512x128xbf16>, vector<128x128xf32> -> vector<128x128xf32>
    %143 = arith.addf %128, %142 : vector<128x128xf32>
    %cst_51 = arith.constant dense<0.000000e+00> : vector<128xf32>
    %144 = vector.multi_reduction <add>, %143, %cst_51 [1] : vector<128x128xf32> to vector<128xf32>
    %145 = vector.shape_cast %144 : vector<128xf32> to vector<128x1xf32>
    %cst_52 = arith.constant 1.280000e+02 : f32
    %146 = vector.broadcast %cst_52 : f32 to vector<128x1xf32>
    %147 = arith.divf %145, %146 : vector<128x1xf32>
    %148 = vector.broadcast %147 : vector<128x1xf32> to vector<128x128xf32>
    %149 = arith.subf %143, %148 : vector<128x128xf32>
    %150 = arith.mulf %149, %149 : vector<128x128xf32>
    %cst_53 = arith.constant dense<0.000000e+00> : vector<128xf32>
    %151 = vector.multi_reduction <add>, %150, %cst_53 [1] : vector<128x128xf32> to vector<128xf32>
    %152 = vector.shape_cast %151 : vector<128xf32> to vector<128x1xf32>
    %cst_54 = arith.constant 1.280000e+02 : f32
    %153 = vector.broadcast %cst_54 : f32 to vector<128x1xf32>
    %154 = arith.divf %152, %153 : vector<128x1xf32>
    %155 = vector.broadcast %147 : vector<128x1xf32> to vector<128x128xf32>
    %156 = arith.subf %143, %155 : vector<128x128xf32>
    %cst_55 = arith.constant 9.99999974E-6 : f32
    %157 = vector.broadcast %cst_55 : f32 to vector<128x1xf32>
    %158 = arith.addf %154, %157 : vector<128x1xf32>
    %159 = math.rsqrt %158 : vector<128x1xf32>
    %160 = vector.broadcast %159 : vector<128x1xf32> to vector<128x128xf32>
    %161 = arith.mulf %156, %160 : vector<128x128xf32>
    %c0_56 = arith.constant 0 : index
    %c0_57 = arith.constant 0 : index
    %162 = vector.load %arg7[%c0_56, %c0_57] : memref<1x128xf32, #tpu.memory_space<vmem>>, vector<1x128xf32>
    %163 = vector.broadcast %162 : vector<1x128xf32> to vector<128x128xf32>
    %164 = arith.mulf %161, %163 : vector<128x128xf32>
    %165 = arith.truncf %164 : vector<128x128xf32> to vector<128x128xbf16>
    %c0_58 = arith.constant 0 : index
    %c0_59 = arith.constant 0 : index
    %c0_60 = arith.constant 0 : index
    %166 = vector.load %arg8[%c0_58, %c0_59, %c0_60] : memref<1x128x128xbf16, #tpu.memory_space<vmem>>, vector<1x128x128xbf16>
    %167 = vector.shape_cast %166 : vector<1x128x128xbf16> to vector<128x128xbf16>
    %168 = vector.shape_cast %165 : vector<128x128xbf16> to vector<1x128x128xbf16>
    tpu.vector_store %arg8[%c0_58, %c0_59, %c0_60], %168 {strides = array<i32>} : memref<1x128x128xbf16, #tpu.memory_space<vmem>>, vector<1x128x128xbf16>,
    return
  }
  func.func @transform_0(%arg0: i32) -> (i32, i32, i32) {
    %c0_i32 = arith.constant 0 : i32
    %c0_i32_0 = arith.constant 0 : i32
    %c0_i32_1 = arith.constant 0 : i32
    return %arg0, %c0_i32, %c0_i32_0 : i32, i32, i32
  }
  func.func @transform_1(%arg0: i32) -> (i32, i32) {
    %c0_i32 = arith.constant 0 : i32
    %c0_i32_0 = arith.constant 0 : i32
    %c0_i32_1 = arith.constant 0 : i32
    return %c0_i32, %c0_i32_0 : i32, i32
  }
  func.func @transform_2(%arg0: i32) -> (i32, i32) {
    %c0_i32 = arith.constant 0 : i32
    %c0_i32_0 = arith.constant 0 : i32
    %c0_i32_1 = arith.constant 0 : i32
    return %c0_i32, %c0_i32_0 : i32, i32
  }
  func.func @transform_3(%arg0: i32) -> (i32, i32) {
    %c0_i32 = arith.constant 0 : i32
    %c0_i32_0 = arith.constant 0 : i32
    %c0_i32_1 = arith.constant 0 : i32
    return %c0_i32, %c0_i32_0 : i32, i32
  }
  func.func @transform_4(%arg0: i32) -> (i32, i32) {
    %c0_i32 = arith.constant 0 : i32
    %c0_i32_0 = arith.constant 0 : i32
    %c0_i32_1 = arith.constant 0 : i32
    return %c0_i32, %c0_i32_0 : i32, i32
  }
  func.func @transform_5(%arg0: i32) -> (i32, i32) {
    %c0_i32 = arith.constant 0 : i32
    %c0_i32_0 = arith.constant 0 : i32
    %c0_i32_1 = arith.constant 0 : i32
    return %c0_i32, %c0_i32_0 : i32, i32
  }
  func.func @transform_6(%arg0: i32) -> (i32, i32) {
    %c0_i32 = arith.constant 0 : i32
    %c0_i32_0 = arith.constant 0 : i32
    %c0_i32_1 = arith.constant 0 : i32
    return %c0_i32, %c0_i32_0 : i32, i32
  }
  func.func @transform_7(%arg0: i32) -> (i32, i32, i32) {
    %c0_i32 = arith.constant 0 : i32
    %c0_i32_0 = arith.constant 0 : i32
    %c0_i32_1 = arith.constant 0 : i32
    return %arg0, %c0_i32, %c0_i32_0 : i32, i32, i32
  }
}

</mosaic_0001>

<bundles_post_ra>
// kernel: transformer_forward.5
= control target key start
LH: loop header
LB: loop body
LE: loop exit
PB: predicated region body
PF: predicated region fallthrough
CT: control target
= control target key end

     0   :  { %9 = vsyncpa [#allocation3], 0  ;;  %s1799_s0 = inlined_call_operand.vmem [shape: bf16[256,128], index: 0, kind: input, shape index: {}]   ;;  %s1800_s1 = inlined_call_operand.vmem [shape: f32[1,128], index: 1, kind: input, shape index: {}]   ;;  %s1801_s2 = inlined_call_operand.vmem [shape: f32[1,128], index: 2, kind: input, shape index: {}]   ;;  %s1802_s3 = inlined_call_operand.vmem [shape: bf16[128,512], index: 3, kind: input, shape index: {}]   ;;  %s1803_s4 = inlined_call_operand.hbm [shape: f32[256,512], index: 4, kind: output, shape index: {}]  }
   0x1   :  { %11 = vsyncpa [#allocation3 + $0x1], 0  ;;  %s1323_s15 = smov 0   ;;  %s1325_s16 = smov 0  }
   0x2   :  { %s1327_s17 = smov 0   ;;  %s1329_s18 = smov 0  }
   0x3 LB: > { %s1344_s19 = sadd.s32 4294967295, %s1292_s18   ;;  %s1022_s20 = sadd.s32 4294967294, %s1292_s18   ;;  %s1292_s18 = sphi %s1329_s18, %s1809_s18   ;;  %s1288_s17 = sphi %s1327_s17, %s1808_s17   ;;  %s1284_s16 = sphi %s1325_s16, %s1807_s16   ;;  %s1280_s15 = sphi %s1323_s15, %s1806_s15  }
   0x4   : > { %s1348_s21 = sadd.s32 1, %s1292_s18   ;;  %s113_s22 = sadd.s32 1, %s1288_s17 }
   0x5   : > { %s110_s23 = ssub.s32 %s1292_s18, %s1348_s21  ;;  %p123_p0 = scmp.ne.s32.totalorder %s1288_s17, %s1284_s16 }
   0x6   : > { %p111_p1 = scmp.eq.s32.totalorder %s110_s23, 0  ;;  %p124_p2 = scmp.eq.s32.totalorder %s1344_s19, 1 }
   0x7   : > { %p129_p3 = scmp.ne.s32.totalorder %s1284_s16, %s1280_s15  ;;  %p130_p4 = scmp.eq.s32.totalorder %s1022_s20, 1 }
   0x8   : > { %s1359_s24 = scalar_select %p111_p1, %s1288_s17, %s113_s22  }
   0x9   : > { %p1361_p5 = por %p124_p2, %p123_p0  ;;  %p1365_p6 = por %p130_p4, %p129_p3 }
   0xa   : > { %p1025_p7 = scmp.ge.s32.totalorder %s1292_s18, 1  ;;  %p166_p8 = scmp.lt.s32.totalorder %s1292_s18, 3 }
   0xc   : > { %p167_p9 = pnand %p1025_p7, %p166_p8 }
   0xd   : > { %s1027_s27 = sshll.u32 (!%p167_p9), %s1344_s19, 4  ;;  %s189_s6 = sand.u32 (!%p167_p9), 1, %s1284_s16  }
   0xe   : > { %170 = sbr.rel (%p167_p9) target bundleno = 606 (0x25e), region = 36  ;;  %p193_p10 = scmp.lt.s32.totalorder (!%p167_p9), %s1027_s27, 31 }
   0xf   : > { %s1026_s7 = sshll.u32 (!%p167_p9), %s189_s6, 9  ;;  %s1070_s9 = sshll.u32 (!%p167_p9), %s1344_s19, 13 }
  0x10   : > { %s1682_s8 = scalar_lea.vmem (!%p167_p9), [#allocation2], %s1026_s7  ;;  %s1749_s13 = scalar_lea.hbm (!%p167_p9), %s1803_s4, %s1070_s9 }
  0x11   : > { %s960_s10 = sshll.u32 (!%p167_p9), %s1682_s8, 4  ;;  %s1759_s19 = scalar_lea.sflag (!%p167_p9), [#allocation3], %s189_s6  ;;  %s1751_s10 = int_to_ptr.vmem [resolvable:$true] %s960_s10 }
  0x12   : > { %s1232_s14 = scalar_lea.vmem (!%p167_p9), %s1751_s10, 8192  ;;  %s1295_s20 = smov (!%p167_p9), [#allocation2]  }
  0x13   : > { %s1811_s27 = smov (!%p193_p10, %s1027_s27), 31  ;;  %v1152_v24 = vld [vmem:[%s1802_s3 + $0xe4] ss:$16 sps:$4 sm:$0xff]   ;;  %v1154_v25 = vld [vmem:[%s1802_s3 + $0xec] ss:$16 sps:$4 sm:$0xff]   ;;  %p1233_p11 = scmp.ne.s32.totalorder %s1751_s10, %s1232_s14 }
  0x14   : > { %s1028_s28 = sshll.u32 %s1811_s27, 2  ;;  %v1156_v26 = vld [vmem:[%s1802_s3 + $0xe0] ss:$16 sps:$4 sm:$0xff]   ;;  %v1157_v27 = vld [vmem:[%s1802_s3 + $0xe8] ss:$16 sps:$4 sm:$0xff]   ;;  %655 = vmatprep.subr.bf16.mxu0 %v1152_v24  ;;  %768 = vmatprep.subr.bf16.mxu1 %v1154_v25  ;;  %s1236_s22 = sshll.u32 %s1295_s20, 4  ;;  %s1237_s22 = int_to_ptr.vmem [resolvable:$false] %s1236_s22 }
  0x15   : > { %s1375_s5 = scalar_lea.vmem %s1799_s0, %s1028_s28  ;;  %656 = vmatpush1.bf16.msra.mxu0 %v1156_v26  ;;  %769 = vmatpush1.bf16.msra.mxu1 %v1157_v27  ;;  %v1158_v63 = vld [vmem:[%s1802_s3 + $0xc4] ss:$16 sps:$4 sm:$0xff]   ;;  %v1168_v25 = vld [vmem:[%s1802_s3 + $0xa0] ss:$16 sps:$4 sm:$0xff]   ;;  %v1169_v26 = vld [vmem:[%s1802_s3 + $0xa8] ss:$16 sps:$4 sm:$0xff]   ;;  %p1234_p12 = pnand %p1233_p11, %p1361_p5 }
  0x16   : > { %v1072_v0 = vld [vmem:[%s1375_s5] sm:$0xff]   ;;  %v1103_v1 = vld [vmem:[%s1375_s5 + $0x8] sm:$0xff]   ;;  %v1380_v4 = vld [vmem:[%s1375_s5 + $0x10] sm:$0xff]   ;;  %657 = vmatprep.subr.bf16.mxu0 %v1158_v63  ;;  %s1238_s23 = scalar_lea.vmem %s1237_s22, 16384  ;;  %p1239_p0 = scmp.lt.s32.totalorder %s1751_s10, %s1237_s22 }
  0x17   : > { %v1073_v2 = vunpack.c.l.bf16 %v1072_v0  ;;  %v1077_v3 = vunpack.c.l.bf16 %v1103_v1  ;;  %v1074_v5 = vunpack.c.h.bf16 %v1072_v0  ;;  %v1078_v6 = vunpack.c.h.bf16 %v1103_v1  ;;  %v1385_v9 = vld [vmem:[%s1375_s5 + $0x18] sm:$0xff]   ;;  %v1390_v12 = vld [vmem:[%s1375_s5 + $0x20] sm:$0xff]   ;;  %v1397_v15 = vld [vmem:[%s1375_s5 + $0x28] sm:$0xff]   ;;  %p1235_p13 = pneg %p1234_p12  ;;  %p1240_p1 = scmp.lt.s32.totalorder %s1238_s23, %s1232_s14 }
  0x18   : > { %v1081_v7 = vunpack.c.l.bf16 %v1380_v4  ;;  %v1082_v8 = vunpack.c.h.bf16 %v1380_v4  ;;  %v1085_v10 = vunpack.c.l.bf16 %v1385_v9  ;;  %v1086_v11 = vunpack.c.h.bf16 %v1385_v9  ;;  %v1406_v18 = vld [vmem:[%s1375_s5 + $0x30] sm:$0xff]   ;;  %v1415_v21 = vld [vmem:[%s1375_s5 + $0x38] sm:$0xff]  }
  0x19   : > { %232 = vadd.xlane.f32.xlu0 %v1073_v2  ;;  %236 = vadd.xlane.f32.xlu1 %v1077_v3  ;;  %v1089_v13 = vunpack.c.l.bf16 %v1390_v12  ;;  %v1090_v14 = vunpack.c.h.bf16 %v1390_v12  ;;  %v1093_v16 = vunpack.c.l.bf16 %v1397_v15  ;;  %v1094_v17 = vunpack.c.h.bf16 %v1397_v15  ;;  %v1160_v0 = vld [vmem:[%s1802_s3 + $0xcc] ss:$16 sps:$4 sm:$0xff]   ;;  %v1162_v1 = vld [vmem:[%s1802_s3 + $0xc0] ss:$16 sps:$4 sm:$0xff]   ;;  %v1199_v63 = vld [vmem:[%s1802_s3 + $0x8] ss:$16 sps:$4 sm:$0xff]   ;;  %p1241_p2 = por %p1240_p1, %p1239_p0 }
  0x1a   : > { %v1097_v19 = vunpack.c.l.bf16 %v1406_v18  ;;  %v1098_v20 = vunpack.c.h.bf16 %v1406_v18  ;;  %v1101_v22 = vunpack.c.l.bf16 %v1415_v21  ;;  %v1102_v23 = vunpack.c.h.bf16 %v1415_v21  ;;  %770 = vmatprep.subr.bf16.mxu1 %v1160_v0  ;;  %658 = vmatpush1.bf16.msra.mxu0 %v1162_v1  ;;  %v1166_v12 = vld [vmem:[%s1802_s3 + $0xac] ss:$16 sps:$4 sm:$0xff]   ;;  %v1182_v21 = vld [vmem:[%s1802_s3 + $0x44] ss:$16 sps:$4 sm:$0xff]  }
  0x1b   : > { %v1294_v0 = vmov 0   ;;  %p1242_p3 = pnand %p1241_p2, %p1235_p13 }
  0x1c   : > { %687 = vmatprep.mubr.bf16.mxu0 %v1294_v0  ;;  %800 = vmatprep.mubr.bf16.mxu1 %v1294_v0 }
  0x1d   : > { %234 = vadd.xlane.f32.xlu0 %v1074_v5  ;;  %238 = vadd.xlane.f32.xlu1 %v1078_v6 }
  0x21   : > { %240 = vadd.xlane.f32.xlu0 %v1081_v7  ;;  %242 = vadd.xlane.f32.xlu1 %v1082_v8 }
  0x25   : > { %244 = vadd.xlane.f32.xlu0 %v1085_v10  ;;  %246 = vadd.xlane.f32.xlu1 %v1086_v11 }
  0x29   : > { %248 = vadd.xlane.f32.xlu0 %v1089_v13  ;;  %250 = vadd.xlane.f32.xlu1 %v1090_v14 }
  0x2d   : > { %252 = vadd.xlane.f32.xlu0 %v1093_v16  ;;  %254 = vadd.xlane.f32.xlu1 %v1094_v17 }
  0x31   : > { %256 = vadd.xlane.f32.xlu0 %v1097_v19  ;;  %258 = vadd.xlane.f32.xlu1 %v1098_v20 }
  0x35   : > { %260 = vadd.xlane.f32.xlu0 %v1101_v22  ;;  %262 = vadd.xlane.f32.xlu1 %v1102_v23 }
  0xa2   : > { %v233_v28 = vpop.xlane.xlu0 %232  ;;  %v237_v29 = vpop.xlane.xlu1 %236 }
  0xa3   : > { %v265_v30 = vmul.f32 0.0078125, %v233_v28  ;;  %v267_v31 = vmul.f32 0.0078125, %v237_v29  ;;  %v1170_v29 = vld [vmem:[%s1802_s3 + $0x84] ss:$16 sps:$4 sm:$0xff]  }
  0xa5   : > { %v1439_v32 = vsub.f32 %v1073_v2, %v265_v30  ;;  %v1441_v33 = vsub.f32 %v1077_v3, %v267_v31  ;;  %v1163_v2 = vld [vmem:[%s1802_s3 + $0xc8] ss:$16 sps:$4 sm:$0xff]   ;;  %v1172_v30 = vld [vmem:[%s1802_s3 + $0x8c] ss:$16 sps:$4 sm:$0xff]  }
  0xa6   : > { %v235_v34 = vpop.xlane.xlu0 %234  ;;  %v239_v35 = vpop.xlane.xlu1 %238  ;;  %771 = vmatpush1.bf16.msra.mxu1 %v1163_v2 }
  0xa7   : > { %v266_v36 = vmul.f32 0.0078125, %v235_v34  ;;  %v297_v37 = vmul.f32 %v1439_v32, %v1439_v32  ;;  %v268_v38 = vmul.f32 0.0078125, %v239_v35  ;;  %v299_v41 = vmul.f32 %v1441_v33, %v1441_v33  ;;  %772 = vmatprep.subr.bf16.mxu1 %v1166_v12 }
  0xa9   : > { %v1445_v39 = vsub.f32 %v1074_v5, %v266_v36  ;;  %313 = vadd.xlane.f32.xlu0 %v297_v37  ;;  %v1447_v40 = vsub.f32 %v1078_v6, %v268_v38  ;;  %v1174_v36 = vld [vmem:[%s1802_s3 + $0x80] ss:$16 sps:$4 sm:$0xff]   ;;  %v1175_v37 = vld [vmem:[%s1802_s3 + $0x88] ss:$16 sps:$4 sm:$0xff]  }
  0xaa   : > { %v241_v42 = vpop.xlane.xlu0 %240  ;;  %v243_v43 = vpop.xlane.xlu1 %242  ;;  %773 = vmatpush1.bf16.msra.mxu1 %v1169_v26 }
  0xab   : > { %v269_v44 = vmul.f32 0.0078125, %v241_v42  ;;  %v298_v45 = vmul.f32 %v1445_v39, %v1445_v39  ;;  %v270_v46 = vmul.f32 0.0078125, %v243_v43  ;;  %v300_v49 = vmul.f32 %v1447_v40, %v1447_v40  ;;  %774 = vmatprep.subr.bf16.mxu1 %v1172_v30  ;;  %v1176_v42 = vld [vmem:[%s1802_s3 + $0x64] ss:$16 sps:$4 sm:$0xff]   ;;  %v1178_v43 = vld [vmem:[%s1802_s3 + $0x6c] ss:$16 sps:$4 sm:$0xff]  }
  0xad   : > { %v1453_v47 = vsub.f32 %v1081_v7, %v269_v44  ;;  %317 = vadd.xlane.f32.xlu0 %v299_v41  ;;  %315 = vadd.xlane.f32.xlu1 %v298_v45  ;;  %v1455_v48 = vsub.f32 %v1082_v8, %v270_v46 }
  0xae   : > { %v245_v50 = vpop.xlane.xlu0 %244  ;;  %v247_v51 = vpop.xlane.xlu1 %246  ;;  %775 = vmatpush1.bf16.msra.mxu1 %v1175_v37 }
  0xaf   : > { %v271_v52 = vmul.f32 0.0078125, %v245_v50  ;;  %v301_v53 = vmul.f32 %v1453_v47, %v1453_v47  ;;  %v272_v54 = vmul.f32 0.0078125, %v247_v51  ;;  %v302_v57 = vmul.f32 %v1455_v48, %v1455_v48  ;;  %v1181_v50 = vld [vmem:[%s1802_s3 + $0x68] ss:$16 sps:$4 sm:$0xff]   ;;  %776 = vmatprep.subr.bf16.mxu1 %v1178_v43 }
  0xb1   : > { %v1461_v55 = vsub.f32 %v1085_v10, %v271_v52  ;;  %319 = vadd.xlane.f32.xlu1 %v300_v49  ;;  %321 = vadd.xlane.f32.xlu0 %v301_v53  ;;  %v1465_v56 = vsub.f32 %v1086_v11, %v272_v54  ;;  %v1164_v11 = vld [vmem:[%s1802_s3 + $0xa4] ss:$16 sps:$4 sm:$0xff]   ;;  %v1180_v49 = vld [vmem:[%s1802_s3 + $0x60] ss:$16 sps:$4 sm:$0xff]   ;;  %v1187_v53 = vld [vmem:[%s1802_s3 + $0x48] ss:$16 sps:$4 sm:$0xff]  }
  0xb2   : > { %v249_v58 = vpop.xlane.xlu0 %248  ;;  %v251_v59 = vpop.xlane.xlu1 %250  ;;  %659 = vmatprep.subr.bf16.mxu0 %v1164_v11  ;;  %777 = vmatpush1.bf16.msra.mxu1 %v1181_v50  ;;  %v1186_v52 = vld [vmem:[%s1802_s3 + $0x40] ss:$16 sps:$4 sm:$0xff]   ;;  %v1188_v54 = vld [vmem:[%s1802_s3 + $0x24] ss:$16 sps:$4 sm:$0xff]  }
  0xb3   : > { %v273_v60 = vmul.f32 0.0078125, %v249_v58  ;;  %v303_v61 = vmul.f32 %v1461_v55, %v1461_v55  ;;  %v274_v62 = vmul.f32 0.0078125, %v251_v59  ;;  %v304_v5 = vmul.f32 %v1465_v56, %v1465_v56  ;;  %660 = vmatpush1.bf16.msra.mxu0 %v1168_v25  ;;  %v1192_v58 = vld [vmem:[%s1802_s3 + $0x20] ss:$16 sps:$4 sm:$0xff]   ;;  %v1193_v59 = vld [vmem:[%s1802_s3 + $0x28] ss:$16 sps:$4 sm:$0xff]  }
  0xb4   : > { %661 = vmatprep.subr.bf16.mxu0 %v1170_v29 }
  0xb5   : > { %v1485_v3 = vsub.f32 %v1089_v13, %v273_v60  ;;  %323 = vadd.xlane.f32.xlu1 %v302_v57  ;;  %325 = vadd.xlane.f32.xlu0 %v303_v61  ;;  %v1489_v4 = vsub.f32 %v1090_v14, %v274_v62  ;;  %v1190_v57 = vld [vmem:[%s1802_s3 + $0x2c] ss:$16 sps:$4 sm:$0xff]   ;;  %v1194_v60 = vld [vmem:[%s1802_s3 + $0x4] ss:$16 sps:$4 sm:$0xff]   ;;  %v1198_v62 = vld [vmem:[%s1802_s3] ss:$16 sps:$4 sm:$0xff]  }
  0xb6   : > { %v253_v6 = vpop.xlane.xlu0 %252  ;;  %v255_v7 = vpop.xlane.xlu1 %254  ;;  %v1196_v61 = vld [vmem:[%s1802_s3 + $0xc] ss:$16 sps:$4 sm:$0xff]  }
  0xb7   : > { %v275_v8 = vmul.f32 0.0078125, %v253_v6  ;;  %v305_v9 = vmul.f32 %v1485_v3, %v1485_v3  ;;  %v276_v10 = vmul.f32 0.0078125, %v255_v7  ;;  %v306_v24 = vmul.f32 %v1489_v4, %v1489_v4  ;;  %662 = vmatpush1.bf16.msra.mxu0 %v1174_v36 }
  0xb8   : > { %663 = vmatprep.subr.bf16.mxu0 %v1176_v42 }
  0xb9   : > { %v1503_v13 = vsub.f32 %v1093_v16, %v275_v8  ;;  %327 = vadd.xlane.f32.xlu1 %v304_v5  ;;  %329 = vadd.xlane.f32.xlu0 %v305_v9  ;;  %v1507_v14 = vsub.f32 %v1094_v17, %v276_v10 }
  0xba   : > { %v257_v27 = vpop.xlane.xlu0 %256  ;;  %v259_v16 = vpop.xlane.xlu1 %258 }
  0xbb   : > { %v277_v28 = vmul.f32 0.0078125, %v257_v27  ;;  %v307_v15 = vmul.f32 %v1503_v13, %v1503_v13  ;;  %v278_v17 = vmul.f32 0.0078125, %v259_v16  ;;  %v308_v35 = vmul.f32 %v1507_v14, %v1507_v14  ;;  %664 = vmatpush1.bf16.msra.mxu0 %v1180_v49 }
  0xbc   : > { %665 = vmatprep.subr.bf16.mxu0 %v1182_v21 }
  0xbd   : > { %v1527_v31 = vsub.f32 %v1097_v19, %v277_v28  ;;  %331 = vadd.xlane.f32.xlu1 %v306_v24  ;;  %333 = vadd.xlane.f32.xlu0 %v307_v15  ;;  %v1531_v34 = vsub.f32 %v1098_v20, %v278_v17 }
  0xbe   : > { %v261_v38 = vpop.xlane.xlu0 %260  ;;  %v263_v19 = vpop.xlane.xlu1 %262 }
  0xbf   : > { %v279_v41 = vmul.f32 0.0078125, %v261_v38  ;;  %v309_v18 = vmul.f32 %v1527_v31, %v1527_v31  ;;  %v280_v20 = vmul.f32 0.0078125, %v263_v19  ;;  %v310_v46 = vmul.f32 %v1531_v34, %v1531_v34  ;;  %666 = vmatpush1.bf16.msra.mxu0 %v1186_v52  ;;  %v1611_v19 = vld [vmem:[%s1800_s1] ss:$0 sm:$0xff] }
  0xc0   : > { %667 = vmatprep.subr.bf16.mxu0 %v1188_v54 }
  0xc1   : > { %v1551_v44 = vsub.f32 %v1101_v22, %v279_v41  ;;  %335 = vadd.xlane.f32.xlu1 %v308_v35  ;;  %337 = vadd.xlane.f32.xlu0 %v309_v18  ;;  %v1555_v45 = vsub.f32 %v1102_v23, %v280_v20  ;;  %v1184_v23 = vld [vmem:[%s1802_s3 + $0x4c] ss:$16 sps:$4 sm:$0xff]  }
  0xc2   : > { %778 = vmatprep.subr.bf16.mxu1 %v1184_v23 }
  0xc3   : > { %v311_v22 = vmul.f32 %v1551_v44, %v1551_v44  ;;  %v312_v51 = vmul.f32 %v1555_v45, %v1555_v45  ;;  %779 = vmatpush1.bf16.msra.mxu1 %v1187_v53  ;;  %668 = vmatpush1.bf16.msra.mxu0 %v1192_v58 }
  0xc4   : > { %780 = vmatprep.subr.bf16.mxu1 %v1190_v57  ;;  %669 = vmatprep.subr.bf16.mxu0 %v1194_v60 }
  0xc5   : > { %339 = vadd.xlane.f32.xlu1 %v310_v46  ;;  %341 = vadd.xlane.f32.xlu0 %v311_v22  ;;  %v1618_v22 = vld [vmem:[%s1801_s2] ss:$0 sm:$0xff] }
  0xc7   : > { %781 = vmatpush1.bf16.msra.mxu1 %v1193_v59  ;;  %670 = vmatpush1.bf16.msra.mxu0 %v1198_v62 }
  0xc8   : > { %782 = vmatprep.subr.bf16.mxu1 %v1196_v61 }
  0xc9   : > { %343 = vadd.xlane.f32.xlu1 %v312_v51 }
  0xcb   : > { %783 = vmatpush1.bf16.msra.mxu1 %v1199_v63 }
 0x132   : > { %v314_v1 = vpop.xlane.xlu0 %313 }
 0x133   : > { %v345_v2 = vmul.f32 0.0078125, %v314_v1 }
 0x135   : > { %v361_v5 = vadd.f32 1e-06, %v345_v2 }
 0x136   : > { %v316_v6 = vpop.xlane.xlu1 %315  ;;  %v318_v7 = vpop.xlane.xlu0 %317 }
 0x137   : > { %1200 = vrsqrt.f32 %v361_v5  ;;  %v346_v8 = vmul.f32 0.0078125, %v316_v6  ;;  %v347_v9 = vmul.f32 0.0078125, %v318_v7 }
 0x139   : > { %v362_v10 = vadd.f32 1e-06, %v346_v8  ;;  %v363_v11 = vadd.f32 1e-06, %v347_v9 }
 0x13a   : > { %v320_v12 = vpop.xlane.xlu1 %319  ;;  %v322_v24 = vpop.xlane.xlu0 %321 }
 0x13b   : > { %1202 = vrsqrt.f32 %v362_v10  ;;  %v348_v25 = vmul.f32 0.0078125, %v320_v12  ;;  %v349_v27 = vmul.f32 0.0078125, %v322_v24 }
 0x13c   : > { %1204 = vrsqrt.f32 %v363_v11 }
 0x13d   : > { %v364_v26 = vadd.f32 1e-06, %v348_v25  ;;  %v365_v15 = vadd.f32 1e-06, %v349_v27 }
 0x13e   : > { %v324_v16 = vpop.xlane.xlu1 %323  ;;  %v326_v29 = vpop.xlane.xlu0 %325 }
 0x13f   : > { %1206 = vrsqrt.f32 %v364_v26  ;;  %v350_v28 = vmul.f32 0.0078125, %v324_v16  ;;  %v351_v37 = vmul.f32 0.0078125, %v326_v29 }
 0x141   : > { %v366_v17 = vadd.f32 1e-06, %v350_v28  ;;  %v367_v20 = vadd.f32 1e-06, %v351_v37 }
 0x142   : > { %v328_v30 = vpop.xlane.xlu1 %327  ;;  %v330_v43 = vpop.xlane.xlu0 %329 }
 0x143   : > { %1208 = vrsqrt.f32 %v366_v17  ;;  %v352_v35 = vmul.f32 0.0078125, %v328_v30  ;;  %v353_v51 = vmul.f32 0.0078125, %v330_v43 }
 0x144   : > { %v1201_v36 = vpop.eup %1200  ;;  %1210 = vrsqrt.f32 %v365_v15 }
 0x145   : > { %v393_v38 = vmul.f32 %v1201_v36, %v1439_v32  ;;  %v368_v41 = vadd.f32 1e-06, %v352_v35  ;;  %v369_v62 = vadd.f32 1e-06, %v353_v51 }
 0x146   : > { %v332_v42 = vpop.xlane.xlu1 %331  ;;  %v334_v2 = vpop.xlane.xlu0 %333 }
 0x147   : > { %v416_v49 = vmul.f32 %v1611_v19, %v393_v38  ;;  %1212 = vrsqrt.f32 %v368_v41  ;;  %v354_v32 = vmul.f32 0.0078125, %v332_v42  ;;  %v355_v6 = vmul.f32 0.0078125, %v334_v2 }
 0x148   : > { %v1203_v18 = vpop.eup %1202  ;;  %1214 = vrsqrt.f32 %v367_v20 }
 0x149   : > { %v394_v46 = vmul.f32 %v1203_v18, %v1445_v39  ;;  %v1205_v50 = vpop.eup %1204  ;;  %v439_v52 = vadd.f32 %v1618_v22, %v416_v49  ;;  %v370_v57 = vadd.f32 1e-06, %v354_v32  ;;  %v371_v26 = vadd.f32 1e-06, %v355_v6 }
 0x14a   : > { %v395_v39 = vmul.f32 %v1205_v50, %v1441_v33  ;;  %v336_v60 = vpop.xlane.xlu1 %335  ;;  %v338_v16 = vpop.xlane.xlu0 %337 }
 0x14b   : > { %v417_v21 = vmul.f32 %v1611_v19, %v394_v46  ;;  %1216 = vrsqrt.f32 %v370_v57  ;;  %v356_v33 = vmul.f32 0.0078125, %v336_v60  ;;  %v357_v15 = vmul.f32 0.0078125, %v338_v16 }
 0x14c   : > { %v1207_v23 = vpop.eup %1206  ;;  %v418_v63 = vmul.f32 %v1611_v19, %v395_v39  ;;  %1218 = vrsqrt.f32 %v369_v62 }
 0x14d   : > { %v440_v53 = vadd.f32 %v1618_v22, %v417_v21  ;;  %v396_v54 = vmul.f32 %v1207_v23, %v1447_v40  ;;  %v372_v9 = vadd.f32 1e-06, %v356_v33  ;;  %v373_v41 = vadd.f32 1e-06, %v357_v15 }
 0x14e   : > { %v441_v7 = vadd.f32 %v1618_v22, %v418_v63  ;;  %v340_v24 = vpop.xlane.xlu1 %339  ;;  %v342_v42 = vpop.xlane.xlu0 %341 }
 0x14f   : > { %v455_v58 = vpack.c.bf16 %v440_v53, %v439_v52  ;;  %v419_v61 = vmul.f32 %v1611_v19, %v396_v54  ;;  %1220 = vrsqrt.f32 %v372_v9  ;;  %v359_v46 = vmul.f32 0.0078125, %v342_v42 }
 0x150   : > { %v1209_v59 = vpop.eup %1208  ;;  %1222 = vrsqrt.f32 %v371_v26 }
 0x151   : > { %688 = vmatmul.mubr.bf16.vlgmr.msra.gmra.mxu0 %v455_v58  ;;  %801 = vmatmul.mubr.bf16.vlgmr.msra.gmra.mxu1 %v455_v58  ;;  %v1211_v1 = vpop.eup %1210  ;;  %v442_v40 = vadd.f32 %v1618_v22, %v419_v61  ;;  %v398_v5 = vmul.f32 %v1209_v59, %v1455_v48  ;;  %v358_v48 = vmul.f32 0.0078125, %v340_v24  ;;  %v375_v52 = vadd.f32 1e-06, %v359_v46 }
 0x152   : > { %697 = vmatprep.mubr.bf16.mxu0 %v1294_v0  ;;  %810 = vmatprep.mubr.bf16.mxu1 %v1294_v0  ;;  %v397_v8 = vmul.f32 %v1211_v1, %v1453_v47  ;;  %v344_v38 = vpop.xlane.xlu1 %343 }
 0x153   : > { %v456_v10 = vpack.c.bf16 %v442_v40, %v441_v7  ;;  %v421_v11 = vmul.f32 %v1611_v19, %v398_v5  ;;  %v374_v30 = vadd.f32 1e-06, %v358_v48 }
 0x154   : > { %v1213_v12 = vpop.eup %1212  ;;  %v420_v27 = vmul.f32 %v1611_v19, %v397_v8 }
 0x155   : > { %v1215_v25 = vpop.eup %1214  ;;  %v444_v47 = vadd.f32 %v1618_v22, %v421_v11  ;;  %v400_v28 = vmul.f32 %v1213_v12, %v1465_v56  ;;  %1224 = vrsqrt.f32 %v374_v30  ;;  %v360_v56 = vmul.f32 0.0078125, %v344_v38 }
 0x156   : > { %v443_v17 = vadd.f32 %v1618_v22, %v420_v27  ;;  %v399_v29 = vmul.f32 %v1215_v25, %v1461_v55  ;;  %1226 = vrsqrt.f32 %v373_v41 }
 0x157   : > { %v423_v36 = vmul.f32 %v1611_v19, %v400_v28  ;;  %v376_v32 = vadd.f32 1e-06, %v360_v56 }
 0x158   : > { %v457_v35 = vpack.c.bf16 %v444_v47, %v443_v17  ;;  %v1217_v37 = vpop.eup %1216  ;;  %v422_v18 = vmul.f32 %v1611_v19, %v399_v29 }
 0x159   : > { %698 = vmatmul.mubr.bf16.gmra.mxu0 %v456_v10  ;;  %811 = vmatmul.mubr.bf16.gmra.mxu1 %v456_v10  ;;  %v1219_v20 = vpop.eup %1218  ;;  %v446_v55 = vadd.f32 %v1618_v22, %v423_v36  ;;  %v402_v43 = vmul.f32 %v1217_v37, %v1489_v4  ;;  %1228 = vrsqrt.f32 %v376_v32 }
 0x15a   : > { %707 = vmatprep.mubr.bf16.mxu0 %v1294_v0  ;;  %820 = vmatprep.mubr.bf16.mxu1 %v1294_v0  ;;  %v445_v49 = vadd.f32 %v1618_v22, %v422_v18  ;;  %v401_v50 = vmul.f32 %v1219_v20, %v1485_v3  ;;  %1230 = vrsqrt.f32 %v375_v52 }
 0x15b   : > { %v425_v23 = vmul.f32 %v1611_v19, %v402_v43 }
 0x15c   : > { %v458_v21 = vpack.c.bf16 %v446_v55, %v445_v49  ;;  %v1221_v51 = vpop.eup %1220  ;;  %v424_v53 = vmul.f32 %v1611_v19, %v401_v50 }
 0x15d   : > { %v1223_v39 = vpop.eup %1222  ;;  %v448_v4 = vadd.f32 %v1618_v22, %v425_v23  ;;  %v404_v3 = vmul.f32 %v1221_v51, %v1507_v14 }
 0x15e   : > { %v447_v54 = vadd.f32 %v1618_v22, %v424_v53  ;;  %v403_v57 = vmul.f32 %v1223_v39, %v1503_v13 }
 0x15f   : > { %v427_v59 = vmul.f32 %v1611_v19, %v404_v3 }
 0x160   : > { %v459_v58 = vpack.c.bf16 %v448_v4, %v447_v54  ;;  %v426_v61 = vmul.f32 %v1611_v19, %v403_v57 }
 0x161   : > { %708 = vmatmul.mubr.bf16.gmra.mxu0 %v457_v35  ;;  %821 = vmatmul.mubr.bf16.gmra.mxu1 %v457_v35  ;;  %v450_v14 = vadd.f32 %v1618_v22, %v427_v59 }
 0x162   : > { %717 = vmatprep.mubr.bf16.mxu0 %v1294_v0  ;;  %830 = vmatprep.mubr.bf16.mxu1 %v1294_v0  ;;  %v1225_v60 = vpop.eup %1224  ;;  %v449_v1 = vadd.f32 %v1618_v22, %v426_v61 }
 0x163   : > { %v1227_v62 = vpop.eup %1226  ;;  %v406_v63 = vmul.f32 %v1225_v60, %v1531_v34 }
 0x164   : > { %v405_v13 = vmul.f32 %v1227_v62, %v1527_v31  ;;  %v460_v2 = vpack.c.bf16 %v450_v14, %v449_v1 }
 0x165   : > { %v429_v33 = vmul.f32 %v1611_v19, %v406_v63 }
 0x166   : > { %v1229_v40 = vpop.eup %1228  ;;  %v428_v5 = vmul.f32 %v1611_v19, %v405_v13 }
 0x167   : > { %v1231_v6 = vpop.eup %1230  ;;  %v452_v7 = vadd.f32 %v1618_v22, %v429_v33  ;;  %v408_v34 = vmul.f32 %v1229_v40, %v1555_v45 }
 0x168   : > { %v451_v31 = vadd.f32 %v1618_v22, %v428_v5  ;;  %v407_v8 = vmul.f32 %v1231_v6, %v1551_v44 }
 0x169   : > { %718 = vmatmul.mubr.bf16.gmra.mxu0 %v458_v21  ;;  %831 = vmatmul.mubr.bf16.gmra.mxu1 %v458_v21  ;;  %v431_v10 = vmul.f32 %v1611_v19, %v408_v34 }
 0x16a   : > { %727 = vmatprep.mubr.bf16.mxu0 %v1294_v0  ;;  %840 = vmatprep.mubr.bf16.mxu1 %v1294_v0  ;;  %v461_v9 = vpack.c.bf16 %v452_v7, %v451_v31  ;;  %v430_v11 = vmul.f32 %v1611_v19, %v407_v8 }
 0x16b   : > { %v454_v12 = vadd.f32 %v1618_v22, %v431_v10 }
 0x16c   : > { %v453_v45 = vadd.f32 %v1618_v22, %v430_v11 }
 0x16e   : > { %v462_v24 = vpack.c.bf16 %v454_v12, %v453_v45 }
 0x171   : > { %728 = vmatmul.mubr.bf16.gmra.mxu0 %v459_v58  ;;  %841 = vmatmul.mubr.bf16.gmra.mxu1 %v459_v58 }
 0x172   : > { %737 = vmatprep.mubr.bf16.mxu0 %v1294_v0  ;;  %850 = vmatprep.mubr.bf16.mxu1 %v1294_v0 }
 0x179   : > { %738 = vmatmul.mubr.bf16.gmra.mxu0 %v460_v2  ;;  %851 = vmatmul.mubr.bf16.gmra.mxu1 %v460_v2 }
 0x17a   : > { %747 = vmatprep.mubr.bf16.mxu0 %v1294_v0  ;;  %860 = vmatprep.mubr.bf16.mxu1 %v1294_v0 }
 0x181   : > { %748 = vmatmul.mubr.bf16.gmra.mxu0 %v461_v9  ;;  %861 = vmatmul.mubr.bf16.gmra.mxu1 %v461_v9 }
 0x182   : > { %757 = vmatprep.mubr.bf16.mxu0 %v1294_v0  ;;  %870 = vmatprep.mubr.bf16.mxu1 %v1294_v0 }
 0x189   : > { %758 = vmatmul.mubr.bf16.gmra.mxu0 %v462_v24  ;;  %871 = vmatmul.mubr.bf16.gmra.mxu1 %v462_v24 }
 0x211   : > { %v689_v44 = vpop.f32.mrf.mxu0  ;;  %v802_v25 = vpop.f32.mrf.mxu1 }
 0x212   : > { %881 = vst [vmem:[%s1682_s8] sm:$0xff] %v689_v44  ;;  %883 = vst [vmem:[%s1682_s8 + $0x10] sm:$0xff] %v802_v25 }
 0x213   : > { %v691_v0 = vpop.f32.mrf.mxu0  ;;  %v804_v19 = vpop.f32.mrf.mxu1 }
 0x214   : > { %882 = vst [vmem:[%s1682_s8 + $0x8] sm:$0xff] %v691_v0  ;;  %884 = vst [vmem:[%s1682_s8 + $0x18] sm:$0xff] %v804_v19 }
 0x215   : > { %v693_v22 = vpop.f32.mrf.mxu0  ;;  %v806_v26 = vpop.f32.mrf.mxu1 }
 0x216   : > { %885 = vst [vmem:[%s1682_s8 + $0x20] sm:$0xff] %v693_v22  ;;  %887 = vst [vmem:[%s1682_s8 + $0x30] sm:$0xff] %v806_v26 }
 0x217   : > { %v695_v27 = vpop.f32.mrf.mxu0  ;;  %v808_v16 = vpop.f32.mrf.mxu1 }
 0x218   : > { %886 = vst [vmem:[%s1682_s8 + $0x28] sm:$0xff] %v695_v27  ;;  %888 = vst [vmem:[%s1682_s8 + $0x38] sm:$0xff] %v808_v16 }
 0x219   : > { %v699_v48 = vpop.f32.mrf.mxu0  ;;  %v812_v47 = vpop.f32.mrf.mxu1 }
 0x21a   : > { %889 = vst [vmem:[%s1682_s8 + $0x40] sm:$0xff] %v699_v48  ;;  %891 = vst [vmem:[%s1682_s8 + $0x50] sm:$0xff] %v812_v47 }
 0x21b   : > { %v701_v28 = vpop.f32.mrf.mxu0  ;;  %v814_v15 = vpop.f32.mrf.mxu1 }
 0x21c   : > { %890 = vst [vmem:[%s1682_s8 + $0x48] sm:$0xff] %v701_v28  ;;  %892 = vst [vmem:[%s1682_s8 + $0x58] sm:$0xff] %v814_v15 }
 0x21d   : > { %v703_v17 = vpop.f32.mrf.mxu0  ;;  %v816_v29 = vpop.f32.mrf.mxu1 }
 0x21e   : > { %893 = vst [vmem:[%s1682_s8 + $0x60] sm:$0xff] %v703_v17  ;;  %895 = vst [vmem:[%s1682_s8 + $0x70] sm:$0xff] %v816_v29 }
 0x21f   : > { %v705_v30 = vpop.f32.mrf.mxu0  ;;  %v818_v35 = vpop.f32.mrf.mxu1 }
 0x220   : > { %894 = vst [vmem:[%s1682_s8 + $0x68] sm:$0xff] %v705_v30  ;;  %896 = vst [vmem:[%s1682_s8 + $0x78] sm:$0xff] %v818_v35 }
 0x221   : > { %v709_v36 = vpop.f32.mrf.mxu0  ;;  %v822_v37 = vpop.f32.mrf.mxu1 }
 0x222   : > { %897 = vst [vmem:[%s1682_s8 + $0x80] sm:$0xff] %v709_v36  ;;  %899 = vst [vmem:[%s1682_s8 + $0x90] sm:$0xff] %v822_v37 }
 0x223   : > { %v711_v38 = vpop.f32.mrf.mxu0  ;;  %v824_v41 = vpop.f32.mrf.mxu1 }
 0x224   : > { %898 = vst [vmem:[%s1682_s8 + $0x88] sm:$0xff] %v711_v38  ;;  %900 = vst [vmem:[%s1682_s8 + $0x98] sm:$0xff] %v824_v41 }
 0x225   : > { %v713_v18 = vpop.f32.mrf.mxu0  ;;  %v826_v20 = vpop.f32.mrf.mxu1 }
 0x226   : > { %901 = vst [vmem:[%s1682_s8 + $0xa0] sm:$0xff] %v713_v18  ;;  %903 = vst [vmem:[%s1682_s8 + $0xb0] sm:$0xff] %v826_v20 }
 0x227   : > { %v715_v42 = vpop.f32.mrf.mxu0  ;;  %v828_v56 = vpop.f32.mrf.mxu1 }
 0x228   : > { %902 = vst [vmem:[%s1682_s8 + $0xa8] sm:$0xff] %v715_v42  ;;  %904 = vst [vmem:[%s1682_s8 + $0xb8] sm:$0xff] %v828_v56 }
 0x229   : > { %v719_v55 = vpop.f32.mrf.mxu0  ;;  %v832_v43 = vpop.f32.mrf.mxu1 }
 0x22a   : > { %905 = vst [vmem:[%s1682_s8 + $0xc0] sm:$0xff] %v719_v55  ;;  %907 = vst [vmem:[%s1682_s8 + $0xd0] sm:$0xff] %v832_v43 }
 0x22b   : > { %v721_v46 = vpop.f32.mrf.mxu0  ;;  %v834_v49 = vpop.f32.mrf.mxu1 }
 0x22c   : > { %906 = vst [vmem:[%s1682_s8 + $0xc8] sm:$0xff] %v721_v46  ;;  %908 = vst [vmem:[%s1682_s8 + $0xd8] sm:$0xff] %v834_v49 }
 0x22d   : > { %v723_v50 = vpop.f32.mrf.mxu0  ;;  %v836_v32 = vpop.f32.mrf.mxu1 }
 0x22e   : > { %909 = vst [vmem:[%s1682_s8 + $0xe0] sm:$0xff] %v723_v50  ;;  %911 = vst [vmem:[%s1682_s8 + $0xf0] sm:$0xff] %v836_v32 }
 0x22f   : > { %v725_v21 = vpop.f32.mrf.mxu0  ;;  %v838_v23 = vpop.f32.mrf.mxu1 }
 0x230   : > { %910 = vst [vmem:[%s1682_s8 + $0xe8] sm:$0xff] %v725_v21  ;;  %912 = vst [vmem:[%s1682_s8 + $0xf8] sm:$0xff] %v838_v23 }
 0x231   : > { %v729_v51 = vpop.f32.mrf.mxu0  ;;  %v842_v52 = vpop.f32.mrf.mxu1 }
 0x232   : > { %913 = vst [vmem:[%s1682_s8 + $0x100] sm:$0xff] %v729_v51  ;;  %915 = vst [vmem:[%s1682_s8 + $0x110] sm:$0xff] %v842_v52 }
 0x233   : > { %v731_v53 = vpop.f32.mrf.mxu0  ;;  %v844_v39 = vpop.f32.mrf.mxu1 }
 0x234   : > { %914 = vst [vmem:[%s1682_s8 + $0x108] sm:$0xff] %v731_v53  ;;  %916 = vst [vmem:[%s1682_s8 + $0x118] sm:$0xff] %v844_v39 }
 0x235   : > { %v733_v4 = vpop.f32.mrf.mxu0  ;;  %v846_v3 = vpop.f32.mrf.mxu1 }
 0x236   : > { %917 = vst [vmem:[%s1682_s8 + $0x120] sm:$0xff] %v733_v4  ;;  %919 = vst [vmem:[%s1682_s8 + $0x130] sm:$0xff] %v846_v3 }
 0x237   : > { %v735_v54 = vpop.f32.mrf.mxu0  ;;  %v848_v57 = vpop.f32.mrf.mxu1 }
 0x238   : > { %918 = vst [vmem:[%s1682_s8 + $0x128] sm:$0xff] %v735_v54  ;;  %920 = vst [vmem:[%s1682_s8 + $0x138] sm:$0xff] %v848_v57 }
 0x239   : > { %v739_v58 = vpop.f32.mrf.mxu0  ;;  %v852_v59 = vpop.f32.mrf.mxu1 }
 0x23a   : > { %921 = vst [vmem:[%s1682_s8 + $0x140] sm:$0xff] %v739_v58  ;;  %923 = vst [vmem:[%s1682_s8 + $0x150] sm:$0xff] %v852_v59 }
 0x23b   : > { %v741_v60 = vpop.f32.mrf.mxu0  ;;  %v854_v61 = vpop.f32.mrf.mxu1 }
 0x23c   : > { %922 = vst [vmem:[%s1682_s8 + $0x148] sm:$0xff] %v741_v60  ;;  %924 = vst [vmem:[%s1682_s8 + $0x158] sm:$0xff] %v854_v61 }
 0x23d   : > { %v743_v62 = vpop.f32.mrf.mxu0  ;;  %v856_v14 = vpop.f32.mrf.mxu1 }
 0x23e   : > { %925 = vst [vmem:[%s1682_s8 + $0x160] sm:$0xff] %v743_v62  ;;  %927 = vst [vmem:[%s1682_s8 + $0x170] sm:$0xff] %v856_v14 }
 0x23f   : > { %v745_v63 = vpop.f32.mrf.mxu0  ;;  %v858_v1 = vpop.f32.mrf.mxu1 }
 0x240   : > { %926 = vst [vmem:[%s1682_s8 + $0x168] sm:$0xff] %v745_v63  ;;  %928 = vst [vmem:[%s1682_s8 + $0x178] sm:$0xff] %v858_v1 }
 0x241   : > { %v749_v13 = vpop.f32.mrf.mxu0  ;;  %v862_v2 = vpop.f32.mrf.mxu1 }
 0x242   : > { %929 = vst [vmem:[%s1682_s8 + $0x180] sm:$0xff] %v749_v13  ;;  %931 = vst [vmem:[%s1682_s8 + $0x190] sm:$0xff] %v862_v2 }
 0x243   : > { %v751_v33 = vpop.f32.mrf.mxu0  ;;  %v864_v40 = vpop.f32.mrf.mxu1 }
 0x244   : > { %930 = vst [vmem:[%s1682_s8 + $0x188] sm:$0xff] %v751_v33  ;;  %932 = vst [vmem:[%s1682_s8 + $0x198] sm:$0xff] %v864_v40 }
 0x245   : > { %v753_v5 = vpop.f32.mrf.mxu0  ;;  %v866_v6 = vpop.f32.mrf.mxu1 }
 0x246   : > { %933 = vst [vmem:[%s1682_s8 + $0x1a0] sm:$0xff] %v753_v5  ;;  %935 = vst [vmem:[%s1682_s8 + $0x1b0] sm:$0xff] %v866_v6 }
 0x247   : > { %v755_v7 = vpop.f32.mrf.mxu0  ;;  %v868_v34 = vpop.f32.mrf.mxu1 }
 0x248   : > { %934 = vst [vmem:[%s1682_s8 + $0x1a8] sm:$0xff] %v755_v7  ;;  %936 = vst [vmem:[%s1682_s8 + $0x1b8] sm:$0xff] %v868_v34 }
 0x249   : > { %v759_v31 = vpop.f32.mrf.mxu0  ;;  %v872_v8 = vpop.f32.mrf.mxu1 }
 0x24a   : > { %937 = vst [vmem:[%s1682_s8 + $0x1c0] sm:$0xff] %v759_v31  ;;  %939 = vst [vmem:[%s1682_s8 + $0x1d0] sm:$0xff] %v872_v8 }
 0x24b   : > { %v761_v9 = vpop.f32.mrf.mxu0  ;;  %v874_v10 = vpop.f32.mrf.mxu1 }
 0x24c   : > { %938 = vst [vmem:[%s1682_s8 + $0x1c8] sm:$0xff] %v761_v9  ;;  %940 = vst [vmem:[%s1682_s8 + $0x1d8] sm:$0xff] %v874_v10 }
 0x24d   : > { %v763_v11 = vpop.f32.mrf.mxu0  ;;  %v876_v12 = vpop.f32.mrf.mxu1 }
 0x24e   : > { %941 = vst [vmem:[%s1682_s8 + $0x1e0] sm:$0xff] %v763_v11  ;;  %943 = vst [vmem:[%s1682_s8 + $0x1f0] sm:$0xff] %v876_v12 }
 0x24f   : > { %v765_v45 = vpop.f32.mrf.mxu0  ;;  %v878_v24 = vpop.f32.mrf.mxu1 }
 0x250   : > { %942 = vst [vmem:[%s1682_s8 + $0x1e8] sm:$0xff] %v765_v45  ;;  %944 = vst [vmem:[%s1682_s8 + $0x1f8] sm:$0xff] %v878_v24 }
 0x251   : > { %1245 = shalt.err (!%p1242_p3)
}
 0x252   : > { %s1246_s27 = scalar_lea.hbm %s1749_s13, 8192  ;;  %s1250_s30 = scalar_lea.hbm %s1803_s4, 16384 }
 0x253   : > { %p1247_p4 = scmp.ne.s32.totalorder %s1749_s13, %s1246_s27  ;;  %p1251_p9 = scmp.lt.s32.totalorder %s1749_s13, %s1803_s4 }
 0x254   : > { %p1252_p10 = scmp.lt.s32.totalorder %s1250_s30, %s1246_s27 }
 0x255   : > { %p1248_p7 = pnand %p1247_p4, %p1361_p5 }
 0x256   : > { %p1253_p11 = por %p1252_p10, %p1251_p9 }
 0x257   : > { %p1249_p8 = pneg %p1248_p7 }
 0x259   : > { %p1254_p12 = pnand %p1253_p11, %p1249_p8 }
 0x25b   : > { %1257 = shalt.err (!%p1254_p12)
}
 0x25c   : > { %s1296_s7 = smov 512   ;;  %s1297_s8 = smov 32  }
 0x25d   : > { %1110 = dma.vmem_to_hbm [thread:$0]  (%p1361_p5), %s1751_s10, 8192, %s1749_s13, %s1759_s19, %s1296_s7, %s1296_s7, %s1297_s8  }
 0x25e PF: > { %p1116_p13 = scmp.ge.s32.totalorder %s1292_s18, 2  ;;  %s975_s9 = sand.u32 1, %s1280_s15  }
 0x25f   : > { %s976_s11 = scalar_lea.sflag [#allocation3], %s975_s9 }
 0x260   : > { %p1113_p0 = pnand %p1116_p13, %p1365_p6 }
 0x262   : > { %p1114_p1 = pneg %p1113_p0 }
 0x264   : > { %1275 = dma.done.wait (%p1114_p1), %s976_s11, 8192  }
 0x265   : > { %1277 = vsyncadd (%p1114_p1), %s976_s11, 4294959104  ;;  %p14_p2 = scmp.ge.s32.totalorder %s1348_s21, 4   ;;  %s1806_s15 = smov %s1284_s16 }
 0x266   : > { %s1807_s16 = smov %s1288_s17  ;;  %s1808_s17 = smov %s1359_s24 }
 0x267   : > { %s1809_s18 = smov %s1348_s21  ;;  %16 = sbr.rel (!%p14_p2) target bundleno = 3 (0x3), region = 71 }
 0x26c   :  { %981 = vsyncpa [#allocation3], 1 }
 0x26d   :  { %983 = vsyncpa [#allocation3 + $0x1], 1 }

// kernel: transformer_forward.3
= control target key start
LH: loop header
LB: loop body
LE: loop exit
PB: predicated region body
PF: predicated region fallthrough
CT: control target
= control target key end

     0   :  { %s6722_s24 = smov 0   ;;  %s9193_s0 = inlined_call_operand.vmem [shape: bf16[2,128,128], index: 0, kind: input, shape index: {}]   ;;  %s9194_s1 = inlined_call_operand.vmem [shape: bf16[128,384], index: 1, kind: input, shape index: {}]   ;;  %s9195_s2 = inlined_call_operand.vmem [shape: bf16[128,128], index: 2, kind: input, shape index: {}]   ;;  %s9196_s3 = inlined_call_operand.vmem [shape: bf16[128,512], index: 3, kind: input, shape index: {}]   ;;  %s9197_s4 = inlined_call_operand.vmem [shape: bf16[512,128], index: 4, kind: input, shape index: {}]   ;;  %s9198_s5 = inlined_call_operand.vmem [shape: f32[1,128], index: 5, kind: input, shape index: {}]   ;;  %s9199_s6 = inlined_call_operand.vmem [shape: f32[1,128], index: 6, kind: input, shape index: {}]   ;;  %s9200_s7 = inlined_call_operand.vmem [shape: bf16[2,128,128], index: 7, kind: output, shape index: {}]  }
   0x1 LB: > { %s5092_s25 = sadd.s32 4294967295, %s6676_s24   ;;  %p5096_p0 = scmp.ge.s32.totalorder %s6676_s24, 1  ;;  %s6676_s24 = sphi %s6722_s24, %s17_s24  }
   0x2   : > { %p237_p1 = scmp.lt.s32.totalorder %s6676_s24, 3 }
   0x4   : > { %p238_p2 = pnand %p5096_p0, %p237_p1 }
   0x6   : > { %241 = sbr.rel (%p238_p2) target bundleno = 4104 (0x1008), region = 48 }
   0xb   : > { %v6078_v0 = vld [vmem:[%s9194_s1 + $0xac] ss:$12 sps:$4 sm:$0xff]   ;;  %p269_p3 = scmp.lt.s32.totalorder %s5092_s25, 1  ;;  %v6080_v1 = vld [vmem:[%s9194_s1 + $0xa8] ss:$12 sps:$4 sm:$0xff]   ;;  %v9202_v2 = vmov 0  }
   0xc   : > { %536 = vmatprep.mubr.bf16.mxu0 %v9202_v2  ;;  %504 = vmatprep.subr.bf16.mxu0 %v6078_v0  ;;  %v6081_v3 = vld [vmem:[%s9194_s1 + $0x94] ss:$12 sps:$4 sm:$0xff]   ;;  %v6083_v4 = vld [vmem:[%s9194_s1 + $0x90] ss:$12 sps:$4 sm:$0xff]   ;;  %v6086_v6 = vld [vmem:[%s9194_s1 + $0x78] ss:$12 sps:$4 sm:$0xff]  }
   0xd   : > { %s9335_s25 = smov (!%p269_p3, %s5092_s25), 1  ;;  %505 = vmatpush1.bf16.msra.mxu0 %v6080_v1  ;;  %v6084_v5 = vld [vmem:[%s9194_s1 + $0x7c] ss:$12 sps:$4 sm:$0xff]   ;;  %v6087_v7 = vld [vmem:[%s9194_s1 + $0x64] ss:$12 sps:$4 sm:$0xff]   ;;  %vm789_vm0 = vcmask 261120  }
   0xe   : > { %506 = vmatprep.subr.bf16.mxu0 %v6081_v3  ;;  %s5289_s13 = sshll.u32 %s9335_s25, 6  ;;  %v6089_v9 = vld [vmem:[%s9194_s1 + $0x60] ss:$12 sps:$4 sm:$0xff]   ;;  %v6092_v11 = vld [vmem:[%s9194_s1 + $0x48] ss:$12 sps:$4 sm:$0xff]   ;;  %s6679_s16 = smov 96  }
   0xf   : > { %s6757_s18 = scalar_lea.vmem %s9193_s0, %s5289_s13  ;;  %v6090_v10 = vld [vmem:[%s9194_s1 + $0x4c] ss:$12 sps:$4 sm:$0xff]   ;;  %v6110_v12 = vld [vmem:[%s9194_s1 + $0xb0] ss:$12 sps:$4 sm:$0xff]   ;;  %v6093_v14 = vld [vmem:[%s9194_s1 + $0x34] ss:$12 sps:$4 sm:$0xff]   ;;  %s9152_s9 = scalar_lea.vmem %s9200_s7, %s5289_s13 }
  0x10   : > { %v280_v8 = vld [vmem:[%s6757_s18] sm:$0xff]   ;;  %5666 = vmatprep.subr.bf16.mxu1 %v6110_v12  ;;  %v6095_v16 = vld [vmem:[%s9194_s1 + $0x30] ss:$12 sps:$4 sm:$0xff]   ;;  %v6113_v19 = vld [vmem:[%s9194_s1 + $0x68] ss:$12 sps:$4 sm:$0xff]   ;;  %s6680_s22 = smov 64  }
  0x11   : > { %507 = vmatpush1.bf16.msra.mxu0 %v6083_v4  ;;  %5682 = vmatprep.mubr.bf16.mxu1 %v280_v8  ;;  %v6111_v13 = vld [vmem:[%s9194_s1 + $0x98] ss:$12 sps:$4 sm:$0xff]   ;;  %v6112_v15 = vld [vmem:[%s9194_s1 + $0x80] ss:$12 sps:$4 sm:$0xff]   ;;  %v6096_v17 = vld [vmem:[%s9194_s1 + $0x1c] ss:$12 sps:$4 sm:$0xff]  }
  0x12   : > { %508 = vmatprep.subr.bf16.mxu0 %v6084_v5  ;;  %5667 = vmatpush3.bf16.msra.mxu1 %v6110_v12  ;;  %v6098_v18 = vld [vmem:[%s9194_s1 + $0x18] ss:$12 sps:$4 sm:$0xff]   ;;  %v6114_v21 = vld [vmem:[%s9194_s1 + $0x50] ss:$12 sps:$4 sm:$0xff]   ;;  %v6101_v22 = vld [vmem:[%s9194_s1] ss:$12 sps:$4 sm:$0xff]  }
  0x13   : > { %5668 = vmatprep.subr.bf16.mxu1 %v6111_v13  ;;  %v6099_v20 = vld [vmem:[%s9194_s1 + $0x4] ss:$12 sps:$4 sm:$0xff]   ;;  %v6116_v24 = vld [vmem:[%s9194_s1 + $0x20] ss:$12 sps:$4 sm:$0xff]   ;;  %v6117_v26 = vld [vmem:[%s9194_s1 + $0x8] ss:$12 sps:$4 sm:$0xff]  }
  0x14   : > { %v6115_v23 = vld [vmem:[%s9194_s1 + $0x38] ss:$12 sps:$4 sm:$0xff]   ;;  %v282_v25 = vld [vmem:[%s6757_s18 + $0x8] sm:$0xff]   ;;  %v284_v27 = vld [vmem:[%s6757_s18 + $0x10] sm:$0xff]   ;;  %s6681_s23 = smov 32  }
  0x15   : > { %509 = vmatpush1.bf16.msra.mxu0 %v6086_v6  ;;  %v286_v28 = vld [vmem:[%s6757_s18 + $0x18] sm:$0xff]   ;;  %v288_v29 = vld [vmem:[%s6757_s18 + $0x20] sm:$0xff]   ;;  %v290_v30 = vld [vmem:[%s6757_s18 + $0x28] sm:$0xff]  }
  0x16   : > { %510 = vmatprep.subr.bf16.mxu0 %v6087_v7  ;;  %5669 = vmatpush3.bf16.msra.mxu1 %v6111_v13  ;;  %v292_v31 = vld [vmem:[%s6757_s18 + $0x30] sm:$0xff]   ;;  %v294_v32 = vld [vmem:[%s6757_s18 + $0x38] sm:$0xff]  }
  0x17   : > { %5670 = vmatprep.subr.bf16.mxu1 %v6112_v15 }
  0x19   : > { %511 = vmatpush1.bf16.msra.mxu0 %v6089_v9 }
  0x1a   : > { %512 = vmatprep.subr.bf16.mxu0 %v6090_v10  ;;  %5671 = vmatpush3.bf16.msra.mxu1 %v6112_v15 }
  0x1b   : > { %5672 = vmatprep.subr.bf16.mxu1 %v6113_v19 }
  0x1d   : > { %513 = vmatpush1.bf16.msra.mxu0 %v6092_v11 }
  0x1e   : > { %514 = vmatprep.subr.bf16.mxu0 %v6093_v14  ;;  %5673 = vmatpush3.bf16.msra.mxu1 %v6113_v19 }
  0x1f   : > { %5674 = vmatprep.subr.bf16.mxu1 %v6114_v21 }
  0x21   : > { %515 = vmatpush1.bf16.msra.mxu0 %v6095_v16 }
  0x22   : > { %516 = vmatprep.subr.bf16.mxu0 %v6096_v17  ;;  %5675 = vmatpush3.bf16.msra.mxu1 %v6114_v21 }
  0x23   : > { %5676 = vmatprep.subr.bf16.mxu1 %v6115_v23 }
  0x25   : > { %517 = vmatpush1.bf16.msra.mxu0 %v6098_v18 }
  0x26   : > { %518 = vmatprep.subr.bf16.mxu0 %v6099_v20  ;;  %5677 = vmatpush3.bf16.msra.mxu1 %v6115_v23 }
  0x27   : > { %5678 = vmatprep.subr.bf16.mxu1 %v6116_v24 }
  0x29   : > { %519 = vmatpush1.bf16.msra.mxu0 %v6101_v22 }
  0x2a   : > { %5679 = vmatpush3.bf16.msra.mxu1 %v6116_v24 }
  0x2b   : > { %5680 = vmatprep.subr.bf16.mxu1 %v6117_v26 }
  0x2c   : > { %537 = vmatmul.mubr.bf16.vlgmr.msra.gmra.mxu0 %v280_v8 }
  0x2d   : > { %546 = vmatprep.mubr.bf16.mxu0 %v9202_v2 }
  0x2e   : > { %5681 = vmatpush3.bf16.msra.mxu1 %v6117_v26 }
  0x31   : > { %5683 = vmatmul.mubr.bf16.vlgmr.msra.gmra.mxu1 %v282_v25 }
  0x32   : > { %5686 = vmatprep.mubr.bf16.mxu1 %v284_v27 }
  0x34   : > { %547 = vmatmul.mubr.bf16.gmra.mxu0 %v282_v25 }
  0x35   : > { %556 = vmatprep.mubr.bf16.mxu0 %v9202_v2 }
  0x39   : > { %5687 = vmatmul.mubr.bf16.gmra.mxu1 %v286_v28 }
  0x3a   : > { %5690 = vmatprep.mubr.bf16.mxu1 %v288_v29 }
  0x3c   : > { %557 = vmatmul.mubr.bf16.gmra.mxu0 %v284_v27 }
  0x3d   : > { %566 = vmatprep.mubr.bf16.mxu0 %v9202_v2 }
  0x41   : > { %5691 = vmatmul.mubr.bf16.gmra.mxu1 %v290_v30 }
  0x42   : > { %5694 = vmatprep.mubr.bf16.mxu1 %v292_v31 }
  0x44   : > { %567 = vmatmul.mubr.bf16.gmra.mxu0 %v286_v28 }
  0x45   : > { %576 = vmatprep.mubr.bf16.mxu0 %v9202_v2 }
  0x49   : > { %5695 = vmatmul.mubr.bf16.gmra.mxu1 %v294_v32 }
  0x4c   : > { %577 = vmatmul.mubr.bf16.gmra.mxu0 %v288_v29 }
  0x4d   : > { %586 = vmatprep.mubr.bf16.mxu0 %v9202_v2 }
  0x54   : > { %587 = vmatmul.mubr.bf16.gmra.mxu0 %v290_v30 }
  0x55   : > { %596 = vmatprep.mubr.bf16.mxu0 %v9202_v2 }
  0x5c   : > { %597 = vmatmul.mubr.bf16.gmra.mxu0 %v292_v31 }
  0x5d   : > { %606 = vmatprep.mubr.bf16.mxu0 %v9202_v2 }
  0x64   : > { %607 = vmatmul.mubr.bf16.gmra.mxu0 %v294_v32 }
  0xec   : > { %v538_v33 = vpop.f32.mrf.mxu0 }
  0xee   : > { %v6828_v34 = vpop.f32.mrf.mxu0 }
  0xf0   : > { %v542_v35 = vpop.f32.mrf.mxu0 }
  0xf1   : > { %v6830_v36 = vpack.c.bf16 %v542_v35, %v538_v33  ;;  %v6842_v43 = vpop.f32.mrf.mxu1 }
  0xf2   : > { %v6832_v37 = vpop.f32.mrf.mxu0 }
  0xf3   : > { %5714 = vmatprep.mubr.msk.bf16.mxu0 %vm789_vm0, %v6830_v36  ;;  %v6844_v45 = vpop.f32.mrf.mxu1 }
  0xf4   : > { %v548_v38 = vpop.f32.mrf.mxu0 }
  0xf5   : > { %v5685_v47 = vpop.f32.mrf.mxu1 }
  0xf6   : > { %v6836_v39 = vpop.f32.mrf.mxu0  ;;  %v6897_v35 = vpack.c.bf16 %v5685_v47, %v6842_v43 }
  0xf7   : > { %v6848_v49 = vpop.f32.mrf.mxu1 }
  0xf8   : > { %v552_v40 = vpop.f32.mrf.mxu0  ;;  %9250 = vst [vmem:[#allocation8_spill] sm:$0xff] %v6897_v35 }
  0xf9   : > { %v6838_v41 = vpack.c.bf16 %v552_v40, %v548_v38  ;;  %v5688_v52 = vpop.f32.mrf.mxu1  ;;  %v6911_v40 = vpack.c.bf16 %v6848_v49, %v6844_v45 }
  0xfa   : > { %v6840_v42 = vpop.f32.mrf.mxu0 }
  0xfb   : > { %v667_v54 = vpop.f32.mrf.mxu1  ;;  %9251 = vst [vmem:[#allocation9_spill] sm:$0xff] %v6911_v40 }
  0xfc   : > { %v558_v44 = vpop.f32.mrf.mxu0 }
  0xfd   : > { %v5689_v56 = vpop.f32.mrf.mxu1 }
  0xfe   : > { %v6846_v46 = vpop.f32.mrf.mxu0  ;;  %v6882_v26 = vpack.c.bf16 %v5689_v56, %v5688_v52 }
  0xff   : > { %v670_v58 = vpop.f32.mrf.mxu1 }
 0x100   : > { %v562_v48 = vpop.f32.mrf.mxu0  ;;  %9247 = vst [vmem:[#allocation5_spill] sm:$0xff] %v6882_v26  ;;  %v6888_v29 = vpack.c.bf16 %v670_v58, %v667_v54  ;;  %v6947_v54 = vpack.c.bf16 %v6840_v42, %v6836_v39 }
 0x101   : > { %v6850_v50 = vpack.c.bf16 %v562_v48, %v558_v44  ;;  %v5692_v61 = vpop.f32.mrf.mxu1 }
 0x102   : > { %v6852_v51 = vpop.f32.mrf.mxu0  ;;  %9248 = vst [vmem:[#allocation6_spill] sm:$0xff] %v6888_v29 }
 0x103   : > { %v683_v63 = vpop.f32.mrf.mxu1  ;;  %v6939_v52 = vpack.c.bf16 %v6852_v51, %v6846_v46  ;;  %v6955_v46 = vpack.c.bf16 %v6832_v37, %v6828_v34  ;;  %v818_v51 = vsel %vm789_vm0, %v6947_v54, 0  ;;  %v738_v37 = vlaneseq }
 0x104   : > { %v568_v53 = vpop.f32.mrf.mxu0 }
 0x105   : > { %v5693_v1 = vpop.f32.mrf.mxu1  ;;  %9255 = vst [vmem:[#allocation13_spill] sm:$0xff] %v6939_v52  ;;  %v815_v39 = vsel %vm789_vm0, %v6955_v46, 0  ;;  %v6981_v42 = vshrl.u32 %v738_v37, 7  ;;  %v6983_v56 = vand.u32 127, %v738_v37 }
 0x106   : > { %v6854_v55 = vpop.f32.mrf.mxu0  ;;  %v6870_v18 = vpack.c.bf16 %v5693_v1, %v5692_v61 }
 0x107   : > { %v686_v4 = vpop.f32.mrf.mxu1  ;;  %v6991_v58 = vadd.s32 104, %v6981_v42  ;;  %vm757_vm4 = vcmp.le.s32.totalorder %v6983_v56, %v6981_v42  ;;  %v7006_v1 = vadd.s32 8, %v6981_v42 }
 0x108   : > { %v572_v57 = vpop.f32.mrf.mxu0  ;;  %9244 = vst [vmem:[#allocation2_spill] sm:$0xff] %v6870_v18  ;;  %v6874_v21 = vpack.c.bf16 %v686_v4, %v683_v63 }
 0x109   : > { %v6856_v59 = vpack.c.bf16 %v572_v57, %v568_v53  ;;  %v5696_v7 = vpop.f32.mrf.mxu1  ;;  %v6986_v57 = vadd.s32 120, %v6981_v42  ;;  %9256 = vst [vmem:[#allocation14_spill] sm:$0xff] %v6991_v58  ;;  %vm9230_vm2 = vcmp.le.s32.totalorder %v6983_v56, %v6991_v58  ;;  %vm758_vm6 = vcmp.le.s32.totalorder %v6983_v56, %v7006_v1 }
 0x10a   : > { %v6858_v60 = vpop.f32.mrf.mxu0  ;;  %9245 = vst [vmem:[#allocation3_spill] sm:$0xff] %v6874_v21 }
 0x10b   : > { %v699_v9 = vpop.f32.mrf.mxu1  ;;  %v6931_v48 = vpack.c.bf16 %v6858_v60, %v6854_v55  ;;  %v821_v55 = vsel %vm789_vm0, %v6939_v52, 0  ;;  %vm772_vm1 = vcmp.le.s32.totalorder %v6983_v56, %v6986_v57  ;;  %v6996_v60 = vadd.s32 16, %v6981_v42 }
 0x10c   : > { %v578_v62 = vpop.f32.mrf.mxu0 }
 0x10d   : > { %v5697_v11 = vpop.f32.mrf.mxu1  ;;  %9254 = vst [vmem:[#allocation12_spill] sm:$0xff] %v6931_v48  ;;  %v824_v53 = vsel %vm789_vm0, %v6931_v48, 0  ;;  %vm759_vm3 = vcmp.le.s32.totalorder %v6983_v56, %v6996_v60 }
 0x10e   : > { %v580_v0 = vpop.f32.mrf.mxu0  ;;  %v6862_v12 = vpack.c.bf16 %v5697_v11, %v5696_v7 }
 0x10f   : > { %v702_v14 = vpop.f32.mrf.mxu1 }
 0x110   : > { %v582_v3 = vpop.f32.mrf.mxu0  ;;  %5730 = vmatprep.subr.bf16.mxu1 %v6862_v12  ;;  %v6867_v16 = vpack.c.bf16 %v702_v14, %v699_v9 }
 0x111   : > { %v6860_v5 = vpack.c.bf16 %v582_v3, %v578_v62  ;;  %5731 = vmatpush3.bf16.msra.mxu1 %v6862_v12  ;;  %v7001_v62 = vadd.s32 24, %v6981_v42 }
 0x112   : > { %v584_v6 = vpop.f32.mrf.mxu0  ;;  %5732 = vmatprep.subr.bf16.mxu1 %v6867_v16 }
 0x113   : > { %v6923_v47 = vpack.c.bf16 %v584_v6, %v580_v0  ;;  %vm760_vm5 = vcmp.le.s32.totalorder %v6983_v56, %v7001_v62 }
 0x114   : > { %v588_v8 = vpop.f32.mrf.mxu0 }
 0x115   : > { %5733 = vmatpush3.bf16.msra.mxu1 %v6867_v16  ;;  %9253 = vst [vmem:[#allocation11_spill] sm:$0xff] %v6923_v47  ;;  %v827_v49 = vsel %vm789_vm0, %v6923_v47, 0 }
 0x116   : > { %v590_v10 = vpop.f32.mrf.mxu0  ;;  %5734 = vmatprep.subr.bf16.mxu1 %v6870_v18 }
 0x118   : > { %v592_v13 = vpop.f32.mrf.mxu0 }
 0x119   : > { %v6864_v15 = vpack.c.bf16 %v592_v13, %v588_v8  ;;  %5735 = vmatpush3.bf16.msra.mxu1 %v6870_v18 }
 0x11a   : > { %v594_v17 = vpop.f32.mrf.mxu0  ;;  %5736 = vmatprep.subr.bf16.mxu1 %v6874_v21 }
 0x11b   : > { %v6916_v43 = vpack.c.bf16 %v594_v17, %v590_v10  ;;  %v7025_v10 = vadd.s32 48, %v6981_v42  ;;  %v7034_v17 = vadd.s32 56, %v6981_v42 }
 0x11c   : > { %v598_v19 = vpop.f32.mrf.mxu0 }
 0x11d   : > { %5737 = vmatpush3.bf16.msra.mxu1 %v6874_v21  ;;  %9252 = vst [vmem:[#allocation10_spill] sm:$0xff] %v6916_v43  ;;  %v830_v45 = vsel %vm789_vm0, %v6916_v43, 0  ;;  %vm763_vm7 = vcmp.le.s32.totalorder %v6983_v56, %v7025_v10  ;;  %vm764_vm8 = vcmp.le.s32.totalorder %v6983_v56, %v7034_v17 }
 0x11e   : > { %v600_v20 = vpop.f32.mrf.mxu0  ;;  %5738 = vmatprep.subr.bf16.mxu1 %v6882_v26 }
 0x120   : > { %v602_v22 = vpop.f32.mrf.mxu0 }
 0x121   : > { %v6877_v23 = vpack.c.bf16 %v602_v22, %v598_v19  ;;  %5739 = vmatpush3.bf16.msra.mxu1 %v6882_v26 }
 0x122   : > { %v604_v24 = vpop.f32.mrf.mxu0  ;;  %5740 = vmatprep.subr.bf16.mxu1 %v6888_v29 }
 0x123   : > { %v6880_v25 = vpack.c.bf16 %v604_v24, %v600_v20  ;;  %v7045_v24 = vadd.s32 32, %v6981_v42 }
 0x124   : > { %v608_v27 = vpop.f32.mrf.mxu0 }
 0x125   : > { %9246 = vst [vmem:[#allocation4_spill] sm:$0xff] %v6880_v25  ;;  %1268 = vrot.lane.b32.xlu1 %v6880_v25, %s6679_s16  ;;  %5741 = vmatpush3.bf16.msra.mxu1 %v6888_v29  ;;  %v833_v44 = vsel %vm789_vm0, %v6880_v25, 0  ;;  %vm761_vm9 = vcmp.le.s32.totalorder %v6983_v56, %v7045_v24 }
 0x126   : > { %v610_v28 = vpop.f32.mrf.mxu0  ;;  %5742 = vmatprep.subr.bf16.mxu1 %v6897_v35 }
 0x128   : > { %v612_v30 = vpop.f32.mrf.mxu0 }
 0x129   : > { %v6891_v31 = vpack.c.bf16 %v612_v30, %v608_v27  ;;  %5743 = vmatpush3.bf16.msra.mxu1 %v6897_v35 }
 0x12a   : > { %v614_v32 = vpop.f32.mrf.mxu0  ;;  %5744 = vmatprep.subr.bf16.mxu1 %v6911_v40 }
 0x12b   : > { %v6894_v33 = vpack.c.bf16 %v614_v32, %v610_v28  ;;  %v7050_v28 = vadd.s32 40, %v6981_v42 }
 0x12d   : > { %9249 = vst [vmem:[#allocation7_spill] sm:$0xff] %v6894_v33  ;;  %1270 = vrot.lane.b32.xlu0 %v6894_v33, %s6679_s16  ;;  %6034 = vmatprep.subr.msk.bf16.mxu0 %vm789_vm0, %v6894_v33  ;;  %v836_v38 = vsel %vm789_vm0, %v6894_v33, 0  ;;  %vm762_vm10 = vcmp.le.s32.totalorder %v6983_v56, %v7050_v28 }
 0x12e   : > { %5699 = vmatpush3.bf16.xpose.msra.mxu0 %v836_v38  ;;  %5745 = vmatpush3.bf16.msra.mxu1 %v6911_v40 }
 0x12f   : > { %6035 = vmatprep.subr.msk.bf16.mxu0 %vm789_vm0, %v6880_v25 }
 0x136   : > { %5701 = vmatpush3.bf16.xpose.msra.mxu0 %v833_v44 }
 0x137   : > { %6036 = vmatprep.subr.msk.bf16.mxu0 %vm789_vm0, %v6916_v43 }
 0x13e   : > { %5703 = vmatpush3.bf16.xpose.msra.mxu0 %v830_v45  ;;  %v7061_v45 = vadd.s32 80, %v6981_v42 }
 0x13f   : > { %6037 = vmatprep.subr.msk.bf16.mxu0 %vm789_vm0, %v6923_v47 }
 0x140   : > { %vm767_vm11 = vcmp.le.s32.totalorder %v6983_v56, %v7061_v45 }
 0x146   : > { %5705 = vmatpush3.bf16.xpose.msra.mxu0 %v827_v49 }
 0x147   : > { %6038 = vmatprep.subr.msk.bf16.mxu0 %vm789_vm0, %v6931_v48 }
 0x14e   : > { %5707 = vmatpush3.bf16.xpose.msra.mxu0 %v824_v53 }
 0x14f   : > { %6039 = vmatprep.subr.msk.bf16.mxu0 %vm789_vm0, %v6939_v52 }
 0x156   : > { %5709 = vmatpush3.bf16.xpose.msra.mxu0 %v821_v55 }
 0x157   : > { %6040 = vmatprep.subr.msk.bf16.mxu0 %vm789_vm0, %v6947_v54 }
 0x15e   : > { %5711 = vmatpush3.bf16.xpose.msra.mxu0 %v818_v51  ;;  %v7072_v51 = vadd.s32 88, %v6981_v42 }
 0x15f   : > { %6041 = vmatprep.subr.msk.bf16.mxu0 %vm789_vm0, %v6955_v46 }
 0x160   : > { %vm768_vm12 = vcmp.le.s32.totalorder %v6983_v56, %v7072_v51 }
 0x166   : > { %5713 = vmatpush3.bf16.xpose.msra.mxu0 %v815_v39 }
 0x16d   : > { %5715 = vmatmul.mubr.msk.bf16.vlgmr.msra.gmra.mxu0 %vm789_vm0, %v6838_v41 }
 0x16e   : > { %5718 = vmatprep.mubr.msk.bf16.mxu0 %vm789_vm0, %v6850_v50 }
 0x175   : > { %5719 = vmatmul.mubr.msk.bf16.gmra.mxu0 %vm789_vm0, %v6856_v59 }
 0x176   : > { %5722 = vmatprep.mubr.msk.bf16.mxu0 %vm789_vm0, %v6860_v5 }
 0x17d   : > { %5723 = vmatmul.mubr.msk.bf16.gmra.mxu0 %vm789_vm0, %v6864_v15 }
 0x17e   : > { %5726 = vmatprep.mubr.msk.bf16.mxu0 %vm789_vm0, %v6877_v23 }
 0x185   : > { %5727 = vmatmul.mubr.msk.bf16.gmra.mxu0 %vm789_vm0, %v6891_v31 }
 0x19f   : > { %v6977_v34 = vpop.permute.xlu0 %1270 }
 0x1a0   : > { %6042 = vmatprep.subr.msk.bf16.mxu1 %vm789_vm0, %v6977_v34 }
 0x22d   : > { %v5716_v61 = vpop.f32.mrf.mxu0 }
 0x22e   : > { %v937_v63 = vmul.f32 0.17677669, %v5716_v61 }
 0x22f   : > { %v872_v0 = vpop.f32.mrf.mxu0 }
 0x230   : > { %v935_v3 = vmul.f32 0.17677669, %v872_v0  ;;  %v7011_v4 = vsel %vm759_vm3, %v937_v63, -1e+30  ;;  %v7083_v63 = vadd.s32 64, %v6981_v42 }
 0x231   : > { %971 = vmax.xlane.f32.xlu1 %v7011_v4  ;;  %v5717_v6 = vpop.f32.mrf.mxu0 }
 0x232   : > { %v938_v7 = vmul.f32 0.17677669, %v5717_v6  ;;  %v7019_v8 = vsel %vm757_vm4, %v935_v3, -1e+30  ;;  %v7094_v6 = vadd.s32 72, %v6981_v42  ;;  %vm9201_vm13 = vcmp.le.s32.totalorder %v6983_v56, %v7083_v63 }
 0x233   : > { %967 = vmax.xlane.f32.xlu0 %v7019_v8  ;;  %v875_v9 = vpop.f32.mrf.mxu0 }
 0x234   : > { %v936_v11 = vmul.f32 0.17677669, %v875_v9  ;;  %v7030_v13 = vsel %vm760_vm5, %v938_v7, -1e+30  ;;  %vm766_vm14 = vcmp.le.s32.totalorder %v6983_v56, %v7094_v6 }
 0x235   : > { %973 = vmax.xlane.f32.xlu1 %v7030_v13  ;;  %v5720_v14 = vpop.f32.mrf.mxu0 }
 0x236   : > { %v941_v19 = vmul.f32 0.17677669, %v5720_v14  ;;  %v7039_v20 = vsel %vm758_vm6, %v936_v11, -1e+30 }
 0x237   : > { %969 = vmax.xlane.f32.xlu0 %v7039_v20  ;;  %v888_v22 = vpop.f32.mrf.mxu0 }
 0x238   : > { %v939_v30 = vmul.f32 0.17677669, %v888_v22  ;;  %v7055_v38 = vsel %vm763_vm7, %v941_v19, -1e+30  ;;  %v7105_v19 = vadd.s32 112, %v6981_v42 }
 0x239   : > { %v5721_v27 = vpop.f32.mrf.mxu0 }
 0x23a   : > { %v942_v32 = vmul.f32 0.17677669, %v5721_v27  ;;  %v7077_v37 = vsel %vm761_vm9, %v939_v30, -1e+30  ;;  %9257 = vst [vmem:[#allocation15_spill] sm:$0xff] %v7105_v19  ;;  %vm771_vm15 = vcmp.le.s32.totalorder %v6983_v56, %v7105_v19 }
 0x23b   : > { %979 = vmax.xlane.f32.xlu0 %v7055_v38  ;;  %v891_v44 = vpop.f32.mrf.mxu0 }
 0x23c   : > { %v940_v49 = vmul.f32 0.17677669, %v891_v44  ;;  %v7066_v53 = vsel %vm764_vm8, %v942_v32, -1e+30 }
 0x23d   : > { %981 = vmax.xlane.f32.xlu1 %v7066_v53  ;;  %v5724_v55 = vpop.f32.mrf.mxu0 }
 0x23e   : > { %v945_v39 = vmul.f32 0.17677669, %v5724_v55  ;;  %v7088_v0 = vsel %vm762_vm10, %v940_v49, -1e+30  ;;  %v7124_v55 = vadd.s32 96, %v6981_v42 }
 0x23f   : > { %975 = vmax.xlane.f32.xlu0 %v7077_v37  ;;  %v904_v61 = vpop.f32.mrf.mxu0 }
 0x240   : > { %v943_v7 = vmul.f32 0.17677669, %v904_v61  ;;  %v7099_v11 = vsel %vm767_vm11, %v945_v39, -1e+30  ;;  %9258 = vst [vmem:[#allocation16_spill] sm:$0xff] %v7124_v55 }
 0x241   : > { %977 = vmax.xlane.f32.xlu1 %v7088_v0  ;;  %v5725_v3 = vpop.f32.mrf.mxu0 }
 0x242   : > { %v946_v9 = vmul.f32 0.17677669, %v5725_v3  ;;  %v7118_v44 = vsel %vm9201_vm13, %v943_v7, -1e+30  ;;  %vm769_vm13 = vcmp.le.s32.totalorder %v6983_v56, %v7124_v55 }
 0x243   : > { %987 = vmax.xlane.f32.xlu0 %v7099_v11  ;;  %v907_v14 = vpop.f32.mrf.mxu0 }
 0x244   : > { %v944_v22 = vmul.f32 0.17677669, %v907_v14  ;;  %v7110_v27 = vsel %vm768_vm12, %v946_v9, -1e+30 }
 0x245   : > { %989 = vmax.xlane.f32.xlu1 %v7110_v27  ;;  %v5728_v30 = vpop.f32.mrf.mxu0 }
 0x246   : > { %v949_v32 = vmul.f32 0.17677669, %v5728_v30  ;;  %v7129_v39 = vsel %vm766_vm14, %v944_v22, -1e+30 }
 0x247   : > { %983 = vmax.xlane.f32.xlu0 %v7118_v44  ;;  %v920_v49 = vpop.f32.mrf.mxu0 }
 0x248   : > { %v947_v61 = vmul.f32 0.17677669, %v920_v49  ;;  %v7135_v3 = vsel %vm771_vm15, %v949_v32, -1e+30 }
 0x249   : > { %985 = vmax.xlane.f32.xlu1 %v7129_v39  ;;  %v5729_v9 = vpop.f32.mrf.mxu0 }
 0x24a   : > { %v7143_v7 = vsel %vm769_vm13, %v947_v61, -1e+30  ;;  %v950_v14 = vmul.f32 0.17677669, %v5729_v9  ;;  %v7162_v61 = vpop.permute.xlu1 %1268 }
 0x24b   : > { %995 = vmax.xlane.f32.xlu0 %v7135_v3  ;;  %v923_v22 = vpop.f32.mrf.mxu0 }
 0x24c   : > { %v948_v30 = vmul.f32 0.17677669, %v923_v22  ;;  %v7153_v32 = vsel %vm772_vm1, %v950_v14, -1e+30 }
 0x24e   : > { %v7159_v49 = vsel %vm9230_vm2, %v948_v30, -1e+30 }
 0x24f   : > { %991 = vmax.xlane.f32.xlu0 %v7143_v7 }
 0x25a   : > { %1264 = vrot.lane.b32.xlu1 %v6923_v47, %s6679_s16 }
 0x265   : > { %1266 = vrot.lane.b32.xlu0 %v6916_v43, %s6679_s16 }
 0x27e   : > { %997 = vmax.xlane.f32.xlu1 %v7153_v32 }
 0x282   : > { %993 = vmax.xlane.f32.xlu1 %v7159_v49 }
 0x2ba   : > { %v972_v2 = vpop.xlane.xlu1 %971 }
 0x2bb   : > { %v1001_v9 = vsub.f32 %v7011_v4, %v972_v2 }
 0x2bc   : > { %v968_v22 = vpop.xlane.xlu0 %967 }
 0x2bd   : > { %v1019_v33 = vmul.f32 1.442695, %v1001_v9  ;;  %v999_v47 = vsub.f32 %v7019_v8, %v968_v22 }
 0x2be   : > { %v974_v14 = vpop.xlane.xlu1 %973 }
 0x2bf   : > { %6214 = vpow2.f32 %v1019_v33  ;;  %v1015_v43 = vmul.f32 1.442695, %v999_v47  ;;  %v1002_v25 = vsub.f32 %v7030_v13, %v974_v14 }
 0x2c0   : > { %v970_v40 = vpop.xlane.xlu0 %969 }
 0x2c1   : > { %v1021_v35 = vmul.f32 1.442695, %v1002_v25  ;;  %v1000_v30 = vsub.f32 %v7039_v20, %v970_v40  ;;  %6216 = vpow2.f32 %v1015_v43 }
 0x2c3   : > { %6218 = vpow2.f32 %v1021_v35  ;;  %v1017_v26 = vmul.f32 1.442695, %v1000_v30 }
 0x2c4   : > { %v980_v25 = vpop.xlane.xlu0 %979 }
 0x2c5   : > { %6220 = vpow2.f32 %v1017_v26  ;;  %v1005_v47 = vsub.f32 %v7055_v38, %v980_v25 }
 0x2c6   : > { %v982_v40 = vpop.xlane.xlu1 %981 }
 0x2c7   : > { %v1027_v9 = vmul.f32 1.442695, %v1005_v47  ;;  %v1006_v14 = vsub.f32 %v7066_v53, %v982_v40 }
 0x2c8   : > { %v976_v35 = vpop.xlane.xlu0 %975 }
 0x2c9   : > { %v1003_v13 = vsub.f32 %v7077_v37, %v976_v35  ;;  %6222 = vpow2.f32 %v1027_v9  ;;  %v1029_v19 = vmul.f32 1.442695, %v1006_v14 }
 0x2ca   : > { %v978_v8 = vpop.xlane.xlu1 %977 }
 0x2cb   : > { %v1004_v22 = vsub.f32 %v7088_v0, %v978_v8  ;;  %v1023_v30 = vmul.f32 1.442695, %v1003_v13 }
 0x2cc   : > { %v7168_v21 = vpop.eup %6214  ;;  %v988_v26 = vpop.xlane.xlu0 %987 }
 0x2cd   : > { %1051 = vadd.xlane.f32.xlu0 %v7168_v21  ;;  %6224 = vpow2.f32 %v1023_v30  ;;  %v1009_v38 = vsub.f32 %v7099_v11, %v988_v26 }
 0x2ce   : > { %v7171_v2 = vpop.eup %6216  ;;  %v990_v18 = vpop.xlane.xlu1 %989 }
 0x2cf   : > { %v1035_v0 = vmul.f32 1.442695, %v1009_v38  ;;  %v1010_v47 = vsub.f32 %v7110_v27, %v990_v18 }
 0x2d0   : > { %v7173_v4 = vpop.eup %6218  ;;  %v984_v43 = vpop.xlane.xlu0 %983 }
 0x2d1   : > { %1047 = vadd.xlane.f32.xlu0 %v7171_v2  ;;  %1053 = vadd.xlane.f32.xlu1 %v7173_v4  ;;  %v1007_v53 = vsub.f32 %v7118_v44, %v984_v43 }
 0x2d2   : > { %v7177_v33 = vpop.eup %6220  ;;  %v986_v35 = vpop.xlane.xlu1 %985 }
 0x2d3   : > { %v1031_v8 = vmul.f32 1.442695, %v1007_v53 }
 0x2d4   : > { %v996_v20 = vpop.xlane.xlu0 %995 }
 0x2d5   : > { %1049 = vadd.xlane.f32.xlu1 %v7177_v33  ;;  %v1013_v55 = vsub.f32 %v7135_v3, %v996_v20 }
 0x2d6   : > { %v7193_v3 = vpop.permute.xlu1 %1264  ;;  %v7195_v13 = vpop.eup %6222 }
 0x2d7   : > { %v1043_v25 = vmul.f32 1.442695, %v1013_v55 }
 0x2da   : > { %v7198_v11 = vpop.eup %6224 }
 0x2e6   : > { %1260 = vrot.lane.b32.xlu1 %v6939_v52, %s6679_s16  ;;  %v1025_v52 = vmul.f32 1.442695, %v1004_v22 }
 0x2e7   : > { %1262 = vrot.lane.b32.xlu0 %v6931_v48, %s6679_s16  ;;  %v992_v48 = vpop.xlane.xlu0 %991 }
 0x2e8   : > { %6226 = vpow2.f32 %v1025_v52  ;;  %v1011_v37 = vsub.f32 %v7143_v7, %v992_v48  ;;  %v1037_v52 = vmul.f32 1.442695, %v1010_v47 }
 0x2e9   : > { %6228 = vpow2.f32 %v1029_v19  ;;  %v1008_v19 = vsub.f32 %v7129_v39, %v986_v35 }
 0x2ea   : > { %6230 = vpow2.f32 %v1043_v25  ;;  %v1039_v40 = vmul.f32 1.442695, %v1011_v37 }
 0x2eb   : > { %6232 = vpow2.f32 %v1035_v0  ;;  %v1033_v26 = vmul.f32 1.442695, %v1008_v19  ;;  %v1267_v25 = vpop.permute.xlu0 %1266 }
 0x2ec   : > { %6234 = vpow2.f32 %v1039_v40 }
 0x2ed   : > { %6236 = vpow2.f32 %v1031_v8 }
 0x2ee   : > { %6238 = vpow2.f32 %v1037_v52 }
 0x2f5   : > { %v7202_v55 = vpop.eup %6226 }
 0x2f6   : > { %v7206_v7 = vpop.eup %6228 }
 0x2f7   : > { %v7209_v20 = vpop.eup %6230 }
 0x2f8   : > { %v7213_v39 = vpop.eup %6232 }
 0x2f9   : > { %v7215_v9 = vpop.eup %6234 }
 0x2fa   : > { %v7219_v22 = vpop.eup %6236 }
 0x306   : > { %1059 = vadd.xlane.f32.xlu0 %v7195_v13 }
 0x307   : > { %v998_v48 = vpop.xlane.xlu1 %997 }
 0x308   : > { %v1014_v44 = vsub.f32 %v7153_v32, %v998_v48 }
 0x30a   : > { %v1045_v18 = vmul.f32 1.442695, %v1014_v44  ;;  %1057 = vadd.xlane.f32.xlu0 %v7202_v55  ;;  %1055 = vadd.xlane.f32.xlu1 %v7198_v11 }
 0x30b   : > { %v994_v27 = vpop.xlane.xlu1 %993 }
 0x30c   : > { %6240 = vpow2.f32 %v1045_v18  ;;  %v1012_v43 = vsub.f32 %v7159_v49, %v994_v27  ;;  %v7222_v49 = vpop.eup %6238 }
 0x30d   : > { %6242 = vpow2.f32 %v1033_v26 }
 0x30e   : > { %1075 = vadd.xlane.f32.xlu0 %v7209_v20  ;;  %1061 = vadd.xlane.f32.xlu1 %v7206_v7  ;;  %v1041_v32 = vmul.f32 1.442695, %v1012_v43  ;;  %v1318_v43 = vsel %vm789_vm0, %v6977_v34, 0 }
 0x310   : > { %6244 = vpow2.f32 %v1041_v32 }
 0x312   : > { %1071 = vadd.xlane.f32.xlu0 %v7215_v9  ;;  %1067 = vadd.xlane.f32.xlu1 %v7213_v39 }
 0x316   : > { %1063 = vadd.xlane.f32.xlu1 %v7219_v22 }
 0x319   : > { %v7224_v14 = vpop.eup %6240 }
 0x31a   : > { %1077 = vadd.xlane.f32.xlu0 %v7224_v14  ;;  %1069 = vadd.xlane.f32.xlu1 %v7222_v49  ;;  %v7228_v30 = vpop.eup %6242 }
 0x31d   : > { %v7231_v38 = vpop.eup %6244 }
 0x31e   : > { %1065 = vadd.xlane.f32.xlu1 %v7228_v30 }
 0x322   : > { %1073 = vadd.xlane.f32.xlu1 %v7231_v38 }
 0x330   : > { %1258 = vrot.lane.b32.xlu0 %v6947_v54, %s6679_s16 }
 0x333   : > { %1256 = vrot.lane.b32.xlu1 %v6955_v46, %s6679_s16 }
 0x334   : > { %1232 = vrot.lane.b32.xlu0 %v6830_v36, %s6679_s16 }
 0x337   : > { %1234 = vrot.lane.b32.xlu1 %v6838_v41, %s6679_s16 }
 0x338   : > { %1236 = vrot.lane.b32.xlu0 %v6850_v50, %s6679_s16 }
 0x33b   : > { %1238 = vrot.lane.b32.xlu1 %v6856_v59, %s6679_s16 }
 0x33c   : > { %1240 = vrot.lane.b32.xlu0 %v6860_v5, %s6679_s16 }
 0x33f   : > { %1242 = vrot.lane.b32.xlu1 %v6864_v15, %s6679_s16 }
 0x340   : > { %1244 = vrot.lane.b32.xlu0 %v6877_v23, %s6679_s16 }
 0x343   : > { %1246 = vrot.lane.b32.xlu1 %v6891_v31, %s6679_s16 }
 0x347   : > { %1621 = vrot.lane.b32.xlu1 %v6867_v16, %s6679_s16 }
 0x356   : > { %v1052_v37 = vpop.xlane.xlu0 %1051 }
 0x35a   : > { %v1048_v35 = vpop.xlane.xlu0 %1047  ;;  %v1054_v0 = vpop.xlane.xlu1 %1053 }
 0x35b   : > { %6246 = vrcp.f32 %v1054_v0 }
 0x35c   : > { %6248 = vrcp.f32 %v1048_v35 }
 0x35d   : > { %6250 = vrcp.f32 %v1052_v37 }
 0x35e   : > { %v1050_v53 = vpop.xlane.xlu1 %1049  ;;  %v1263_v34 = vpop.permute.xlu0 %1262 }
 0x35f   : > { %6252 = vrcp.f32 %v1050_v53 }
 0x368   : > { %v6247_v40 = vpop.eup %6246 }
 0x369   : > { %v6249_v47 = vpop.eup %6248  ;;  %v1098_v48 = vmul.f32 %v6247_v40, %v7173_v4  ;;  %v1315_v4 = vsel %vm789_vm0, %v7162_v61, 0 }
 0x36a   : > { %v6251_v8 = vpop.eup %6250  ;;  %v1095_v19 = vmul.f32 %v6249_v47, %v7171_v2  ;;  %v1312_v2 = vsel %vm789_vm0, %v1267_v25, 0 }
 0x36b   : > { %v1097_v18 = vmul.f32 %v6251_v8, %v7168_v21  ;;  %v1309_v21 = vsel %vm789_vm0, %v7193_v3, 0 }
 0x36c   : > { %v6253_v52 = vpop.eup %6252 }
 0x36d   : > { %v1096_v44 = vmul.f32 %v6253_v52, %v7177_v33  ;;  %v1112_v26 = vpack.c.bf16 %v1098_v48, %v1097_v18  ;;  %v1261_v33 = vpop.permute.xlu1 %1260 }
 0x36f   : > { %v1111_v27 = vpack.c.bf16 %v1096_v44, %v1095_v19 }
 0x371   : > { %5746 = vmatprep.mubr.bf16.mxu1 %v1111_v27 }
 0x372   : > { %5747 = vmatmul.mubr.bf16.vlgmr.msra.gmra.mxu1 %v1112_v26 }
 0x373   : > { %5763 = vmatpush3.bf16.xpose.msra.mxu1 %v1318_v43 }
 0x374   : > { %6043 = vmatprep.subr.msk.bf16.mxu1 %vm789_vm0, %v7162_v61  ;;  %v1306_v61 = vsel %vm789_vm0, %v1263_v34, 0 }
 0x37b   : > { %5765 = vmatpush3.bf16.xpose.msra.mxu1 %v1315_v4 }
 0x37c   : > { %6044 = vmatprep.subr.msk.bf16.mxu1 %vm789_vm0, %v1267_v25 }
 0x383   : > { %5767 = vmatpush3.bf16.xpose.msra.mxu1 %v1312_v2 }
 0x384   : > { %6045 = vmatprep.subr.msk.bf16.mxu1 %vm789_vm0, %v7193_v3  ;;  %v1303_v3 = vsel %vm789_vm0, %v1261_v33, 0 }
 0x38b   : > { %5769 = vmatpush3.bf16.xpose.msra.mxu1 %v1309_v21 }
 0x38c   : > { %6046 = vmatprep.subr.msk.bf16.mxu1 %vm789_vm0, %v1263_v34 }
 0x38f   : > { %v1060_v32 = vpop.xlane.xlu0 %1059 }
 0x393   : > { %5771 = vmatpush3.bf16.xpose.msra.mxu1 %v1306_v61  ;;  %v1058_v37 = vpop.xlane.xlu0 %1057  ;;  %v1056_v35 = vpop.xlane.xlu1 %1055 }
 0x394   : > { %6254 = vrcp.f32 %v1058_v37  ;;  %6047 = vmatprep.subr.msk.bf16.mxu1 %vm789_vm0, %v1261_v33  ;;  %v6118_v37 = vld [vmem:[%s9195_s2 + $0x8] sm:$0xff]  }
 0x395   : > { %6256 = vrcp.f32 %v1056_v35 }
 0x396   : > { %6258 = vrcp.f32 %v1060_v32 }
 0x397   : > { %v1062_v25 = vpop.xlane.xlu1 %1061  ;;  %v1076_v0 = vpop.xlane.xlu0 %1075 }
 0x398   : > { %6260 = vrcp.f32 %v1062_v25 }
 0x39b   : > { %5773 = vmatpush3.bf16.xpose.msra.mxu1 %v1303_v3  ;;  %v1068_v53 = vpop.xlane.xlu1 %1067  ;;  %v1072_v40 = vpop.xlane.xlu0 %1071 }
 0x39f   : > { %v1064_v47 = vpop.xlane.xlu1 %1063 }
 0x3a1   : > { %v6255_v8 = vpop.eup %6254 }
 0x3a2   : > { %v6257_v52 = vpop.eup %6256  ;;  %v1100_v48 = vmul.f32 %v6255_v8, %v7202_v55 }
 0x3a3   : > { %v1078_v19 = vpop.xlane.xlu0 %1077  ;;  %v1070_v44 = vpop.xlane.xlu1 %1069  ;;  %v1099_v18 = vmul.f32 %v6257_v52, %v7198_v11 }
 0x3a4   : > { %v6259_v27 = vpop.eup %6258  ;;  %6262 = vrcp.f32 %v1070_v44 }
 0x3a5   : > { %v1113_v26 = vpack.c.bf16 %v1100_v48, %v1099_v18  ;;  %v6261_v43 = vpop.eup %6260  ;;  %6264 = vrcp.f32 %v1064_v47  ;;  %v1101_v21 = vmul.f32 %v6259_v27, %v7195_v13 }
 0x3a6   : > { %6266 = vrcp.f32 %v1068_v53  ;;  %v1102_v34 = vmul.f32 %v6261_v43, %v7206_v7 }
 0x3a7   : > { %5750 = vmatprep.mubr.bf16.mxu1 %v1113_v26  ;;  %v1259_v4 = vpop.permute.xlu0 %1258  ;;  %v1066_v2 = vpop.xlane.xlu1 %1065 }
 0x3a8   : > { %6268 = vrcp.f32 %v1066_v2  ;;  %6048 = vmatprep.subr.msk.bf16.mxu1 %vm789_vm0, %v1259_v4  ;;  %v1300_v55 = vsel %vm789_vm0, %v1259_v4, 0  ;;  %v1114_v11 = vpack.c.bf16 %v1102_v34, %v1101_v21 }
 0x3a9   : > { %5775 = vmatpush3.bf16.xpose.msra.mxu1 %v1300_v55  ;;  %6270 = vrcp.f32 %v1072_v40 }
 0x3aa   : > { %5751 = vmatmul.mubr.bf16.gmra.mxu1 %v1114_v11 }
 0x3ab   : > { %v1074_v33 = vpop.xlane.xlu1 %1073  ;;  %v1233_v43 = vpop.permute.xlu0 %1232 }
 0x3ac   : > { %6272 = vrcp.f32 %v1074_v33 }
 0x3ad   : > { %6274 = vrcp.f32 %v1078_v19 }
 0x3ae   : > { %6276 = vrcp.f32 %v1076_v0 }
 0x3af   : > { %v1257_v32 = vpop.permute.xlu1 %1256  ;;  %v1237_v4 = vpop.permute.xlu0 %1236 }
 0x3b0   : > { %6049 = vmatprep.subr.msk.bf16.mxu1 %vm789_vm0, %v1257_v32  ;;  %v1297_v13 = vsel %vm789_vm0, %v1257_v32, 0 }
 0x3b1   : > { %5777 = vmatpush3.bf16.xpose.msra.mxu1 %v1297_v13  ;;  %v6263_v7 = vpop.eup %6262 }
 0x3b2   : > { %v6265_v61 = vpop.eup %6264  ;;  %v1106_v3 = vmul.f32 %v6263_v7, %v7222_v49  ;;  %5846 = vmatprep.subr.bf16.mxu1 %v6118_v37 }
 0x3b3   : > { %v6267_v35 = vpop.eup %6266  ;;  %v1103_v53 = vmul.f32 %v6265_v61, %v7219_v22 }
 0x3b4   : > { %v1105_v47 = vmul.f32 %v6267_v35, %v7213_v39  ;;  %v6119_v39 = vld [vmem:[%s9195_s2] sm:$0xff]  }
 0x3b5   : > { %v6269_v25 = vpop.eup %6268 }
 0x3b6   : > { %v1104_v0 = vmul.f32 %v6269_v25, %v7228_v30  ;;  %v6271_v40 = vpop.eup %6270  ;;  %v1116_v48 = vpack.c.bf16 %v1106_v3, %v1105_v47 }
 0x3b7   : > { %v1107_v44 = vmul.f32 %v6271_v40, %v7215_v9  ;;  %v1235_v9 = vpop.permute.xlu1 %1234 }
 0x3b8   : > { %v1115_v8 = vpack.c.bf16 %v1104_v0, %v1103_v53 }
 0x3b9   : > { %v6273_v52 = vpop.eup %6272 }
 0x3ba   : > { %v6275_v19 = vpop.eup %6274  ;;  %5754 = vmatprep.mubr.bf16.mxu1 %v1115_v8  ;;  %v1108_v18 = vmul.f32 %v6273_v52, %v7231_v38 }
 0x3bb   : > { %5755 = vmatmul.mubr.bf16.gmra.mxu1 %v1116_v48  ;;  %v6277_v27 = vpop.eup %6276  ;;  %v1110_v26 = vmul.f32 %v6275_v19, %v7224_v14  ;;  %v1239_v14 = vpop.permute.xlu1 %1238 }
 0x3bc   : > { %v1117_v49 = vpack.c.bf16 %v1108_v18, %v1107_v44  ;;  %v1109_v22 = vmul.f32 %v6277_v27, %v7209_v20  ;;  %v1241_v20 = vpop.permute.xlu0 %1240 }
 0x3be   : > { %5758 = vmatprep.mubr.bf16.mxu1 %v1117_v49  ;;  %v1118_v30 = vpack.c.bf16 %v1110_v26, %v1109_v22 }
 0x3bf   : > { %v1243_v38 = vpop.permute.xlu1 %1242 }
 0x3c0   : > { %v1245_v2 = vpop.permute.xlu0 %1244 }
 0x3c3   : > { %5759 = vmatmul.mubr.bf16.gmra.mxu1 %v1118_v30  ;;  %v1247_v21 = vpop.permute.xlu1 %1246 }
 0x3c4   : > { %5778 = vmatprep.mubr.msk.bf16.mxu1 %vm789_vm0, %v1233_v43 }
 0x3cb   : > { %5779 = vmatmul.mubr.msk.bf16.vlgmr.msra.gmra.mxu1 %vm789_vm0, %v1235_v9 }
 0x3cc   : > { %5782 = vmatprep.mubr.msk.bf16.mxu1 %vm789_vm0, %v1237_v4  ;;  %5847 = vmatpush3.bf16.msra.mxu1 %v6118_v37 }
 0x3cd   : > { %5848 = vmatprep.subr.bf16.mxu1 %v6119_v39 }
 0x3d0   : > { %5849 = vmatpush3.bf16.msra.mxu1 %v6119_v39 }
 0x3d3   : > { %5783 = vmatmul.mubr.msk.bf16.gmra.mxu1 %vm789_vm0, %v1239_v14 }
 0x3d4   : > { %5786 = vmatprep.mubr.msk.bf16.mxu1 %vm789_vm0, %v1241_v20 }
 0x3db   : > { %5787 = vmatmul.mubr.msk.bf16.gmra.mxu1 %vm789_vm0, %v1243_v38 }
 0x3dc   : > { %5790 = vmatprep.mubr.msk.bf16.mxu1 %vm789_vm0, %v1245_v2 }
 0x3e3   : > { %5791 = vmatmul.mubr.msk.bf16.gmra.mxu1 %vm789_vm0, %v1247_v21 }
 0x432   : > { %v5748_v34 = vpop.f32.mrf.mxu1 }
 0x434   : > { %v1153_v55 = vpop.f32.mrf.mxu1 }
 0x436   : > { %v5749_v11 = vpop.f32.mrf.mxu1 }
 0x437   : > { %v1217_v13 = vpack.c.bf16 %v5749_v11, %v5748_v34 }
 0x438   : > { %v1156_v33 = vpop.f32.mrf.mxu1 }
 0x439   : > { %v1216_v32 = vpack.c.bf16 %v1156_v33, %v1153_v55 }
 0x43b   : > { %5850 = vmatprep.mubr.msk.bf16.mxu1 %vm789_vm0, %v1216_v32 }
 0x43c   : > { %5851 = vmatmul.mubr.msk.bf16.vlgmr.msra.gmra.mxu1 %vm789_vm0, %v1217_v13 }
 0x46a   : > { %v5752_v7 = vpop.f32.mrf.mxu1 }
 0x46c   : > { %v1169_v61 = vpop.f32.mrf.mxu1 }
 0x46e   : > { %v5753_v37 = vpop.f32.mrf.mxu1 }
 0x46f   : > { %v1219_v3 = vpack.c.bf16 %v5753_v37, %v5752_v7 }
 0x470   : > { %v1172_v35 = vpop.f32.mrf.mxu1 }
 0x471   : > { %v1218_v25 = vpack.c.bf16 %v1172_v35, %v1169_v61 }
 0x473   : > { %5854 = vmatprep.mubr.msk.bf16.mxu1 %vm789_vm0, %v1218_v25 }
 0x474   : > { %5855 = vmatmul.mubr.msk.bf16.gmra.mxu1 %vm789_vm0, %v1219_v3 }
 0x47b   : > { %v5756_v53 = vpop.f32.mrf.mxu1 }
 0x47d   : > { %v1185_v0 = vpop.f32.mrf.mxu1 }
 0x47f   : > { %v5757_v40 = vpop.f32.mrf.mxu1 }
 0x480   : > { %v1221_v52 = vpack.c.bf16 %v5757_v40, %v5756_v53 }
 0x481   : > { %v1188_v47 = vpop.f32.mrf.mxu1 }
 0x482   : > { %v1220_v8 = vpack.c.bf16 %v1188_v47, %v1185_v0 }
 0x483   : > { %v5760_v48 = vpop.f32.mrf.mxu1 }
 0x484   : > { %5858 = vmatprep.mubr.msk.bf16.mxu1 %vm789_vm0, %v1220_v8 }
 0x485   : > { %v1201_v19 = vpop.f32.mrf.mxu1  ;;  %5859 = vmatmul.mubr.msk.bf16.gmra.mxu1 %vm789_vm0, %v1221_v52 }
 0x487   : > { %v5761_v44 = vpop.f32.mrf.mxu1 }
 0x488   : > { %v1223_v49 = vpack.c.bf16 %v5761_v44, %v5760_v48 }
 0x489   : > { %v1204_v18 = vpop.f32.mrf.mxu1 }
 0x48a   : > { %v1222_v27 = vpack.c.bf16 %v1204_v18, %v1201_v19 }
 0x48b   : > { %v5780_v26 = vpop.f32.mrf.mxu1 }
 0x48c   : > { %v1419_v22 = vmul.f32 0.17677669, %v5780_v26  ;;  %5862 = vmatprep.mubr.msk.bf16.mxu1 %vm789_vm0, %v1222_v27 }
 0x48d   : > { %v1354_v30 = vpop.f32.mrf.mxu1  ;;  %5863 = vmatmul.mubr.msk.bf16.gmra.mxu1 %vm789_vm0, %v1223_v49 }
 0x48e   : > { %v1417_v43 = vmul.f32 0.17677669, %v1354_v30  ;;  %v7317_v39 = vsel %vm759_vm3, %v1419_v22, -1e+30 }
 0x48f   : > { %1453 = vmax.xlane.f32.xlu0 %v7317_v39  ;;  %v5781_v9 = vpop.f32.mrf.mxu1 }
 0x490   : > { %v1420_v14 = vmul.f32 0.17677669, %v5781_v9  ;;  %v7323_v38 = vsel %vm757_vm4, %v1417_v43, -1e+30 }
 0x491   : > { %v1357_v4 = vpop.f32.mrf.mxu1 }
 0x492   : > { %v1418_v20 = vmul.f32 0.17677669, %v1357_v4  ;;  %v7335_v55 = vsel %vm760_vm5, %v1420_v14, -1e+30 }
 0x493   : > { %1449 = vmax.xlane.f32.xlu0 %v7323_v38  ;;  %v5784_v2 = vpop.f32.mrf.mxu1 }
 0x494   : > { %v7329_v21 = vsel %vm758_vm6, %v1418_v20, -1e+30  ;;  %v1423_v26 = vmul.f32 0.17677669, %v5784_v2 }
 0x495   : > { %1451 = vmax.xlane.f32.xlu1 %v7329_v21  ;;  %v1370_v34 = vpop.f32.mrf.mxu1 }
 0x496   : > { %v1421_v22 = vmul.f32 0.17677669, %v1370_v34  ;;  %v7381_v30 = vsel %vm763_vm7, %v1423_v26, -1e+30 }
 0x497   : > { %1455 = vmax.xlane.f32.xlu0 %v7335_v55  ;;  %v5785_v11 = vpop.f32.mrf.mxu1 }
 0x498   : > { %v1424_v33 = vmul.f32 0.17677669, %v5785_v11  ;;  %v1437_v9 = vsel %vm761_vm9, %v1421_v22, -1e+30 }
 0x499   : > { %v1373_v32 = vpop.f32.mrf.mxu1 }
 0x49a   : > { %v1422_v13 = vmul.f32 0.17677669, %v1373_v32  ;;  %v7341_v7 = vsel %vm764_vm8, %v1424_v33, -1e+30 }
 0x49b   : > { %1463 = vmax.xlane.f32.xlu1 %v7341_v7  ;;  %v5788_v61 = vpop.f32.mrf.mxu1 }
 0x49c   : > { %v7347_v35 = vsel %vm762_vm10, %v1422_v13, -1e+30  ;;  %v1427_v43 = vmul.f32 0.17677669, %v5788_v61  ;;  %v9262_v61 = vld [vmem:[#allocation2_spill] sm:$0xff] }
 0x49d   : > { %v1386_v37 = vpop.f32.mrf.mxu1 }
 0x49e   : > { %v1425_v4 = vmul.f32 0.17677669, %v1386_v37  ;;  %v7390_v14 = vsel %vm767_vm11, %v1427_v43, -1e+30  ;;  %v9263_v37 = vld [vmem:[#allocation3_spill] sm:$0xff] }
 0x49f   : > { %1459 = vmax.xlane.f32.xlu1 %v7347_v35  ;;  %v5789_v25 = vpop.f32.mrf.mxu1 }
 0x4a0   : > { %v1428_v3 = vmul.f32 0.17677669, %v5789_v25  ;;  %v9264_v25 = vld [vmem:[#allocation5_spill] sm:$0xff] }
 0x4a1   : > { %v1389_v53 = vpop.f32.mrf.mxu1 }
 0x4a2   : > { %v1426_v0 = vmul.f32 0.17677669, %v1389_v53  ;;  %v7353_v40 = vsel %vm768_vm12, %v1428_v3, -1e+30  ;;  %v9265_v3 = vld [vmem:[#allocation8_spill] sm:$0xff] }
 0x4a3   : > { %1471 = vmax.xlane.f32.xlu1 %v7353_v40  ;;  %v5792_v47 = vpop.f32.mrf.mxu1 }
 0x4a4   : > { %v7359_v52 = vsel %vm766_vm14, %v1426_v0, -1e+30  ;;  %v1431_v20 = vmul.f32 0.17677669, %v5792_v47  ;;  %v1622_v47 = vpop.permute.xlu1 %1621 }
 0x4a5   : > { %v1402_v8 = vpop.f32.mrf.mxu1 }
 0x4a6   : > { %v1429_v34 = vmul.f32 0.17677669, %v1402_v8  ;;  %v7402_v33 = vsel %vm771_vm15, %v1431_v20, -1e+30 }
 0x4a7   : > { %1467 = vmax.xlane.f32.xlu1 %v7359_v52  ;;  %v5793_v48 = vpop.f32.mrf.mxu1 }
 0x4a8   : > { %v1432_v19 = vmul.f32 0.17677669, %v5793_v48  ;;  %v7408_v13 = vsel %vm769_vm13, %v1429_v34, -1e+30 }
 0x4a9   : > { %v1405_v44 = vpop.f32.mrf.mxu1 }
 0x4aa   : > { %v1430_v18 = vmul.f32 0.17677669, %v1405_v44  ;;  %v7365_v27 = vsel %vm772_vm1, %v1432_v19, -1e+30 }
 0x4ab   : > { %1479 = vmax.xlane.f32.xlu1 %v7365_v27 }
 0x4ac   : > { %v7373_v49 = vsel %vm9230_vm2, %v1430_v18, -1e+30  ;;  %vm9259_vm2 = vcmp.le.s32.totalorder %v6983_v56, %v7083_v63 }
 0x4ad   : > { %1623 = vrot.lane.b32.xlu0 %v6862_v12, %s6679_s16  ;;  %v7396_v2 = vsel %vm9259_vm2, %v1425_v4, -1e+30 }
 0x4af   : > { %1475 = vmax.xlane.f32.xlu1 %v7373_v49 }
 0x4c0   : > { %1613 = vrot.lane.b32.xlu1 %v6888_v29, %s6679_s16 }
 0x4cc   : > { %1461 = vmax.xlane.f32.xlu0 %v7381_v30 }
 0x4d0   : > { %1457 = vmax.xlane.f32.xlu0 %v1437_v9 }
 0x4d4   : > { %1469 = vmax.xlane.f32.xlu0 %v7390_v14 }
 0x4d8   : > { %1465 = vmax.xlane.f32.xlu0 %v7396_v2 }
 0x4dc   : > { %1477 = vmax.xlane.f32.xlu0 %v7402_v33 }
 0x4e0   : > { %1473 = vmax.xlane.f32.xlu0 %v7408_v13 }
 0x4f6   : > { %1619 = vrot.lane.b32.xlu0 %v9262_v61, %s6679_s16 }
 0x4fa   : > { %1617 = vrot.lane.b32.xlu0 %v9263_v37, %s6679_s16 }
 0x4fe   : > { %1615 = vrot.lane.b32.xlu0 %v9264_v25, %s6679_s16 }
 0x502   : > { %1611 = vrot.lane.b32.xlu0 %v9265_v3, %s6679_s16 }
 0x518   : > { %v1454_v53 = vpop.xlane.xlu0 %1453 }
 0x519   : > { %v1483_v0 = vsub.f32 %v7317_v39, %v1454_v53 }
 0x51b   : > { %v1501_v8 = vmul.f32 1.442695, %v1483_v0 }
 0x51c   : > { %v1450_v48 = vpop.xlane.xlu0 %1449 }
 0x51d   : > { %6278 = vpow2.f32 %v1501_v8  ;;  %v1481_v19 = vsub.f32 %v7323_v38, %v1450_v48  ;;  %v9266_v8 = vld [vmem:[#allocation9_spill] sm:$0xff] }
 0x51e   : > { %v1452_v44 = vpop.xlane.xlu1 %1451 }
 0x51f   : > { %v1497_v18 = vmul.f32 1.442695, %v1481_v19  ;;  %v1482_v22 = vsub.f32 %v7329_v21, %v1452_v44 }
 0x520   : > { %v1456_v26 = vpop.xlane.xlu0 %1455 }
 0x521   : > { %6280 = vpow2.f32 %v1497_v18  ;;  %v1484_v43 = vsub.f32 %v7335_v55, %v1456_v26  ;;  %v1499_v34 = vmul.f32 1.442695, %v1482_v22 }
 0x523   : > { %v1503_v4 = vmul.f32 1.442695, %v1484_v43 }
 0x524   : > { %v1624_v20 = vpop.permute.xlu0 %1623  ;;  %v1464_v53 = vpop.xlane.xlu1 %1463 }
 0x525   : > { %6282 = vpow2.f32 %v1503_v4  ;;  %5794 = vmatprep.subr.bf16.mxu0 %v1624_v20  ;;  %v1488_v3 = vsub.f32 %v7341_v7, %v1464_v53 }
 0x526   : > { %5795 = vmatpush3.bf16.msra.mxu0 %v1624_v20  ;;  %6284 = vpow2.f32 %v1499_v34 }
 0x527   : > { %5796 = vmatprep.subr.bf16.mxu0 %v1622_v47 }
 0x528   : > { %v1460_v0 = vpop.xlane.xlu1 %1459 }
 0x529   : > { %v1486_v19 = vsub.f32 %v7347_v35, %v1460_v0  ;;  %v1511_v35 = vmul.f32 1.442695, %v1488_v3 }
 0x52a   : > { %v7423_v39 = vpop.eup %6278  ;;  %5797 = vmatpush3.bf16.msra.mxu0 %v1622_v47 }
 0x52b   : > { %1533 = vadd.xlane.f32.xlu1 %v7423_v39  ;;  %v1507_v26 = vmul.f32 1.442695, %v1486_v19 }
 0x52c   : > { %v1472_v47 = vpop.xlane.xlu1 %1471 }
 0x52d   : > { %6286 = vpow2.f32 %v1507_v26 }
 0x52e   : > { %v7426_v38 = vpop.eup %6280 }
 0x52f   : > { %1529 = vadd.xlane.f32.xlu1 %v7426_v38 }
 0x530   : > { %v1468_v48 = vpop.xlane.xlu1 %1467 }
 0x531   : > { %v1490_v22 = vsub.f32 %v7359_v52, %v1468_v48 }
 0x532   : > { %v7429_v21 = vpop.eup %6282 }
 0x533   : > { %1535 = vadd.xlane.f32.xlu1 %v7429_v21  ;;  %v7432_v55 = vpop.eup %6284  ;;  %v1515_v37 = vmul.f32 1.442695, %v1490_v22 }
 0x534   : > { %v1480_v18 = vpop.xlane.xlu1 %1479 }
 0x535   : > { %v1496_v7 = vsub.f32 %v7365_v27, %v1480_v18 }
 0x537   : > { %1531 = vadd.xlane.f32.xlu1 %v7432_v55  ;;  %v1527_v19 = vmul.f32 1.442695, %v1496_v7  ;;  %v9269_v7 = vld [vmem:[#allocation11_spill] sm:$0xff] }
 0x538   : > { %v1476_v25 = vpop.xlane.xlu1 %1475 }
 0x539   : > { %v1494_v0 = vsub.f32 %v7373_v49, %v1476_v25 }
 0x548   : > { %1609 = vrot.lane.b32.xlu1 %v9266_v8, %s6679_s16  ;;  %v1492_v8 = vsub.f32 %v7353_v40, %v1472_v47 }
 0x54a   : > { %v1519_v48 = vmul.f32 1.442695, %v1492_v8 }
 0x555   : > { %v1462_v44 = vpop.xlane.xlu0 %1461 }
 0x556   : > { %v1487_v4 = vsub.f32 %v7381_v30, %v1462_v44 }
 0x558   : > { %v1509_v58 = vmul.f32 1.442695, %v1487_v4  ;;  %v1614_v4 = vpop.permute.xlu1 %1613 }
 0x559   : > { %v1458_v43 = vpop.xlane.xlu0 %1457 }
 0x55a   : > { %v1485_v20 = vsub.f32 %v1437_v9, %v1458_v43  ;;  %v1523_v9 = vmul.f32 1.442695, %v1494_v0 }
 0x55c   : > { %v1505_v34 = vmul.f32 1.442695, %v1485_v20 }
 0x55d   : > { %v1470_v29 = vpop.xlane.xlu0 %1469 }
 0x55e   : > { %6288 = vpow2.f32 %v1505_v34  ;;  %v1491_v40 = vsub.f32 %v7390_v14, %v1470_v29 }
 0x55f   : > { %6290 = vpow2.f32 %v1515_v37  ;;  %v7446_v37 = vpop.eup %6286 }
 0x560   : > { %6292 = vpow2.f32 %v1509_v58  ;;  %v1517_v49 = vmul.f32 1.442695, %v1491_v40  ;;  %v9272_v40 = vld [vmem:[#allocation12_spill] sm:$0xff] }
 0x561   : > { %v1466_v52 = vpop.xlane.xlu0 %1465  ;;  %6294 = vpow2.f32 %v1511_v35 }
 0x562   : > { %v1489_v30 = vsub.f32 %v7396_v2, %v1466_v52  ;;  %6296 = vpow2.f32 %v1519_v48  ;;  %v9267_v48 = vld [vmem:[#allocation4_spill] sm:$0xff] }
 0x563   : > { %6298 = vpow2.f32 %v1523_v9  ;;  %v9270_v9 = vld [vmem:[#allocation13_spill] sm:$0xff] }
 0x564   : > { %v1513_v47 = vmul.f32 1.442695, %v1489_v30  ;;  %v9268_v30 = vld [vmem:[#allocation10_spill] sm:$0xff] }
 0x565   : > { %v1478_v53 = vpop.xlane.xlu0 %1477 }
 0x566   : > { %6300 = vpow2.f32 %v1513_v47  ;;  %v1495_v29 = vsub.f32 %v7402_v33, %v1478_v53  ;;  %v9271_v53 = vld [vmem:[#allocation7_spill] sm:$0xff] }
 0x567   : > { %6302 = vpow2.f32 %v1527_v19 }
 0x568   : > { %6304 = vpow2.f32 %v1517_v49  ;;  %v1525_v18 = vmul.f32 1.442695, %v1495_v29 }
 0x569   : > { %v1474_v3 = vpop.xlane.xlu0 %1473 }
 0x56a   : > { %v1493_v58 = vsub.f32 %v7408_v13, %v1474_v3 }
 0x56b   : > { %v7449_v25 = vpop.eup %6288 }
 0x56c   : > { %1537 = vadd.xlane.f32.xlu0 %v7449_v25  ;;  %1539 = vadd.xlane.f32.xlu1 %v7446_v37  ;;  %v7453_v2 = vpop.eup %6290  ;;  %v1521_v14 = vmul.f32 1.442695, %v1493_v58  ;;  %v6120_v58 = vld [vmem:[%s9195_s2 + $0x18] sm:$0xff]  }
 0x56d   : > { %v1620_v27 = vpop.permute.xlu0 %1619  ;;  %v7456_v8 = vpop.eup %6292 }
 0x56e   : > { %5798 = vmatprep.subr.bf16.mxu0 %v1620_v27  ;;  %v7460_v44 = vpop.eup %6294  ;;  %6306 = vpow2.f32 %v1521_v14 }
 0x56f   : > { %5799 = vmatpush3.bf16.msra.mxu0 %v1620_v27  ;;  %v7462_v26 = vpop.eup %6296  ;;  %6308 = vpow2.f32 %v1525_v18 }
 0x570   : > { %1541 = vadd.xlane.f32.xlu0 %v7456_v8  ;;  %1547 = vadd.xlane.f32.xlu1 %v7453_v2  ;;  %v7466_v22 = vpop.eup %6298 }
 0x571   : > { %v1618_v13 = vpop.permute.xlu0 %1617 }
 0x572   : > { %5800 = vmatprep.subr.bf16.mxu0 %v1618_v13 }
 0x573   : > { %5801 = vmatpush3.bf16.msra.mxu0 %v1618_v13  ;;  %v7468_v43 = vpop.eup %6300 }
 0x574   : > { %1543 = vadd.xlane.f32.xlu0 %v7460_v44  ;;  %1551 = vadd.xlane.f32.xlu1 %v7462_v26  ;;  %v7472_v20 = vpop.eup %6302 }
 0x575   : > { %v1616_v33 = vpop.permute.xlu0 %1615  ;;  %v7474_v34 = vpop.eup %6304 }
 0x576   : > { %5802 = vmatprep.subr.bf16.mxu0 %v1616_v33 }
 0x577   : > { %5803 = vmatpush3.bf16.msra.mxu0 %v1616_v33 }
 0x578   : > { %1545 = vadd.xlane.f32.xlu0 %v7468_v43  ;;  %1555 = vadd.xlane.f32.xlu1 %v7466_v22 }
 0x579   : > { %5804 = vmatprep.subr.bf16.mxu0 %v1614_v4  ;;  %v1612_v35 = vpop.permute.xlu0 %1611 }
 0x57b   : > { %5805 = vmatpush3.bf16.msra.mxu0 %v1614_v4  ;;  %v7478_v0 = vpop.eup %6306 }
 0x57c   : > { %1549 = vadd.xlane.f32.xlu0 %v7474_v34  ;;  %1559 = vadd.xlane.f32.xlu1 %v7472_v20  ;;  %v7481_v52 = vpop.eup %6308 }
 0x57d   : > { %5806 = vmatprep.subr.bf16.mxu0 %v1612_v35 }
 0x57f   : > { %5807 = vmatpush3.bf16.msra.mxu0 %v1612_v35 }
 0x580   : > { %1553 = vadd.xlane.f32.xlu0 %v7478_v0 }
 0x584   : > { %1557 = vadd.xlane.f32.xlu0 %v7481_v52 }
 0x58d   : > { %2032 = vrot.lane.b32.xlu1 %v9267_v48, %s6680_s22 }
 0x591   : > { %2030 = vrot.lane.b32.xlu1 %v9268_v30, %s6680_s22 }
 0x595   : > { %2028 = vrot.lane.b32.xlu1 %v9269_v7, %s6680_s22 }
 0x599   : > { %2024 = vrot.lane.b32.xlu1 %v9270_v9, %s6680_s22 }
 0x59a   : > { %2034 = vrot.lane.b32.xlu0 %v9271_v53, %s6680_s22 }
 0x59d   : > { %2020 = vrot.lane.b32.xlu1 %v6955_v46, %s6680_s22 }
 0x59e   : > { %2026 = vrot.lane.b32.xlu0 %v9272_v40, %s6680_s22 }
 0x5a1   : > { %2006 = vrot.lane.b32.xlu1 %v6838_v41, %s6680_s22 }
 0x5a2   : > { %2022 = vrot.lane.b32.xlu0 %v6947_v54, %s6680_s22 }
 0x5a5   : > { %2010 = vrot.lane.b32.xlu1 %v6856_v59, %s6680_s22 }
 0x5a6   : > { %2004 = vrot.lane.b32.xlu0 %v6830_v36, %s6680_s22 }
 0x5a9   : > { %2014 = vrot.lane.b32.xlu1 %v6864_v15, %s6680_s22 }
 0x5aa   : > { %2008 = vrot.lane.b32.xlu0 %v6850_v50, %s6680_s22 }
 0x5ad   : > { %2018 = vrot.lane.b32.xlu1 %v6891_v31, %s6680_s22 }
 0x5ae   : > { %2012 = vrot.lane.b32.xlu0 %v6860_v5, %s6680_s22 }
 0x5b1   : > { %2671 = vrot.lane.b32.xlu1 %v9267_v48, %s6681_s23 }
 0x5b2   : > { %2016 = vrot.lane.b32.xlu0 %v6877_v23, %s6680_s22 }
 0x5b4   : > { %v1534_v47 = vpop.xlane.xlu1 %1533 }
 0x5b5   : > { %2667 = vrot.lane.b32.xlu1 %v9269_v7, %s6681_s23 }
 0x5b6   : > { %2673 = vrot.lane.b32.xlu0 %v9271_v53, %s6681_s23 }
 0x5b8   : > { %v1530_v19 = vpop.xlane.xlu1 %1529 }
 0x5b9   : > { %2663 = vrot.lane.b32.xlu1 %v9270_v9, %s6681_s23 }
 0x5ba   : > { %2669 = vrot.lane.b32.xlu0 %v9268_v30, %s6681_s23 }
 0x5bc   : > { %v1536_v3 = vpop.xlane.xlu1 %1535 }
 0x5bd   : > { %2659 = vrot.lane.b32.xlu1 %v6955_v46, %s6681_s23  ;;  %6310 = vrcp.f32 %v1536_v3 }
 0x5be   : > { %2665 = vrot.lane.b32.xlu0 %v9272_v40, %s6681_s23  ;;  %6312 = vrcp.f32 %v1530_v19 }
 0x5bf   : > { %6314 = vrcp.f32 %v1534_v47 }
 0x5c0   : > { %v1532_v49 = vpop.xlane.xlu1 %1531 }
 0x5c1   : > { %6316 = vrcp.f32 %v1532_v49  ;;  %2645 = vrot.lane.b32.xlu1 %v6838_v41, %s6681_s23 }
 0x5c2   : > { %2661 = vrot.lane.b32.xlu0 %v6947_v54, %s6681_s23 }
 0x5c4   : > { %v1610_v27 = vpop.permute.xlu1 %1609 }
 0x5c5   : > { %2649 = vrot.lane.b32.xlu1 %v6856_v59, %s6681_s23  ;;  %5808 = vmatprep.subr.bf16.mxu0 %v1610_v27 }
 0x5c6   : > { %2643 = vrot.lane.b32.xlu0 %v6830_v36, %s6681_s23  ;;  %5809 = vmatpush3.bf16.msra.mxu0 %v1610_v27 }
 0x5c7   : > { %5826 = vmatprep.subr.bf16.mxu0 %v6120_v58 }
 0x5c9   : > { %2653 = vrot.lane.b32.xlu1 %v6864_v15, %s6681_s23 }
 0x5ca   : > { %2647 = vrot.lane.b32.xlu0 %v6850_v50, %s6681_s23  ;;  %v6311_v41 = vpop.eup %6310 }
 0x5cb   : > { %v6313_v54 = vpop.eup %6312  ;;  %v1580_v36 = vmul.f32 %v6311_v41, %v7429_v21 }
 0x5cc   : > { %v6315_v46 = vpop.eup %6314  ;;  %v1577_v59 = vmul.f32 %v6313_v54, %v7426_v38 }
 0x5cd   : > { %2657 = vrot.lane.b32.xlu1 %v6891_v31, %s6681_s23  ;;  %v1579_v15 = vmul.f32 %v6315_v46, %v7423_v39 }
 0x5ce   : > { %v6317_v29 = vpop.eup %6316  ;;  %2651 = vrot.lane.b32.xlu0 %v6860_v5, %s6681_s23  ;;  %v6121_v5 = vld [vmem:[%s9195_s2 + $0x10] sm:$0xff]  }
 0x5cf   : > { %v1578_v14 = vmul.f32 %v6317_v29, %v7432_v55  ;;  %v1594_v31 = vpack.c.bf16 %v1580_v36, %v1579_v15 }
 0x5d1   : > { %2377 = vrot.lane.b32.xlu1 %v6867_v16, %s6680_s22  ;;  %v1593_v50 = vpack.c.bf16 %v1578_v14, %v1577_v59 }
 0x5d2   : > { %2655 = vrot.lane.b32.xlu0 %v6877_v23, %s6681_s23 }
 0x5d3   : > { %5810 = vmatprep.mubr.bf16.mxu0 %v1593_v50 }
 0x5d4   : > { %5811 = vmatmul.mubr.bf16.vlgmr.msra.gmra.mxu0 %v1594_v31 }
 0x5d5   : > { %5827 = vmatpush3.bf16.msra.mxu0 %v6120_v58 }
 0x5d6   : > { %2379 = vrot.lane.b32.xlu0 %v6862_v12, %s6680_s22  ;;  %5828 = vmatprep.subr.bf16.mxu0 %v6121_v5 }
 0x5d9   : > { %5829 = vmatpush3.bf16.msra.mxu0 %v6121_v5 }
 0x5da   : > { %2375 = vrot.lane.b32.xlu0 %v9262_v61, %s6680_s22 }
 0x5f5   : > { %v1538_v39 = vpop.xlane.xlu0 %1537  ;;  %v1540_v38 = vpop.xlane.xlu1 %1539 }
 0x5f6   : > { %6318 = vrcp.f32 %v1538_v39 }
 0x5f7   : > { %6320 = vrcp.f32 %v1540_v38 }
 0x5f9   : > { %v1542_v23 = vpop.xlane.xlu0 %1541  ;;  %v1548_v21 = vpop.xlane.xlu1 %1547 }
 0x5fa   : > { %6322 = vrcp.f32 %v1542_v23 }
 0x5fd   : > { %v1544_v55 = vpop.xlane.xlu0 %1543  ;;  %v1552_v13 = vpop.xlane.xlu1 %1551 }
 0x5fe   : > { %6324 = vrcp.f32 %v1544_v55 }
 0x5ff   : > { %6326 = vrcp.f32 %v1548_v21 }
 0x601   : > { %v1546_v18 = vpop.xlane.xlu0 %1545  ;;  %v1556_v33 = vpop.xlane.xlu1 %1555 }
 0x602   : > { %6328 = vrcp.f32 %v1546_v18 }
 0x603   : > { %v6319_v4 = vpop.eup %6318  ;;  %6330 = vrcp.f32 %v1552_v13 }
 0x604   : > { %v6321_v35 = vpop.eup %6320  ;;  %v1581_v48 = vmul.f32 %v6319_v4, %v7449_v25 }
 0x605   : > { %v1550_v30 = vpop.xlane.xlu0 %1549  ;;  %v1560_v7 = vpop.xlane.xlu1 %1559  ;;  %v1582_v9 = vmul.f32 %v6321_v35, %v7446_v37 }
 0x606   : > { %6332 = vrcp.f32 %v1550_v30 }
 0x607   : > { %v1595_v53 = vpack.c.bf16 %v1582_v9, %v1581_v48  ;;  %6334 = vrcp.f32 %v1556_v33  ;;  %v6323_v40 = vpop.eup %6322 }
 0x608   : > { %v1583_v49 = vmul.f32 %v6323_v40, %v7456_v8 }
 0x609   : > { %5814 = vmatprep.mubr.bf16.mxu0 %v1595_v53  ;;  %v1554_v47 = vpop.xlane.xlu0 %1553  ;;  %v7566_v19 = vpop.permute.xlu1 %2032 }
 0x60a   : > { %6336 = vrcp.f32 %v1554_v47 }
 0x60b   : > { %v6325_v3 = vpop.eup %6324  ;;  %6338 = vrcp.f32 %v1560_v7 }
 0x60c   : > { %v1584_v58 = vmul.f32 %v6325_v3, %v7460_v44  ;;  %v6327_v25 = vpop.eup %6326 }
 0x60d   : > { %v1558_v27 = vpop.xlane.xlu0 %1557  ;;  %v7570_v41 = vpop.permute.xlu1 %2030  ;;  %v1586_v29 = vmul.f32 %v6327_v25, %v7453_v2 }
 0x60e   : > { %6340 = vrcp.f32 %v1558_v27  ;;  %v1596_v37 = vpack.c.bf16 %v1584_v58, %v1583_v49 }
 0x60f   : > { %v6329_v54 = vpop.eup %6328 }
 0x610   : > { %5815 = vmatmul.mubr.bf16.gmra.mxu0 %v1596_v37  ;;  %v1585_v46 = vmul.f32 %v6329_v54, %v7468_v43  ;;  %v6331_v36 = vpop.eup %6330 }
 0x611   : > { %v7574_v59 = vpop.permute.xlu0 %2034  ;;  %v7576_v14 = vpop.permute.xlu1 %2028  ;;  %v1588_v50 = vmul.f32 %v6331_v36, %v7462_v26 }
 0x612   : > { %6050 = vmatprep.subr.msk.bf16.mxu0 %vm789_vm0, %v7574_v59  ;;  %v1597_v8 = vpack.c.bf16 %v1586_v29, %v1585_v46 }
 0x613   : > { %v6333_v44 = vpop.eup %6332 }
 0x614   : > { %5818 = vmatprep.mubr.bf16.mxu0 %v1597_v8  ;;  %v1587_v15 = vmul.f32 %v6333_v44, %v7474_v34  ;;  %v6335_v31 = vpop.eup %6334 }
 0x615   : > { %v7582_v5 = vpop.permute.xlu0 %2026  ;;  %v7584_v43 = vpop.permute.xlu1 %2024  ;;  %v1590_v23 = vmul.f32 %v6335_v31, %v7466_v22 }
 0x616   : > { %v1598_v2 = vpack.c.bf16 %v1588_v50, %v1587_v15 }
 0x617   : > { %v6337_v39 = vpop.eup %6336 }
 0x618   : > { %5819 = vmatmul.mubr.bf16.gmra.mxu0 %v1598_v2  ;;  %v1589_v38 = vmul.f32 %v6337_v39, %v7478_v0  ;;  %v6339_v21 = vpop.eup %6338 }
 0x619   : > { %v7588_v55 = vpop.permute.xlu0 %2022  ;;  %v7590_v13 = vpop.permute.xlu1 %2020  ;;  %v1592_v33 = vmul.f32 %v6339_v21, %v7472_v20 }
 0x61a   : > { %v1599_v34 = vpack.c.bf16 %v1590_v23, %v1589_v38 }
 0x61b   : > { %v6341_v18 = vpop.eup %6340 }
 0x61c   : > { %5822 = vmatprep.mubr.bf16.mxu0 %v1599_v34  ;;  %v1591_v26 = vmul.f32 %v6341_v18, %v7481_v52  ;;  %v2082_v18 = vsel %vm789_vm0, %v7574_v59, 0  ;;  %v2073_v59 = vsel %vm789_vm0, %v7576_v14, 0 }
 0x61d   : > { %v7594_v4 = vpop.permute.xlu0 %2004  ;;  %v7596_v35 = vpop.permute.xlu1 %2006 }
 0x61e   : > { %v1600_v48 = vpack.c.bf16 %v1592_v33, %v1591_v26  ;;  %v2079_v26 = vsel %vm789_vm0, %v7566_v19, 0  ;;  %v2076_v33 = vsel %vm789_vm0, %v7570_v41, 0 }
 0x620   : > { %5823 = vmatmul.mubr.bf16.gmra.mxu0 %v1600_v48 }
 0x621   : > { %v7598_v0 = vpop.permute.xlu0 %2008  ;;  %v7600_v22 = vpop.permute.xlu1 %2010 }
 0x625   : > { %v7602_v30 = vpop.permute.xlu0 %2012  ;;  %v7604_v7 = vpop.permute.xlu1 %2014 }
 0x629   : > { %v7606_v9 = vpop.permute.xlu0 %2016  ;;  %v7608_v53 = vpop.permute.xlu1 %2018 }
 0x62d   : > { %v7610_v52 = vpop.permute.xlu0 %2673  ;;  %v7612_v20 = vpop.permute.xlu1 %2671 }
 0x631   : > { %v7614_v40 = vpop.permute.xlu0 %2669  ;;  %v7616_v47 = vpop.permute.xlu1 %2667 }
 0x635   : > { %v7618_v3 = vpop.permute.xlu0 %2665  ;;  %v7620_v49 = vpop.permute.xlu1 %2663 }
 0x639   : > { %v7622_v58 = vpop.permute.xlu0 %2661  ;;  %v7624_v25 = vpop.permute.xlu1 %2659 }
 0x63d   : > { %v7626_v27 = vpop.permute.xlu0 %2643  ;;  %v7628_v37 = vpop.permute.xlu1 %2645 }
 0x641   : > { %v7630_v54 = vpop.permute.xlu0 %2647  ;;  %v7632_v46 = vpop.permute.xlu1 %2649 }
 0x645   : > { %v7634_v29 = vpop.permute.xlu0 %2651  ;;  %v7636_v36 = vpop.permute.xlu1 %2653 }
 0x649   : > { %v7638_v8 = vpop.permute.xlu0 %2655  ;;  %v7640_v44 = vpop.permute.xlu1 %2657 }
 0x64d   : > { %v2380_v15 = vpop.permute.xlu0 %2379  ;;  %v2378_v50 = vpop.permute.xlu1 %2377 }
 0x64e   : > { %5898 = vmatprep.subr.bf16.mxu1 %v2380_v15 }
 0x64f   : > { %5899 = vmatpush3.bf16.msra.mxu1 %v2380_v15 }
 0x650   : > { %5900 = vmatprep.subr.bf16.mxu1 %v2378_v50 }
 0x651   : > { %v2376_v31 = vpop.permute.xlu0 %2375 }
 0x653   : > { %5901 = vmatpush3.bf16.msra.mxu1 %v2378_v50 }
 0x654   : > { %5902 = vmatprep.subr.bf16.mxu1 %v2376_v31 }
 0x657   : > { %5903 = vmatpush3.bf16.msra.mxu1 %v2376_v31  ;;  %v2061_v31 = vsel %vm789_vm0, %v7590_v13, 0 }
 0x694   : > { %v5812_v2 = vpop.f32.mrf.mxu0 }
 0x696   : > { %v1667_v39 = vpop.f32.mrf.mxu0 }
 0x698   : > { %v5813_v38 = vpop.f32.mrf.mxu0 }
 0x699   : > { %v1731_v34 = vpack.c.bf16 %v5813_v38, %v5812_v2 }
 0x69a   : > { %v1670_v23 = vpop.f32.mrf.mxu0 }
 0x69b   : > { %v1730_v21 = vpack.c.bf16 %v1670_v23, %v1667_v39 }
 0x69d   : > { %5830 = vmatprep.mubr.msk.bf16.mxu0 %vm789_vm0, %v1730_v21 }
 0x69e   : > { %5831 = vmatmul.mubr.msk.bf16.vlgmr.msra.gmra.mxu0 %vm789_vm0, %v1731_v34 }
 0x69f   : > { %5867 = vmatpush3.bf16.xpose.msra.mxu0 %v2082_v18 }
 0x6a0   : > { %6051 = vmatprep.subr.msk.bf16.mxu0 %vm789_vm0, %v7566_v19  ;;  %v2070_v19 = vsel %vm789_vm0, %v7582_v5, 0 }
 0x6a7   : > { %5869 = vmatpush3.bf16.xpose.msra.mxu0 %v2079_v26 }
 0x6a8   : > { %6052 = vmatprep.subr.msk.bf16.mxu0 %vm789_vm0, %v7570_v41  ;;  %v2067_v41 = vsel %vm789_vm0, %v7584_v43, 0 }
 0x6af   : > { %5871 = vmatpush3.bf16.xpose.msra.mxu0 %v2076_v33 }
 0x6b0   : > { %6053 = vmatprep.subr.msk.bf16.mxu0 %vm789_vm0, %v7576_v14  ;;  %v2064_v14 = vsel %vm789_vm0, %v7588_v55, 0 }
 0x6b7   : > { %5873 = vmatpush3.bf16.xpose.msra.mxu0 %v2073_v59 }
 0x6b8   : > { %6054 = vmatprep.subr.msk.bf16.mxu0 %vm789_vm0, %v7582_v5 }
 0x6bf   : > { %5875 = vmatpush3.bf16.xpose.msra.mxu0 %v2070_v19 }
 0x6c0   : > { %6055 = vmatprep.subr.msk.bf16.mxu0 %vm789_vm0, %v7584_v43 }
 0x6c7   : > { %5877 = vmatpush3.bf16.xpose.msra.mxu0 %v2067_v41  ;;  %v2721_v41 = vsel %vm789_vm0, %v7610_v52, 0 }
 0x6c8   : > { %6056 = vmatprep.subr.msk.bf16.mxu0 %vm789_vm0, %v7588_v55 }
 0x6cf   : > { %5879 = vmatpush3.bf16.xpose.msra.mxu0 %v2064_v14  ;;  %v2718_v14 = vsel %vm789_vm0, %v7612_v20, 0 }
 0x6d0   : > { %6057 = vmatprep.subr.msk.bf16.mxu0 %vm789_vm0, %v7590_v13  ;;  %v5816_v48 = vpop.f32.mrf.mxu0 }
 0x6d2   : > { %v1683_v5 = vpop.f32.mrf.mxu0 }
 0x6d4   : > { %v5817_v15 = vpop.f32.mrf.mxu0 }
 0x6d5   : > { %v1733_v43 = vpack.c.bf16 %v5817_v15, %v5816_v48 }
 0x6d6   : > { %v1686_v50 = vpop.f32.mrf.mxu0 }
 0x6d7   : > { %v1732_v2 = vpack.c.bf16 %v1686_v50, %v1683_v5  ;;  %5881 = vmatpush3.bf16.xpose.msra.mxu0 %v2061_v31 }
 0x6d8   : > { %6058 = vmatprep.subr.msk.bf16.mxu0 %vm789_vm0, %v7610_v52  ;;  %v5820_v39 = vpop.f32.mrf.mxu0 }
 0x6d9   : > { %5834 = vmatprep.mubr.msk.bf16.mxu0 %vm789_vm0, %v1732_v2 }
 0x6da   : > { %v1699_v55 = vpop.f32.mrf.mxu0  ;;  %5835 = vmatmul.mubr.msk.bf16.gmra.mxu0 %vm789_vm0, %v1733_v43 }
 0x6dc   : > { %v5821_v38 = vpop.f32.mrf.mxu0 }
 0x6dd   : > { %v1735_v34 = vpack.c.bf16 %v5821_v38, %v5820_v39 }
 0x6de   : > { %v1702_v23 = vpop.f32.mrf.mxu0 }
 0x6df   : > { %v1734_v21 = vpack.c.bf16 %v1702_v23, %v1699_v55 }
 0x6e0   : > { %v5824_v18 = vpop.f32.mrf.mxu0 }
 0x6e1   : > { %5838 = vmatprep.mubr.msk.bf16.mxu0 %vm789_vm0, %v1734_v21 }
 0x6e2   : > { %v1715_v13 = vpop.f32.mrf.mxu0  ;;  %5839 = vmatmul.mubr.msk.bf16.gmra.mxu0 %vm789_vm0, %v1735_v34 }
 0x6e4   : > { %v5825_v26 = vpop.f32.mrf.mxu0 }
 0x6e5   : > { %v1737_v19 = vpack.c.bf16 %v5825_v26, %v5824_v18 }
 0x6e6   : > { %v1718_v33 = vpop.f32.mrf.mxu0 }
 0x6e7   : > { %v1736_v59 = vpack.c.bf16 %v1718_v33, %v1715_v13 }
 0x6e9   : > { %5842 = vmatprep.mubr.msk.bf16.mxu0 %vm789_vm0, %v1736_v59 }
 0x6ea   : > { %5843 = vmatmul.mubr.msk.bf16.gmra.mxu0 %vm789_vm0, %v1737_v19 }
 0x6eb   : > { %5882 = vmatprep.mubr.msk.bf16.mxu0 %vm789_vm0, %v7594_v4  ;;  %v2715_v4 = vsel %vm789_vm0, %v7614_v40, 0 }
 0x6f2   : > { %5883 = vmatmul.mubr.msk.bf16.vlgmr.msra.gmra.mxu0 %vm789_vm0, %v7596_v35  ;;  %v2712_v35 = vsel %vm789_vm0, %v7616_v47, 0 }
 0x6f3   : > { %5951 = vmatpush3.bf16.xpose.msra.mxu0 %v2721_v41  ;;  %5886 = vmatprep.mubr.msk.bf16.mxu0 %vm789_vm0, %v7598_v0  ;;  %v2709_v0 = vsel %vm789_vm0, %v7618_v3, 0 }
 0x6f4   : > { %6059 = vmatprep.subr.msk.bf16.mxu0 %vm789_vm0, %v7612_v20 }
 0x6fa   : > { %5887 = vmatmul.mubr.msk.bf16.gmra.mxu0 %vm789_vm0, %v7600_v22  ;;  %v2706_v22 = vsel %vm789_vm0, %v7620_v49, 0 }
 0x6fb   : > { %5953 = vmatpush3.bf16.xpose.msra.mxu0 %v2718_v14  ;;  %5890 = vmatprep.mubr.msk.bf16.mxu0 %vm789_vm0, %v7602_v30  ;;  %v2703_v30 = vsel %vm789_vm0, %v7622_v58, 0 }
 0x6fc   : > { %6060 = vmatprep.subr.msk.bf16.mxu0 %vm789_vm0, %v7614_v40 }
 0x702   : > { %5891 = vmatmul.mubr.msk.bf16.gmra.mxu0 %vm789_vm0, %v7604_v7  ;;  %v2700_v7 = vsel %vm789_vm0, %v7624_v25, 0 }
 0x703   : > { %5955 = vmatpush3.bf16.xpose.msra.mxu0 %v2715_v4  ;;  %5894 = vmatprep.mubr.msk.bf16.mxu0 %vm789_vm0, %v7606_v9  ;;  %v9273_v9 = vmov 0  }
 0x704   : > { %6061 = vmatprep.subr.msk.bf16.mxu0 %vm789_vm0, %v7616_v47 }
 0x70a   : > { %5895 = vmatmul.mubr.msk.bf16.gmra.mxu0 %vm789_vm0, %v7608_v53 }
 0x70b   : > { %5957 = vmatpush3.bf16.xpose.msra.mxu0 %v2712_v35  ;;  %5966 = vmatprep.mubr.msk.bf16.mxu0 %vm789_vm0, %v7626_v27 }
 0x70c   : > { %6062 = vmatprep.subr.msk.bf16.mxu0 %vm789_vm0, %v7618_v3 }
 0x713   : > { %5959 = vmatpush3.bf16.xpose.msra.mxu0 %v2709_v0 }
 0x714   : > { %6063 = vmatprep.subr.msk.bf16.mxu0 %vm789_vm0, %v7620_v49 }
 0x71b   : > { %5961 = vmatpush3.bf16.xpose.msra.mxu0 %v2706_v22 }
 0x71c   : > { %6064 = vmatprep.subr.msk.bf16.mxu0 %vm789_vm0, %v7622_v58 }
 0x723   : > { %5963 = vmatpush3.bf16.xpose.msra.mxu0 %v2703_v30 }
 0x724   : > { %6065 = vmatprep.subr.msk.bf16.mxu0 %vm789_vm0, %v7624_v25 }
 0x72b   : > { %5965 = vmatpush3.bf16.xpose.msra.mxu0 %v2700_v7 }
 0x732   : > { %5967 = vmatmul.mubr.msk.bf16.vlgmr.msra.gmra.mxu0 %vm789_vm0, %v7628_v37 }
 0x733   : > { %5970 = vmatprep.mubr.msk.bf16.mxu0 %vm789_vm0, %v7630_v54 }
 0x73a   : > { %5971 = vmatmul.mubr.msk.bf16.gmra.mxu0 %vm789_vm0, %v7632_v46 }
 0x73b   : > { %5974 = vmatprep.mubr.msk.bf16.mxu0 %vm789_vm0, %v7634_v29 }
 0x742   : > { %5975 = vmatmul.mubr.msk.bf16.gmra.mxu0 %vm789_vm0, %v7636_v36 }
 0x743   : > { %5978 = vmatprep.mubr.msk.bf16.mxu0 %vm789_vm0, %v7638_v8 }
 0x74a   : > { %5979 = vmatmul.mubr.msk.bf16.gmra.mxu0 %vm789_vm0, %v7640_v44 }
 0x74b   : > { %3746 = vmatprep.mubr.bf16.mxu0 %v9273_v9 }
 0x75e   : > { %v7745_v53 = vpop.f32.mrf.mxu0 }
 0x75f   : > { %9274 = vst [vmem:[#allocation15_spill] sm:$0xff] %v7745_v53 }
 0x760   : > { %v7747_v52 = vpop.f32.mrf.mxu0 }
 0x761   : > { %9275 = vst [vmem:[#allocation16_spill] sm:$0xff] %v7747_v52 }
 0x762   : > { %v7749_v20 = vpop.f32.mrf.mxu0 }
 0x763   : > { %9276 = vst [vmem:[#allocation2_spill] sm:$0xff] %v7749_v20 }
 0x764   : > { %v7751_v40 = vpop.f32.mrf.mxu0 }
 0x765   : > { %9277 = vst [vmem:[#allocation4_spill] sm:$0xff] %v7751_v40 }
 0x79a   : > { %v7753_v47 = vpop.f32.mrf.mxu0 }
 0x79b   : > { %9278 = vst [vmem:[#allocation10_spill] sm:$0xff] %v7753_v47 }
 0x79c   : > { %v7755_v3 = vpop.f32.mrf.mxu0 }
 0x79d   : > { %9279 = vst [vmem:[#allocation11_spill] sm:$0xff] %v7755_v3 }
 0x79e   : > { %v7757_v49 = vpop.f32.mrf.mxu0 }
 0x79f   : > { %9280 = vst [vmem:[#allocation13_spill] sm:$0xff] %v7757_v49 }
 0x7a0   : > { %v7759_v58 = vpop.f32.mrf.mxu0 }
 0x7a1   : > { %9281 = vst [vmem:[#allocation7_spill] sm:$0xff] %v7759_v58 }
 0x7a2   : > { %v7761_v25 = vpop.f32.mrf.mxu0 }
 0x7a3   : > { %9282 = vst [vmem:[#allocation12_spill] sm:$0xff] %v7761_v25 }
 0x7a4   : > { %v7763_v27 = vpop.f32.mrf.mxu0 }
 0x7a5   : > { %9283 = vst [vmem:[#allocation17_spill] sm:$0xff] %v7763_v27 }
 0x7a6   : > { %v7765_v37 = vpop.f32.mrf.mxu0 }
 0x7a7   : > { %9284 = vst [vmem:[#allocation18_spill] sm:$0xff] %v7765_v37 }
 0x7a8   : > { %v7767_v54 = vpop.f32.mrf.mxu0 }
 0x7a9   : > { %9285 = vst [vmem:[#allocation19_spill] sm:$0xff] %v7767_v54 }
 0x7aa   : > { %v7769_v46 = vpop.f32.mrf.mxu0 }
 0x7ab   : > { %9286 = vst [vmem:[#allocation20_spill] sm:$0xff] %v7769_v46 }
 0x7ac   : > { %v7771_v29 = vpop.f32.mrf.mxu0 }
 0x7ad   : > { %9287 = vst [vmem:[#allocation21_spill] sm:$0xff] %v7771_v29 }
 0x7ae   : > { %v7773_v36 = vpop.f32.mrf.mxu0 }
 0x7af   : > { %9288 = vst [vmem:[#allocation22_spill] sm:$0xff] %v7773_v36 }
 0x7b0   : > { %v7775_v8 = vpop.f32.mrf.mxu0 }
 0x7b1   : > { %9289 = vst [vmem:[#allocation23_spill] sm:$0xff] %v7775_v8 }
 0x7b2   : > { %v5884_v44 = vpop.f32.mrf.mxu0 }
 0x7b3   : > { %v2183_v48 = vmul.f32 0.17677669, %v5884_v44 }
 0x7b4   : > { %v2118_v5 = vpop.f32.mrf.mxu0 }
 0x7b5   : > { %v2181_v15 = vmul.f32 0.17677669, %v2118_v5  ;;  %v7780_v50 = vsel %vm759_vm3, %v2183_v48, -1e+30 }
 0x7b6   : > { %2217 = vmax.xlane.f32.xlu0 %v7780_v50  ;;  %v5885_v31 = vpop.f32.mrf.mxu0 }
 0x7b7   : > { %v2184_v43 = vmul.f32 0.17677669, %v5885_v31  ;;  %v7786_v55 = vsel %vm757_vm4, %v2181_v15, -1e+30 }
 0x7b8   : > { %v2121_v2 = vpop.f32.mrf.mxu0 }
 0x7b9   : > { %v2182_v39 = vmul.f32 0.17677669, %v2121_v2  ;;  %v2200_v13 = vsel %vm760_vm5, %v2184_v43, -1e+30 }
 0x7ba   : > { %2213 = vmax.xlane.f32.xlu0 %v7786_v55  ;;  %v5888_v38 = vpop.f32.mrf.mxu0 }
 0x7bb   : > { %v7792_v23 = vsel %vm758_vm6, %v2182_v39, -1e+30  ;;  %v2187_v34 = vmul.f32 0.17677669, %v5888_v38 }
 0x7bc   : > { %2215 = vmax.xlane.f32.xlu1 %v7792_v23  ;;  %v2134_v21 = vpop.f32.mrf.mxu0 }
 0x7bd   : > { %v2185_v18 = vmul.f32 0.17677669, %v2134_v21  ;;  %v2203_v14 = vsel %vm763_vm7, %v2187_v34, -1e+30 }
 0x7be   : > { %2219 = vmax.xlane.f32.xlu0 %v2200_v13  ;;  %v5889_v26 = vpop.f32.mrf.mxu0 }
 0x7bf   : > { %v2188_v33 = vmul.f32 0.17677669, %v5889_v26  ;;  %v7801_v59 = vsel %vm761_vm9, %v2185_v18, -1e+30 }
 0x7c0   : > { %2221 = vmax.xlane.f32.xlu1 %v7801_v59  ;;  %v2137_v19 = vpop.f32.mrf.mxu0 }
 0x7c1   : > { %v2186_v41 = vmul.f32 0.17677669, %v2137_v19  ;;  %v7810_v35 = vsel %vm764_vm8, %v2188_v33, -1e+30 }
 0x7c2   : > { %2225 = vmax.xlane.f32.xlu0 %v2203_v14  ;;  %v5892_v4 = vpop.f32.mrf.mxu0 }
 0x7c3   : > { %v2191_v22 = vmul.f32 0.17677669, %v5892_v4  ;;  %v2202_v30 = vsel %vm762_vm10, %v2186_v41, -1e+30 }
 0x7c4   : > { %2227 = vmax.xlane.f32.xlu1 %v7810_v35  ;;  %v2150_v0 = vpop.f32.mrf.mxu0 }
 0x7c5   : > { %v2189_v48 = vmul.f32 0.17677669, %v2150_v0  ;;  %v7819_v31 = vsel %vm767_vm11, %v2191_v22, -1e+30 }
 0x7c6   : > { %2223 = vmax.xlane.f32.xlu0 %v2202_v30  ;;  %v5893_v7 = vpop.f32.mrf.mxu0 }
 0x7c7   : > { %v2192_v44 = vmul.f32 0.17677669, %v5893_v7  ;;  %v7831_v34 = vsel %vm9259_vm2, %v2189_v48, -1e+30  ;;  %v9290_v7 = vld [vmem:[#allocation14_spill] sm:$0xff]  ;;  %v9292_v48 = vld [vmem:[#allocation5_spill] sm:$0xff] }
 0x7c8   : > { %v2153_v5 = vpop.f32.mrf.mxu0  ;;  %vm9291_vm2 = vcmp.le.s32.totalorder %v6983_v56, %v9290_v7 }
 0x7c9   : > { %v2190_v15 = vmul.f32 0.17677669, %v2153_v5  ;;  %v7824_v2 = vsel %vm768_vm12, %v2192_v44, -1e+30  ;;  %v9293_v5 = vld [vmem:[#allocation6_spill] sm:$0xff] }
 0x7ca   : > { %2233 = vmax.xlane.f32.xlu0 %v7819_v31  ;;  %2235 = vmax.xlane.f32.xlu1 %v7824_v2  ;;  %v5896_v43 = vpop.f32.mrf.mxu0 }
 0x7cb   : > { %v2195_v39 = vmul.f32 0.17677669, %v5896_v43  ;;  %v7836_v18 = vsel %vm766_vm14, %v2190_v15, -1e+30  ;;  %v9294_v15 = vld [vmem:[#allocation3_spill] sm:$0xff] }
 0x7cc   : > { %v2166_v38 = vpop.f32.mrf.mxu0 }
 0x7cd   : > { %v2193_v21 = vmul.f32 0.17677669, %v2166_v38  ;;  %v7843_v19 = vsel %vm771_vm15, %v2195_v39, -1e+30 }
 0x7ce   : > { %2229 = vmax.xlane.f32.xlu0 %v7831_v34  ;;  %2231 = vmax.xlane.f32.xlu1 %v7836_v18  ;;  %v5897_v26 = vpop.f32.mrf.mxu0 }
 0x7cf   : > { %v2196_v41 = vmul.f32 0.17677669, %v5897_v26  ;;  %v7848_v0 = vsel %vm769_vm13, %v2193_v21, -1e+30 }
 0x7d0   : > { %v2169_v33 = vpop.f32.mrf.mxu0 }
 0x7d1   : > { %v2194_v4 = vmul.f32 0.17677669, %v2169_v33  ;;  %v7855_v22 = vsel %vm772_vm1, %v2196_v41, -1e+30 }
 0x7d2   : > { %2241 = vmax.xlane.f32.xlu0 %v7843_v19  ;;  %2237 = vmax.xlane.f32.xlu1 %v7848_v0 }
 0x7d3   : > { %v7860_v44 = vsel %vm9291_vm2, %v2194_v4, -1e+30 }
 0x7d6   : > { %2243 = vmax.xlane.f32.xlu1 %v7855_v22  ;;  %2239 = vmax.xlane.f32.xlu0 %v7860_v44 }
 0x7e7   : > { %2371 = vrot.lane.b32.xlu1 %v9292_v48, %s6680_s22 }
 0x7eb   : > { %2369 = vrot.lane.b32.xlu1 %v9293_v5, %s6680_s22 }
 0x7ec   : > { %2373 = vrot.lane.b32.xlu0 %v9294_v15, %s6680_s22 }
 0x83f   : > { %v2218_v43 = vpop.xlane.xlu0 %2217 }
 0x840   : > { %v2247_v39 = vsub.f32 %v7780_v50, %v2218_v43 }
 0x842   : > { %v2265_v38 = vmul.f32 1.442695, %v2247_v39 }
 0x843   : > { %v2214_v21 = vpop.xlane.xlu0 %2213 }
 0x844   : > { %6342 = vpow2.f32 %v2265_v38  ;;  %v2245_v26 = vsub.f32 %v7786_v55, %v2214_v21 }
 0x845   : > { %v2216_v33 = vpop.xlane.xlu1 %2215 }
 0x846   : > { %v2261_v41 = vmul.f32 1.442695, %v2245_v26  ;;  %v2246_v4 = vsub.f32 %v7792_v23, %v2216_v33 }
 0x847   : > { %v2220_v9 = vpop.xlane.xlu0 %2219 }
 0x848   : > { %6344 = vpow2.f32 %v2261_v41  ;;  %v2248_v8 = vsub.f32 %v2200_v13, %v2220_v9  ;;  %v2263_v46 = vmul.f32 1.442695, %v2246_v4 }
 0x849   : > { %v2222_v36 = vpop.xlane.xlu1 %2221 }
 0x84a   : > { %v2267_v29 = vmul.f32 1.442695, %v2248_v8  ;;  %v2249_v54 = vsub.f32 %v7801_v59, %v2222_v36 }
 0x84b   : > { %v2226_v37 = vpop.xlane.xlu0 %2225 }
 0x84c   : > { %6346 = vpow2.f32 %v2267_v29  ;;  %v2251_v50 = vsub.f32 %v2203_v14, %v2226_v37  ;;  %v2269_v38 = vmul.f32 1.442695, %v2249_v54 }
 0x84d   : > { %v2228_v43 = vpop.xlane.xlu1 %2227  ;;  %6348 = vpow2.f32 %v2263_v46 }
 0x84e   : > { %v2273_v39 = vmul.f32 1.442695, %v2251_v50  ;;  %v2252_v21 = vsub.f32 %v7810_v35, %v2228_v43 }
 0x84f   : > { %v2224_v55 = vpop.xlane.xlu0 %2223 }
 0x850   : > { %6350 = vpow2.f32 %v2273_v39  ;;  %v2250_v23 = vsub.f32 %v2202_v30, %v2224_v55  ;;  %v2275_v13 = vmul.f32 1.442695, %v2252_v21 }
 0x851   : > { %v7875_v26 = vpop.eup %6342  ;;  %6352 = vpow2.f32 %v2269_v38 }
 0x852   : > { %v2271_v9 = vmul.f32 1.442695, %v2250_v23  ;;  %2297 = vadd.xlane.f32.xlu1 %v7875_v26 }
 0x853   : > { %v2234_v8 = vpop.xlane.xlu0 %2233  ;;  %v2236_v36 = vpop.xlane.xlu1 %2235 }
 0x854   : > { %6354 = vpow2.f32 %v2271_v9  ;;  %v2255_v37 = vsub.f32 %v7819_v31, %v2234_v8  ;;  %v2256_v46 = vsub.f32 %v7824_v2, %v2236_v36 }
 0x855   : > { %v7879_v29 = vpop.eup %6344  ;;  %6356 = vpow2.f32 %v2275_v13 }
 0x856   : > { %2293 = vadd.xlane.f32.xlu1 %v7879_v29  ;;  %v2281_v54 = vmul.f32 1.442695, %v2255_v37  ;;  %v2283_v41 = vmul.f32 1.442695, %v2256_v46 }
 0x857   : > { %v2230_v59 = vpop.xlane.xlu0 %2229  ;;  %v2232_v14 = vpop.xlane.xlu1 %2231 }
 0x858   : > { %v2253_v35 = vsub.f32 %v7831_v34, %v2230_v59  ;;  %6358 = vpow2.f32 %v2281_v54  ;;  %v2254_v31 = vsub.f32 %v7836_v18, %v2232_v14 }
 0x859   : > { %v7884_v30 = vpop.eup %6346 }
 0x85a   : > { %v2277_v33 = vmul.f32 1.442695, %v2253_v35  ;;  %2299 = vadd.xlane.f32.xlu1 %v7884_v30  ;;  %v7888_v43 = vpop.eup %6348  ;;  %v2279_v55 = vmul.f32 1.442695, %v2254_v31 }
 0x85b   : > { %v2242_v4 = vpop.xlane.xlu0 %2241  ;;  %v2238_v50 = vpop.xlane.xlu1 %2237 }
 0x85c   : > { %6360 = vpow2.f32 %v2277_v33  ;;  %v2259_v2 = vsub.f32 %v7843_v19, %v2242_v4  ;;  %v2257_v39 = vsub.f32 %v7848_v0, %v2238_v50  ;;  %v5968_v33 = vpop.f32.mrf.mxu0 }
 0x85d   : > { %v7892_v38 = vpop.eup %6350  ;;  %6362 = vpow2.f32 %v2283_v41 }
 0x85e   : > { %v2289_v34 = vmul.f32 1.442695, %v2259_v2  ;;  %2305 = vadd.xlane.f32.xlu0 %v7892_v38  ;;  %2295 = vadd.xlane.f32.xlu1 %v7888_v43  ;;  %v7896_v23 = vpop.eup %6352  ;;  %v2285_v9 = vmul.f32 1.442695, %v2257_v39  ;;  %v2757_v41 = vpop.f32.mrf.mxu0  ;;  %v9295_v2 = vld [vmem:[#allocation9_spill] sm:$0xff] }
 0x85f   : > { %v2240_v21 = vpop.xlane.xlu0 %2239  ;;  %v2244_v18 = vpop.xlane.xlu1 %2243 }
 0x860   : > { %6364 = vpow2.f32 %v2289_v34  ;;  %v5969_v31 = vpop.f32.mrf.mxu0  ;;  %v9296_v34 = vld [vmem:[#allocation8_spill] sm:$0xff]  ;;  %v2260_v27 = vsub.f32 %v7855_v22, %v2244_v18 }
 0x861   : > { %v7898_v8 = vpop.eup %6354  ;;  %6366 = vpow2.f32 %v2279_v55  ;;  %v2823_v11 = vmul.f32 0.17677669, %v5969_v31 }
 0x862   : > { %2303 = vadd.xlane.f32.xlu1 %v7898_v8  ;;  %2301 = vadd.xlane.f32.xlu0 %v7896_v23  ;;  %6368 = vpow2.f32 %v2285_v9  ;;  %v7902_v36 = vpop.eup %6356  ;;  %v2760_v4 = vpop.f32.mrf.mxu0  ;;  %v2291_v58 = vmul.f32 1.442695, %v2260_v27  ;;  %v2820_v27 = vmul.f32 0.17677669, %v2757_v41 }
 0x863   : > { %v2374_v19 = vpop.permute.xlu0 %2373  ;;  %v2372_v0 = vpop.permute.xlu1 %2371 }
 0x864   : > { %5904 = vmatprep.subr.bf16.mxu1 %v2374_v19  ;;  %v5972_v50 = vpop.f32.mrf.mxu0  ;;  %v7950_v24 = vsel %vm757_vm4, %v2820_v27, -1e+30  ;;  %vm9298_vm4 = vmmov %vm9291_vm2 }
 0x865   : > { %5905 = vmatpush3.bf16.msra.mxu1 %v2374_v19  ;;  %v7905_v13 = vpop.eup %6358  ;;  %v2258_v19 = vsub.f32 %v7860_v44, %v2240_v21  ;;  %v7968_v21 = vsel %vm760_vm5, %v2823_v11, -1e+30  ;;  %v2826_v1 = vmul.f32 0.17677669, %v5972_v50 }
 0x866   : > { %2307 = vadd.xlane.f32.xlu0 %v7902_v36  ;;  %5906 = vmatprep.subr.bf16.mxu1 %v2372_v0  ;;  %v2773_v39 = vpop.f32.mrf.mxu0 }
 0x867   : > { %v2370_v54 = vpop.permute.xlu1 %2369  ;;  %v2824_v47 = vmul.f32 0.17677669, %v2773_v39  ;;  %v7984_v62 = vsel %vm763_vm7, %v2826_v1, -1e+30 }
 0x868   : > { %v5973_v55 = vpop.f32.mrf.mxu0 }
 0x869   : > { %v7907_v37 = vpop.eup %6360  ;;  %5907 = vmatpush3.bf16.msra.mxu1 %v2372_v0  ;;  %v7934_v53 = vsel %vm761_vm9, %v2824_v47, -1e+30  ;;  %v2822_v47 = vmul.f32 0.17677669, %v5968_v33  ;;  %v2827_v18 = vmul.f32 0.17677669, %v5973_v55 }
 0x86a   : > { %2309 = vadd.xlane.f32.xlu1 %v7907_v37  ;;  %2313 = vadd.xlane.f32.xlu0 %v7905_v13  ;;  %v7911_v46 = vpop.eup %6362  ;;  %v2776_v9 = vpop.f32.mrf.mxu0 }
 0x86b   : > { %5908 = vmatprep.subr.bf16.mxu1 %v2370_v54  ;;  %v2825_v42 = vmul.f32 0.17677669, %v2776_v9  ;;  %v7992_v28 = vsel %vm764_vm8, %v2827_v18, -1e+30 }
 0x86c   : > { %v5976_v0 = vpop.f32.mrf.mxu0 }
 0x86d   : > { %v7913_v59 = vpop.eup %6364  ;;  %5909 = vmatpush3.bf16.msra.mxu1 %v2370_v54  ;;  %v2287_v54 = vmul.f32 1.442695, %v2258_v19  ;;  %v7976_v60 = vsel %vm762_vm10, %v2825_v42, -1e+30 }
 0x86e   : > { %2321 = vadd.xlane.f32.xlu1 %v7913_v59  ;;  %2315 = vadd.xlane.f32.xlu0 %v7911_v46  ;;  %v7917_v14 = vpop.eup %6366  ;;  %v2789_v25 = vpop.f32.mrf.mxu0 }
 0x86f   : > { %v7919_v35 = vpop.eup %6368  ;;  %6370 = vpow2.f32 %v2287_v54 }
 0x870   : > { %v5977_v49 = vpop.f32.mrf.mxu0  ;;  %6372 = vpow2.f32 %v2291_v58 }
 0x871   : > { %v2831_v33 = vmul.f32 0.17677669, %v5977_v49 }
 0x872   : > { %2311 = vadd.xlane.f32.xlu0 %v7917_v14  ;;  %2317 = vadd.xlane.f32.xlu1 %v7919_v35  ;;  %v2792_v3 = vpop.f32.mrf.mxu0 }
 0x873   : > { %v8018_v41 = vsel %vm768_vm12, %v2831_v33, -1e+30 }
 0x874   : > { %v5980_v40 = vpop.f32.mrf.mxu0 }
 0x875   : > { %v2834_v52 = vmul.f32 0.17677669, %v5980_v40  ;;  %v2821_v40 = vmul.f32 0.17677669, %v2760_v4 }
 0x877   : > { %v7943_v58 = vsel %vm771_vm15, %v2834_v52, -1e+30  ;;  %v7956_v44 = vsel %vm758_vm6, %v2821_v40, -1e+30  ;;  %v7962_v52 = vsel %vm759_vm3, %v2822_v47, -1e+30  ;;  %vm9297_vm3 = vcmp.le.s32.totalorder %v6983_v56, %v7083_v63 }
 0x87c   : > { %v7929_v20 = vpop.eup %6370 }
 0x87d   : > { %v7938_v22 = vpop.eup %6372 }
 0x883   : > { %2365 = vrot.lane.b32.xlu1 %v9295_v2, %s6680_s22 }
 0x888   : > { %2367 = vrot.lane.b32.xlu0 %v9296_v34, %s6680_s22 }
 0x8a7   : > { %2319 = vadd.xlane.f32.xlu0 %v7929_v20  ;;  %2860 = vmax.xlane.f32.xlu1 %v7934_v53 }
 0x8ab   : > { %2880 = vmax.xlane.f32.xlu1 %v7943_v58  ;;  %2323 = vadd.xlane.f32.xlu0 %v7938_v22 }
 0x8af   : > { %2852 = vmax.xlane.f32.xlu0 %v7950_v24 }
 0x8b3   : > { %2854 = vmax.xlane.f32.xlu0 %v7956_v44 }
 0x8b7   : > { %2856 = vmax.xlane.f32.xlu0 %v7962_v52 }
 0x8bb   : > { %2858 = vmax.xlane.f32.xlu0 %v7968_v21 }
 0x8bc   : > { %3018 = vrot.lane.b32.xlu1 %v6862_v12, %s6681_s23  ;;  %v2828_v12 = vmul.f32 0.17677669, %v2789_v25  ;;  %v2805_v25 = vpop.f32.mrf.mxu0 }
 0x8be   : > { %v8000_v10 = vsel %vm9297_vm3, %v2828_v12, -1e+30  ;;  %v5981_v63 = vpop.f32.mrf.mxu0 }
 0x8bf   : > { %2862 = vmax.xlane.f32.xlu0 %v7976_v60  ;;  %v2835_v4 = vmul.f32 0.17677669, %v5981_v63 }
 0x8c0   : > { %3016 = vrot.lane.b32.xlu1 %v6867_v16, %s6681_s23  ;;  %v2829_v16 = vmul.f32 0.17677669, %v2792_v3  ;;  %v2808_v6 = vpop.f32.mrf.mxu0 }
 0x8c1   : > { %v2833_v31 = vmul.f32 0.17677669, %v2808_v6  ;;  %v8036_v39 = vsel %vm772_vm1, %v2835_v4, -1e+30  ;;  %v6123_v4 = vld [vmem:[%s9195_s2 + $0x20] sm:$0xff]  }
 0x8c2   : > { %v8006_v17 = vsel %vm766_vm14, %v2829_v16, -1e+30 }
 0x8c3   : > { %2864 = vmax.xlane.f32.xlu0 %v7984_v62  ;;  %v8030_v50 = vsel %vm9298_vm4, %v2833_v31, -1e+30 }
 0x8c4   : > { %3012 = vrot.lane.b32.xlu1 %v9294_v15, %s6681_s23  ;;  %v2830_v15 = vmul.f32 0.17677669, %v5976_v0 }
 0x8c6   : > { %v8012_v3 = vsel %vm767_vm11, %v2830_v15, -1e+30 }
 0x8c7   : > { %2866 = vmax.xlane.f32.xlu0 %v7992_v28 }
 0x8c8   : > { %3010 = vrot.lane.b32.xlu1 %v9292_v48, %s6681_s23  ;;  %v2832_v48 = vmul.f32 0.17677669, %v2805_v25 }
 0x8ca   : > { %v8024_v49 = vsel %vm769_vm13, %v2832_v48, -1e+30 }
 0x8cb   : > { %2868 = vmax.xlane.f32.xlu0 %v8000_v10 }
 0x8cf   : > { %2870 = vmax.xlane.f32.xlu0 %v8006_v17 }
 0x8d3   : > { %2872 = vmax.xlane.f32.xlu0 %v8012_v3 }
 0x8d7   : > { %2874 = vmax.xlane.f32.xlu0 %v8018_v41 }
 0x8db   : > { %2876 = vmax.xlane.f32.xlu0 %v8024_v49  ;;  %v2298_v45 = vpop.xlane.xlu1 %2297 }
 0x8df   : > { %2878 = vmax.xlane.f32.xlu0 %v8030_v50  ;;  %v2294_v51 = vpop.xlane.xlu1 %2293 }
 0x8e0   : > { %6374 = vrcp.f32 %v2294_v51 }
 0x8e3   : > { %2882 = vmax.xlane.f32.xlu0 %v8036_v39  ;;  %v2300_v32 = vpop.xlane.xlu1 %2299 }
 0x8e7   : > { %v2306_v55 = vpop.xlane.xlu0 %2305  ;;  %v2296_v9 = vpop.xlane.xlu1 %2295 }
 0x8e8   : > { %6376 = vrcp.f32 %v2296_v9 }
 0x8e9   : > { %6378 = vrcp.f32 %v2300_v32 }
 0x8eb   : > { %v2302_v19 = vpop.xlane.xlu0 %2301  ;;  %v2304_v0 = vpop.xlane.xlu1 %2303 }
 0x8ec   : > { %6380 = vrcp.f32 %v2302_v19 }
 0x8ed   : > { %6382 = vrcp.f32 %v2304_v0  ;;  %v6375_v40 = vpop.eup %6374 }
 0x8ee   : > { %6384 = vrcp.f32 %v2298_v45  ;;  %v2341_v11 = vmul.f32 %v6375_v40, %v7879_v29 }
 0x8ef   : > { %v2308_v7 = vpop.xlane.xlu0 %2307 }
 0x8f0   : > { %6386 = vrcp.f32 %v2308_v7 }
 0x8f1   : > { %6388 = vrcp.f32 %v2306_v55 }
 0x8f3   : > { %v2314_v54 = vpop.xlane.xlu0 %2313  ;;  %v2310_v27 = vpop.xlane.xlu1 %2309 }
 0x8f5   : > { %v6377_v56 = vpop.eup %6376 }
 0x8f6   : > { %v2342_v42 = vmul.f32 %v6377_v56, %v7888_v43  ;;  %v6379_v16 = vpop.eup %6378  ;;  %v6122_v43 = vld [vmem:[%s9195_s2 + $0x28] sm:$0xff]  }
 0x8f7   : > { %v2316_v57 = vpop.xlane.xlu0 %2315  ;;  %v2322_v47 = vpop.xlane.xlu1 %2321 }
 0x8f8   : > { %v2357_v1 = vpack.c.bf16 %v2342_v42, %v2341_v11 }
 0x8f9   : > { %3014 = vrot.lane.b32.xlu0 %v9262_v61, %s6681_s23  ;;  %v6381_v15 = vpop.eup %6380  ;;  %v2344_v61 = vmul.f32 %v6379_v16, %v7884_v30 }
 0x8fa   : > { %5914 = vmatprep.mubr.bf16.mxu1 %v2357_v1  ;;  %v6383_v33 = vpop.eup %6382  ;;  %v2345_v48 = vmul.f32 %v6381_v15, %v7896_v23 }
 0x8fb   : > { %v2312_v18 = vpop.xlane.xlu0 %2311  ;;  %v2318_v12 = vpop.xlane.xlu1 %2317  ;;  %v2346_v6 = vmul.f32 %v6383_v33, %v7898_v8 }
 0x8fc   : > { %6390 = vrcp.f32 %v2312_v18  ;;  %v6385_v63 = vpop.eup %6384 }
 0x8fd   : > { %6392 = vrcp.f32 %v2310_v27  ;;  %v2343_v31 = vmul.f32 %v6385_v63, %v7875_v26  ;;  %v6387_v51 = vpop.eup %6386  ;;  %v2359_v30 = vpack.c.bf16 %v2346_v6, %v2345_v48 }
 0x8fe   : > { %6394 = vrcp.f32 %v2316_v57  ;;  %v6389_v32 = vpop.eup %6388  ;;  %v2348_v8 = vmul.f32 %v6387_v51, %v7902_v36 }
 0x8ff   : > { %v2368_v25 = vpop.permute.xlu0 %2367  ;;  %v2366_v29 = vpop.permute.xlu1 %2365  ;;  %6396 = vrcp.f32 %v2314_v54  ;;  %v2358_v45 = vpack.c.bf16 %v2344_v61, %v2343_v31  ;;  %v2347_v9 = vmul.f32 %v6389_v32, %v7892_v38 }
 0x900   : > { %5910 = vmatprep.subr.bf16.mxu1 %v2368_v25  ;;  %6398 = vrcp.f32 %v2318_v12 }
 0x901   : > { %5911 = vmatpush3.bf16.msra.mxu1 %v2368_v25  ;;  %v2360_v0 = vpack.c.bf16 %v2348_v8, %v2347_v9 }
 0x902   : > { %5912 = vmatprep.subr.bf16.mxu1 %v2366_v29 }
 0x905   : > { %5913 = vmatpush3.bf16.msra.mxu1 %v2366_v29 }
 0x906   : > { %5930 = vmatprep.subr.bf16.mxu1 %v6122_v43 }
 0x908   : > { %5915 = vmatmul.mubr.bf16.vlgmr.msra.gmra.mxu1 %v2358_v45 }
 0x909   : > { %v6391_v55 = vpop.eup %6390  ;;  %5918 = vmatprep.mubr.bf16.mxu1 %v2359_v30  ;;  %5931 = vmatpush3.bf16.msra.mxu1 %v6122_v43 }
 0x90a   : > { %v6393_v23 = vpop.eup %6392  ;;  %5932 = vmatprep.subr.bf16.mxu1 %v6123_v4  ;;  %v2350_v26 = vmul.f32 %v6391_v55, %v7917_v14 }
 0x90b   : > { %v2349_v19 = vmul.f32 %v6393_v23, %v7907_v37  ;;  %v6395_v7 = vpop.eup %6394 }
 0x90c   : > { %v6397_v27 = vpop.eup %6396  ;;  %v2352_v40 = vmul.f32 %v6395_v7, %v7911_v46 }
 0x90d   : > { %5933 = vmatpush3.bf16.msra.mxu1 %v6123_v4  ;;  %v2361_v54 = vpack.c.bf16 %v2350_v26, %v2349_v19  ;;  %v2351_v56 = vmul.f32 %v6397_v27, %v7905_v13  ;;  %v6399_v1 = vpop.eup %6398 }
 0x90e   : > { %v2353_v13 = vmul.f32 %v6399_v1, %v7919_v35 }
 0x90f   : > { %v2362_v57 = vpack.c.bf16 %v2352_v40, %v2351_v56 }
 0x910   : > { %5919 = vmatmul.mubr.bf16.gmra.mxu1 %v2360_v0 }
 0x911   : > { %5922 = vmatprep.mubr.bf16.mxu1 %v2361_v54 }
 0x918   : > { %5923 = vmatmul.mubr.bf16.gmra.mxu1 %v2362_v57 }
 0x930   : > { %v2320_v36 = vpop.xlane.xlu0 %2319  ;;  %v2861_v14 = vpop.xlane.xlu1 %2860 }
 0x931   : > { %6400 = vrcp.f32 %v2320_v36  ;;  %v2888_v45 = vsub.f32 %v7934_v53, %v2861_v14 }
 0x932   : > { %6402 = vrcp.f32 %v2322_v47 }
 0x933   : > { %v2908_v32 = vmul.f32 1.442695, %v2888_v45 }
 0x934   : > { %v2324_v38 = vpop.xlane.xlu0 %2323  ;;  %v8059_v37 = vpop.xlane.xlu1 %2880 }
 0x935   : > { %6404 = vrcp.f32 %v2324_v38 }
 0x938   : > { %v2853_v11 = vpop.xlane.xlu0 %2852  ;;  %v8061_v42 = vpop.permute.xlu1 %3018 }
 0x939   : > { %5982 = vmatprep.subr.bf16.mxu1 %v8061_v42  ;;  %v2884_v47 = vsub.f32 %v7950_v24, %v2853_v11 }
 0x93b   : > { %v2900_v6 = vmul.f32 1.442695, %v2884_v47 }
 0x93c   : > { %v2855_v46 = vpop.xlane.xlu0 %2854 }
 0x93d   : > { %v2885_v31 = vsub.f32 %v7956_v44, %v2855_v46  ;;  %v8111_v46 = vpop.f32.mrf.mxu1 }
 0x93e   : > { %v6401_v18 = vpop.eup %6400 }
 0x93f   : > { %v2354_v12 = vmul.f32 %v6401_v18, %v7929_v20  ;;  %v6403_v15 = vpop.eup %6402  ;;  %v2902_v4 = vmul.f32 1.442695, %v2885_v31 }
 0x940   : > { %v2857_v16 = vpop.xlane.xlu0 %2856  ;;  %v2355_v43 = vmul.f32 %v6403_v15, %v7913_v59 }
 0x941   : > { %v2886_v25 = vsub.f32 %v7962_v52, %v2857_v16  ;;  %v2363_v33 = vpack.c.bf16 %v2354_v12, %v2353_v13  ;;  %v8116_v13 = vpop.f32.mrf.mxu1 }
 0x942   : > { %v6405_v63 = vpop.eup %6404 }
 0x943   : > { %v2904_v29 = vmul.f32 1.442695, %v2886_v25  ;;  %5926 = vmatprep.mubr.bf16.mxu1 %v2363_v33  ;;  %v2356_v48 = vmul.f32 %v6405_v63, %v7938_v22 }
 0x944   : > { %v2859_v61 = vpop.xlane.xlu0 %2858 }
 0x945   : > { %6406 = vpow2.f32 %v2904_v29  ;;  %v2887_v35 = vsub.f32 %v7968_v21, %v2859_v61  ;;  %v2364_v20 = vpack.c.bf16 %v2356_v48, %v2355_v43 }
 0x946   : > { %6408 = vpow2.f32 %v2900_v6 }
 0x947   : > { %5927 = vmatmul.mubr.bf16.gmra.mxu1 %v2364_v20  ;;  %v2906_v52 = vmul.f32 1.442695, %v2887_v35 }
 0x948   : > { %v2863_v24 = vpop.xlane.xlu0 %2862 }
 0x949   : > { %6410 = vpow2.f32 %v2906_v52  ;;  %v2889_v59 = vsub.f32 %v7976_v60, %v2863_v24 }
 0x94a   : > { %6412 = vpow2.f32 %v2902_v4 }
 0x94b   : > { %v2910_v55 = vmul.f32 1.442695, %v2889_v59 }
 0x94c   : > { %v2865_v51 = vpop.xlane.xlu0 %2864 }
 0x94d   : > { %v2890_v22 = vsub.f32 %v7984_v62, %v2865_v51 }
 0x94f   : > { %v2912_v30 = vmul.f32 1.442695, %v2890_v22 }
 0x950   : > { %v2867_v21 = vpop.xlane.xlu0 %2866 }
 0x951   : > { %6414 = vpow2.f32 %v2912_v30  ;;  %v2891_v44 = vsub.f32 %v7992_v28, %v2867_v21 }
 0x952   : > { %v8076_v23 = vpop.eup %6406  ;;  %6416 = vpow2.f32 %v2908_v32 }
 0x953   : > { %2936 = vadd.xlane.f32.xlu0 %v8076_v23  ;;  %6418 = vpow2.f32 %v2910_v55  ;;  %v2914_v53 = vmul.f32 1.442695, %v2891_v44  ;;  %v8079_v8 = vpop.eup %6408 }
 0x954   : > { %v2869_v0 = vpop.xlane.xlu0 %2868 }
 0x955   : > { %6420 = vpow2.f32 %v2914_v53  ;;  %v2892_v40 = vsub.f32 %v8000_v10, %v2869_v0  ;;  %v3017_v0 = vpop.permute.xlu1 %3016 }
 0x956   : > { %v8082_v60 = vpop.eup %6410 }
 0x957   : > { %2932 = vadd.xlane.f32.xlu0 %v8079_v8  ;;  %v8085_v62 = vpop.eup %6412  ;;  %v2916_v57 = vmul.f32 1.442695, %v2892_v40 }
 0x958   : > { %v2871_v7 = vpop.xlane.xlu0 %2870 }
 0x959   : > { %v2893_v14 = vsub.f32 %v8006_v17, %v2871_v7  ;;  %6422 = vpow2.f32 %v2916_v57 }
 0x95b   : > { %2938 = vadd.xlane.f32.xlu0 %v8082_v60  ;;  %v2918_v1 = vmul.f32 1.442695, %v2893_v14 }
 0x95c   : > { %v2873_v54 = vpop.xlane.xlu0 %2872 }
 0x95d   : > { %v2894_v36 = vsub.f32 %v8012_v3, %v2873_v54  ;;  %v2898_v3 = vsub.f32 %v7943_v58, %v8059_v37 }
 0x95e   : > { %v8087_v26 = vpop.eup %6414 }
 0x95f   : > { %2934 = vadd.xlane.f32.xlu0 %v8085_v62  ;;  %2944 = vadd.xlane.f32.xlu1 %v8087_v26  ;;  %v8091_v28 = vpop.eup %6416  ;;  %v2920_v11 = vmul.f32 1.442695, %v2894_v36  ;;  %v2928_v16 = vmul.f32 1.442695, %v2898_v3  ;;  %v3013_v36 = vpop.permute.xlu1 %3012 }
 0x960   : > { %v8093_v9 = vpop.eup %6418  ;;  %v2875_v27 = vpop.xlane.xlu0 %2874 }
 0x961   : > { %6424 = vpow2.f32 %v2920_v11 }
 0x962   : > { %v8097_v19 = vpop.eup %6420  ;;  %6426 = vpow2.f32 %v2918_v1 }
 0x963   : > { %2942 = vadd.xlane.f32.xlu0 %v8093_v9  ;;  %2940 = vadd.xlane.f32.xlu1 %v8091_v28 }
 0x964   : > { %v2877_v56 = vpop.xlane.xlu0 %2876 }
 0x966   : > { %v8121_v47 = vpop.eup %6422 }
 0x967   : > { %2946 = vadd.xlane.f32.xlu1 %v8097_v19 }
 0x968   : > { %v2879_v38 = vpop.xlane.xlu0 %2878 }
 0x969   : > { %v2897_v10 = vsub.f32 %v8030_v50, %v2879_v38 }
 0x96b   : > { %v2926_v12 = vmul.f32 1.442695, %v2897_v10 }
 0x96c   : > { %v2883_v18 = vpop.xlane.xlu0 %2882 }
 0x96e   : > { %v8126_v50 = vpop.eup %6424 }
 0x978   : > { %3006 = vrot.lane.b32.xlu1 %v9296_v34, %s6681_s23  ;;  %v2895_v34 = vsub.f32 %v8018_v41, %v2875_v27  ;;  %v2899_v41 = vsub.f32 %v8036_v39, %v2883_v18  ;;  %v8131_v39 = vpop.eup %6426  ;;  %v3015_v27 = vpop.permute.xlu0 %3014 }
 0x979   : > { %3008 = vrot.lane.b32.xlu0 %v9293_v5, %s6681_s23  ;;  %v2896_v5 = vsub.f32 %v8024_v49, %v2877_v56  ;;  %v8119_v49 = vpop.f32.mrf.mxu1 }
 0x97a   : > { %v2930_v15 = vmul.f32 1.442695, %v2899_v41 }
 0x97b   : > { %v2924_v17 = vmul.f32 1.442695, %v2896_v5  ;;  %v8124_v58 = vpop.f32.mrf.mxu1 }
 0x97c   : > { %3004 = vrot.lane.b32.xlu1 %v9295_v2, %s6681_s23  ;;  %v2922_v2 = vmul.f32 1.442695, %v2895_v34  ;;  %v3011_v34 = vpop.permute.xlu1 %3010 }
 0x97d   : > { %v8128_v37 = vpop.f32.mrf.mxu1 }
 0x97e   : > { %6428 = vpow2.f32 %v2922_v2 }
 0x97f   : > { %6430 = vpow2.f32 %v2924_v17  ;;  %v8135_v33 = vpop.f32.mrf.mxu1 }
 0x980   : > { %6432 = vpow2.f32 %v2926_v12 }
 0x981   : > { %6434 = vpow2.f32 %v2928_v16  ;;  %v8143_v61 = vpop.f32.mrf.mxu1 }
 0x982   : > { %6436 = vpow2.f32 %v2930_v15 }
 0x983   : > { %v8151_v6 = vpop.f32.mrf.mxu1 }
 0x985   : > { %v8155_v35 = vpop.f32.mrf.mxu1 }
 0x987   : > { %v8157_v20 = vpop.f32.mrf.mxu1 }
 0x989   : > { %v8159_v31 = vpop.f32.mrf.mxu1 }
 0x98b   : > { %v8133_v25 = vpop.eup %6428  ;;  %v8161_v24 = vpop.f32.mrf.mxu1 }
 0x98c   : > { %v8139_v63 = vpop.eup %6430 }
 0x98d   : > { %v8141_v29 = vpop.eup %6432  ;;  %v8163_v52 = vpop.f32.mrf.mxu1 }
 0x98e   : > { %v8147_v43 = vpop.eup %6434 }
 0x98f   : > { %v8149_v48 = vpop.eup %6436  ;;  %v8165_v45 = vpop.f32.mrf.mxu1 }
 0x991   : > { %v8167_v4 = vpop.f32.mrf.mxu1 }
 0x993   : > { %v8169_v51 = vpop.f32.mrf.mxu1 }
 0x998   : > { %2948 = vadd.xlane.f32.xlu0 %v8121_v47 }
 0x99c   : > { %2952 = vadd.xlane.f32.xlu0 %v8126_v50 }
 0x9a0   : > { %2954 = vadd.xlane.f32.xlu0 %v8133_v25  ;;  %2950 = vadd.xlane.f32.xlu1 %v8131_v39 }
 0x9a4   : > { %2958 = vadd.xlane.f32.xlu0 %v8141_v29  ;;  %2956 = vadd.xlane.f32.xlu1 %v8139_v63 }
 0x9a8   : > { %2962 = vadd.xlane.f32.xlu0 %v8149_v48  ;;  %2960 = vadd.xlane.f32.xlu1 %v8147_v43 }
 0x9c8   : > { %v5916_v59 = vpop.f32.mrf.mxu1 }
 0x9ca   : > { %v2423_v22 = vpop.f32.mrf.mxu1 }
 0x9cc   : > { %v5917_v30 = vpop.f32.mrf.mxu1 }
 0x9cd   : > { %v2487_v55 = vpack.c.bf16 %v5917_v30, %v5916_v59 }
 0x9ce   : > { %v2426_v32 = vpop.f32.mrf.mxu1 }
 0x9cf   : > { %v2486_v21 = vpack.c.bf16 %v2426_v32, %v2423_v22 }
 0x9d0   : > { %v5920_v44 = vpop.f32.mrf.mxu1 }
 0x9d1   : > { %5934 = vmatprep.mubr.msk.bf16.mxu1 %vm789_vm0, %v2486_v21 }
 0x9d2   : > { %v2439_v53 = vpop.f32.mrf.mxu1  ;;  %5935 = vmatmul.mubr.msk.bf16.vlgmr.msra.gmra.mxu1 %vm789_vm0, %v2487_v55 }
 0x9d3   : > { %5983 = vmatpush3.bf16.msra.mxu1 %v8061_v42 }
 0x9d4   : > { %5984 = vmatprep.subr.bf16.mxu1 %v3017_v0  ;;  %v5921_v7 = vpop.f32.mrf.mxu1 }
 0x9d5   : > { %v2489_v56 = vpack.c.bf16 %v5921_v7, %v5920_v44 }
 0x9d6   : > { %v2442_v54 = vpop.f32.mrf.mxu1 }
 0x9d7   : > { %v2488_v40 = vpack.c.bf16 %v2442_v54, %v2439_v53  ;;  %5985 = vmatpush3.bf16.msra.mxu1 %v3017_v0 }
 0x9d8   : > { %5986 = vmatprep.subr.bf16.mxu1 %v3015_v27  ;;  %v5924_v57 = vpop.f32.mrf.mxu1 }
 0x9d9   : > { %5938 = vmatprep.mubr.msk.bf16.mxu1 %vm789_vm0, %v2488_v40 }
 0x9da   : > { %v2455_v14 = vpop.f32.mrf.mxu1  ;;  %5939 = vmatmul.mubr.msk.bf16.gmra.mxu1 %vm789_vm0, %v2489_v56 }
 0x9db   : > { %5987 = vmatpush3.bf16.msra.mxu1 %v3015_v27 }
 0x9dc   : > { %5988 = vmatprep.subr.bf16.mxu1 %v3013_v36  ;;  %v2937_v38 = vpop.xlane.xlu0 %2936  ;;  %v5925_v11 = vpop.f32.mrf.mxu1 }
 0x9dd   : > { %v2491_v5 = vpack.c.bf16 %v5925_v11, %v5924_v57 }
 0x9de   : > { %v2458_v42 = vpop.f32.mrf.mxu1 }
 0x9df   : > { %v2490_v1 = vpack.c.bf16 %v2458_v42, %v2455_v14  ;;  %5989 = vmatpush3.bf16.msra.mxu1 %v3013_v36 }
 0x9e0   : > { %5990 = vmatprep.subr.bf16.mxu1 %v3011_v34  ;;  %v2933_v2 = vpop.xlane.xlu0 %2932 }
 0x9e1   : > { %5942 = vmatprep.mubr.msk.bf16.mxu1 %vm789_vm0, %v2490_v1 }
 0x9e2   : > { %5943 = vmatmul.mubr.msk.bf16.gmra.mxu1 %vm789_vm0, %v2491_v5 }
 0x9e3   : > { %5991 = vmatpush3.bf16.msra.mxu1 %v3011_v34 }
 0x9e4   : > { %v2939_v10 = vpop.xlane.xlu0 %2938 }
 0x9e8   : > { %v2935_v18 = vpop.xlane.xlu0 %2934  ;;  %v2945_v3 = vpop.xlane.xlu1 %2944 }
 0x9e9   : > { %6438 = vrcp.f32 %v2935_v18 }
 0x9ea   : > { %6440 = vrcp.f32 %v2933_v2 }
 0x9eb   : > { %6442 = vrcp.f32 %v2939_v10 }
 0x9ec   : > { %v2943_v17 = vpop.xlane.xlu0 %2942  ;;  %v2941_v12 = vpop.xlane.xlu1 %2940 }
 0x9ed   : > { %6444 = vrcp.f32 %v2943_v17 }
 0x9ee   : > { %6446 = vrcp.f32 %v2941_v12 }
 0x9ef   : > { %6448 = vrcp.f32 %v2937_v38 }
 0x9f0   : > { %v3009_v41 = vpop.permute.xlu0 %3008  ;;  %v2947_v16 = vpop.xlane.xlu1 %2946 }
 0x9f1   : > { %5992 = vmatprep.subr.bf16.mxu1 %v3009_v41  ;;  %6450 = vrcp.f32 %v2947_v16 }
 0x9f2   : > { %5993 = vmatpush3.bf16.msra.mxu1 %v3009_v41  ;;  %6452 = vrcp.f32 %v2945_v3 }
 0x9f4   : > { %v3007_v15 = vpop.permute.xlu1 %3006 }
 0x9f5   : > { %5994 = vmatprep.subr.bf16.mxu1 %v3007_v15 }
 0x9f6   : > { %5995 = vmatpush3.bf16.msra.mxu1 %v3007_v15  ;;  %v6439_v30 = vpop.eup %6438 }
 0x9f7   : > { %v6441_v21 = vpop.eup %6440  ;;  %v2981_v44 = vmul.f32 %v6439_v30, %v8085_v62 }
 0x9f8   : > { %v3005_v59 = vpop.permute.xlu1 %3004  ;;  %v2980_v7 = vmul.f32 %v6441_v21, %v8079_v8  ;;  %v6443_v54 = vpop.eup %6442 }
 0x9f9   : > { %5996 = vmatprep.subr.bf16.mxu1 %v3005_v59  ;;  %v2983_v14 = vmul.f32 %v6443_v54, %v8082_v60 }
 0x9fa   : > { %5997 = vmatpush3.bf16.msra.mxu1 %v3005_v59  ;;  %v6445_v40 = vpop.eup %6444  ;;  %v2996_v56 = vpack.c.bf16 %v2981_v44, %v2980_v7 }
 0x9fb   : > { %v6447_v57 = vpop.eup %6446  ;;  %v2985_v38 = vmul.f32 %v6445_v40, %v8093_v9 }
 0x9fc   : > { %v6449_v36 = vpop.eup %6448  ;;  %v2984_v62 = vmul.f32 %v6447_v57, %v8091_v28  ;;  %v9300_v57 = vld [vmem:[#allocation16_spill] sm:$0xff] }
 0x9fd   : > { %v2982_v11 = vmul.f32 %v6449_v36, %v8076_v23  ;;  %v6124_v23 = vld [vmem:[%s9195_s2 + $0x38] sm:$0xff]   ;;  %v1942_v36 = vadd.f32 %v8116_v13, %v9300_v57 }
 0x9fe   : > { %v6451_v42 = vpop.eup %6450  ;;  %v2998_v34 = vpack.c.bf16 %v2985_v38, %v2984_v62  ;;  %6014 = vmatprep.subr.bf16.mxu1 %v6124_v23  ;;  %v9301_v62 = vld [vmem:[#allocation2_spill] sm:$0xff] }
 0x9ff   : > { %v2997_v8 = vpack.c.bf16 %v2983_v14, %v2982_v11  ;;  %v6453_v1 = vpop.eup %6452  ;;  %v2987_v5 = vmul.f32 %v6451_v42, %v8097_v19 }
 0xa00   : > { %v2986_v2 = vmul.f32 %v6453_v1, %v8087_v26 }
 0xa02   : > { %v2999_v10 = vpack.c.bf16 %v2987_v5, %v2986_v2 }
 0xa07   : > { %v5928_v22 = vpop.f32.mrf.mxu1 }
 0xa09   : > { %v2471_v32 = vpop.f32.mrf.mxu1 }
 0xa0b   : > { %v5929_v55 = vpop.f32.mrf.mxu1 }
 0xa0c   : > { %v2493_v27 = vpack.c.bf16 %v5929_v55, %v5928_v22 }
 0xa0d   : > { %v2474_v53 = vpop.f32.mrf.mxu1 }
 0xa0e   : > { %v2492_v0 = vpack.c.bf16 %v2474_v53, %v2471_v32 }
 0xa10   : > { %5946 = vmatprep.mubr.msk.bf16.mxu1 %vm789_vm0, %v2492_v0 }
 0xa11   : > { %5947 = vmatmul.mubr.msk.bf16.gmra.mxu1 %vm789_vm0, %v2493_v27 }
 0xa12   : > { %5998 = vmatprep.mubr.bf16.mxu1 %v2996_v56 }
 0xa19   : > { %5999 = vmatmul.mubr.bf16.vlgmr.msra.gmra.mxu1 %v2997_v8  ;;  %v9302_v8 = vld [vmem:[#allocation4_spill] sm:$0xff] }
 0xa1a   : > { %6002 = vmatprep.mubr.bf16.mxu1 %v2998_v34  ;;  %6015 = vmatpush3.bf16.msra.mxu1 %v6124_v23  ;;  %v1945_v42 = vadd.f32 %v8124_v58, %v9302_v8 }
 0xa21   : > { %v2949_v18 = vpop.xlane.xlu0 %2948  ;;  %6003 = vmatmul.mubr.bf16.gmra.mxu1 %v2999_v10  ;;  %v9304_v10 = vld [vmem:[#allocation11_spill] sm:$0xff] }
 0xa25   : > { %v2953_v60 = vpop.xlane.xlu0 %2952 }
 0xa26   : > { %6454 = vrcp.f32 %v2953_v60 }
 0xa27   : > { %6456 = vrcp.f32 %v2949_v18  ;;  %v1958_v18 = vadd.f32 %v8135_v33, %v9304_v10 }
 0xa29   : > { %v2955_v28 = vpop.xlane.xlu0 %2954  ;;  %v2951_v9 = vpop.xlane.xlu1 %2950 }
 0xa2a   : > { %6458 = vrcp.f32 %v2955_v28  ;;  %v9305_v28 = vld [vmem:[#allocation13_spill] sm:$0xff] }
 0xa2b   : > { %6460 = vrcp.f32 %v2951_v9  ;;  %v1969_v9 = vadd.f32 %v8143_v61, %v9305_v28 }
 0xa2d   : > { %v2959_v3 = vpop.xlane.xlu0 %2958  ;;  %v2957_v19 = vpop.xlane.xlu1 %2956 }
 0xa2e   : > { %6462 = vrcp.f32 %v2959_v3  ;;  %v9306_v3 = vld [vmem:[#allocation7_spill] sm:$0xff] }
 0xa2f   : > { %6464 = vrcp.f32 %v2957_v19  ;;  %v1961_v19 = vadd.f32 %v8151_v6, %v9306_v3 }
 0xa31   : > { %v2963_v26 = vpop.xlane.xlu0 %2962  ;;  %v2961_v17 = vpop.xlane.xlu1 %2960 }
 0xa32   : > { %6466 = vrcp.f32 %v2963_v26 }
 0xa33   : > { %6468 = vrcp.f32 %v2961_v17  ;;  %v6455_v12 = vpop.eup %6454  ;;  %v9307_v17 = vld [vmem:[#allocation12_spill] sm:$0xff] }
 0xa34   : > { %v6457_v41 = vpop.eup %6456  ;;  %v2990_v59 = vmul.f32 %v6455_v12, %v8126_v50  ;;  %v1982_v12 = vadd.f32 %v8155_v35, %v9307_v17  ;;  %v9315_v17 = vmov 0  }
 0xa35   : > { %v2988_v30 = vmul.f32 %v6457_v41, %v8121_v47 }
 0xa37   : > { %v6459_v16 = vpop.eup %6458 }
 0xa38   : > { %v6461_v15 = vpop.eup %6460  ;;  %v2991_v22 = vmul.f32 %v6459_v16, %v8133_v25  ;;  %v9308_v16 = vld [vmem:[#allocation17_spill] sm:$0xff] }
 0xa39   : > { %v2989_v32 = vmul.f32 %v6461_v15, %v8131_v39  ;;  %v6125_v39 = vld [vmem:[%s9195_s2 + $0x30] sm:$0xff]   ;;  %v1974_v15 = vadd.f32 %v8157_v20, %v9308_v16 }
 0xa3a   : > { %v3001_v21 = vpack.c.bf16 %v2991_v22, %v2990_v59  ;;  %6016 = vmatprep.subr.bf16.mxu1 %v6125_v39  ;;  %v9309_v22 = vld [vmem:[#allocation18_spill] sm:$0xff] }
 0xa3b   : > { %v6463_v55 = vpop.eup %6462  ;;  %v3000_v44 = vpack.c.bf16 %v2989_v32, %v2988_v30  ;;  %6017 = vmatpush3.bf16.msra.mxu1 %v6125_v39  ;;  %v1985_v30 = vadd.f32 %v8159_v31, %v9309_v22  ;;  %v9314_v39 = vld [vmem:[#allocation23_spill] sm:$0xff] }
 0xa3c   : > { %v6465_v53 = vpop.eup %6464  ;;  %v2993_v0 = vmul.f32 %v6463_v55, %v8141_v29  ;;  %v9299_v29 = vld [vmem:[#allocation15_spill] sm:$0xff] }
 0xa3d   : > { %6006 = vmatprep.mubr.bf16.mxu1 %v3000_v44  ;;  %v2992_v7 = vmul.f32 %v6465_v53, %v8139_v63  ;;  %v1950_v63 = vadd.f32 %v8111_v46, %v9299_v29  ;;  %v9303_v46 = vld [vmem:[#allocation10_spill] sm:$0xff]  ;;  %v1993_v29 = vadd.f32 %v8169_v51, %v9314_v39 }
 0xa3e   : > { %6007 = vmatmul.mubr.bf16.gmra.mxu1 %v3001_v21  ;;  %v1966_v5 = vadd.f32 %v8128_v37, %v9303_v46  ;;  %v9310_v21 = vld [vmem:[#allocation19_spill] sm:$0xff] }
 0xa3f   : > { %v6467_v54 = vpop.eup %6466  ;;  %v3002_v27 = vpack.c.bf16 %v2993_v0, %v2992_v7  ;;  %v1977_v55 = vadd.f32 %v8161_v24, %v9310_v21  ;;  %v9311_v0 = vld [vmem:[#allocation20_spill] sm:$0xff] }
 0xa40   : > { %v6469_v40 = vpop.eup %6468  ;;  %v2995_v50 = vmul.f32 %v6467_v54, %v8149_v48  ;;  %v1998_v20 = vadd.f32 %v8163_v52, %v9311_v0  ;;  %v9312_v54 = vld [vmem:[#allocation21_spill] sm:$0xff] }
 0xa41   : > { %6010 = vmatprep.mubr.bf16.mxu1 %v3002_v27  ;;  %v2994_v47 = vmul.f32 %v6469_v40, %v8147_v43  ;;  %v1953_v43 = vadd.f32 %v8119_v49, %v9301_v62  ;;  %v1990_v27 = vadd.f32 %v8165_v45, %v9312_v54 }
 0xa43   : > { %v3003_v25 = vpack.c.bf16 %v2995_v50, %v2994_v47  ;;  %v9313_v50 = vld [vmem:[#allocation22_spill] sm:$0xff] }
 0xa44   : > { %v2001_v47 = vadd.f32 %v8167_v4, %v9313_v50 }
 0xa46   : > { %6011 = vmatmul.mubr.bf16.gmra.mxu1 %v3003_v25 }
 0xa92   : > { %v5936_v56 = vpop.f32.mrf.mxu1 }
 0xa93   : > { %v8206_v14 = vadd.f32 %v5936_v56, %v1950_v63 }
 0xa94   : > { %v2564_v48 = vpop.f32.mrf.mxu1 }
 0xa95   : > { %v8210_v38 = vadd.f32 %v2564_v48, %v1942_v36 }
 0xa96   : > { %v5937_v11 = vpop.f32.mrf.mxu1 }
 0xa97   : > { %v8214_v34 = vadd.f32 %v5937_v11, %v1953_v43 }
 0xa98   : > { %v2567_v1 = vpop.f32.mrf.mxu1 }
 0xa99   : > { %v8218_v2 = vadd.f32 %v2567_v1, %v1945_v42 }
 0xa9a   : > { %v5940_v13 = vpop.f32.mrf.mxu1 }
 0xa9b   : > { %v8222_v60 = vadd.f32 %v5940_v13, %v1966_v5 }
 0xa9c   : > { %v2580_v49 = vpop.f32.mrf.mxu1 }
 0xa9d   : > { %v8226_v23 = vadd.f32 %v2580_v49, %v1958_v18 }
 0xa9e   : > { %v5941_v58 = vpop.f32.mrf.mxu1 }
 0xa9f   : > { %v8230_v26 = vadd.f32 %v5941_v58, %v1969_v9 }
 0xaa0   : > { %v2583_v37 = vpop.f32.mrf.mxu1 }
 0xaa1   : > { %v8234_v41 = vadd.f32 %v2583_v37, %v1961_v19 }
 0xaa2   : > { %v5944_v33 = vpop.f32.mrf.mxu1 }
 0xaa3   : > { %v8238_v59 = vadd.f32 %v5944_v33, %v1982_v12  ;;  %v6662_v33 = vld [vmem:[%s6757_s18] sm:$0xff]  }
 0xaa4   : > { %v2596_v61 = vpop.f32.mrf.mxu1  ;;  %v3282_v16 = vunpack.c.l.bf16 %v6662_v33 }
 0xaa5   : > { %v8242_v32 = vadd.f32 %v2596_v61, %v1974_v15 }
 0xaa6   : > { %v5945_v6 = vpop.f32.mrf.mxu1 }
 0xaa7   : > { %v8246_v44 = vadd.f32 %v5945_v6, %v1985_v30  ;;  %v6663_v6 = vld [vmem:[%s6757_s18 + $0x8] sm:$0xff]  }
 0xaa8   : > { %v2599_v35 = vpop.f32.mrf.mxu1  ;;  %v3284_v21 = vunpack.c.l.bf16 %v6663_v6 }
 0xaa9   : > { %v8248_v53 = vadd.f32 %v2599_v35, %v1977_v55  ;;  %v3283_v35 = vunpack.c.h.bf16 %v6662_v33 }
 0xad1   : > { %v5948_v7 = vpop.f32.mrf.mxu1 }
 0xad2   : > { %v8254_v40 = vadd.f32 %v5948_v7, %v1998_v20  ;;  %v3285_v7 = vunpack.c.h.bf16 %v6663_v6 }
 0xad3   : > { %v2612_v31 = vpop.f32.mrf.mxu1 }
 0xad4   : > { %v8258_v25 = vadd.f32 %v2612_v31, %v1990_v27 }
 0xad5   : > { %v5949_v24 = vpop.f32.mrf.mxu1 }
 0xad6   : > { %v8262_v63 = vadd.f32 %v5949_v24, %v2001_v47 }
 0xad7   : > { %v2615_v56 = vpop.f32.mrf.mxu1 }
 0xad8   : > { %v8264_v52 = vadd.f32 %v2615_v56, %v1993_v29 }
 0xad9   : > { %v6000_v57 = vpop.f32.mrf.mxu1 }
 0xadb   : > { %v3062_v36 = vpop.f32.mrf.mxu1 }
 0xadd   : > { %v6001_v45 = vpop.f32.mrf.mxu1 }
 0xade   : > { %v3126_v43 = vpack.c.bf16 %v6001_v45, %v6000_v57 }
 0xadf   : > { %v3065_v48 = vpop.f32.mrf.mxu1 }
 0xae0   : > { %v3125_v62 = vpack.c.bf16 %v3065_v48, %v3062_v36 }
 0xae1   : > { %v6004_v11 = vpop.f32.mrf.mxu1 }
 0xae2   : > { %6018 = vmatprep.mubr.msk.bf16.mxu1 %vm789_vm0, %v3125_v62 }
 0xae3   : > { %v3078_v4 = vpop.f32.mrf.mxu1  ;;  %6019 = vmatmul.mubr.msk.bf16.vlgmr.msra.gmra.mxu1 %vm789_vm0, %v3126_v43 }
 0xae5   : > { %v6005_v8 = vpop.f32.mrf.mxu1 }
 0xae6   : > { %v3128_v1 = vpack.c.bf16 %v6005_v8, %v6004_v11 }
 0xae7   : > { %v3081_v42 = vpop.f32.mrf.mxu1 }
 0xae8   : > { %v3127_v51 = vpack.c.bf16 %v3081_v42, %v3078_v4  ;;  %v6666_v4 = vld [vmem:[%s6757_s18 + $0x20] sm:$0xff]  }
 0xae9   : > { %v3290_v8 = vunpack.c.l.bf16 %v6666_v4 }
 0xaea   : > { %6022 = vmatprep.mubr.msk.bf16.mxu1 %vm789_vm0, %v3127_v51 }
 0xaeb   : > { %6023 = vmatmul.mubr.msk.bf16.gmra.mxu1 %vm789_vm0, %v3128_v1 }
 0xafe   : > { %v6008_v46 = vpop.f32.mrf.mxu1 }
 0xb00   : > { %v3094_v5 = vpop.f32.mrf.mxu1 }
 0xb02   : > { %v6009_v13 = vpop.f32.mrf.mxu1 }
 0xb03   : > { %v3130_v49 = vpack.c.bf16 %v6009_v13, %v6008_v46  ;;  %v6667_v46 = vld [vmem:[%s6757_s18 + $0x28] sm:$0xff]  }
 0xb04   : > { %v3097_v10 = vpop.f32.mrf.mxu1 }
 0xb05   : > { %v3129_v18 = vpack.c.bf16 %v3097_v10, %v3094_v5  ;;  %v3292_v5 = vunpack.c.l.bf16 %v6667_v46  ;;  %v3291_v10 = vunpack.c.h.bf16 %v6666_v4 }
 0xb06   : > { %v6012_v28 = vpop.f32.mrf.mxu1 }
 0xb07   : > { %6026 = vmatprep.mubr.msk.bf16.mxu1 %vm789_vm0, %v3129_v18 }
 0xb08   : > { %v3110_v9 = vpop.f32.mrf.mxu1  ;;  %6027 = vmatmul.mubr.msk.bf16.gmra.mxu1 %vm789_vm0, %v3130_v49 }
 0xb0a   : > { %v6013_v58 = vpop.f32.mrf.mxu1 }
 0xb0b   : > { %v3132_v37 = vpack.c.bf16 %v6013_v58, %v6012_v28  ;;  %v3293_v28 = vunpack.c.h.bf16 %v6667_v46  ;;  %v6137_v46 = vld [vmem:[%s9196_s3 + $0xcc] ss:$16 sps:$4 sm:$0xff]  }
 0xb0c   : > { %v3113_v3 = vpop.f32.mrf.mxu1 }
 0xb0d   : > { %v3131_v19 = vpack.c.bf16 %v3113_v3, %v3110_v9 }
 0xb0f   : > { %6030 = vmatprep.mubr.msk.bf16.mxu1 %vm789_vm0, %v3131_v19 }
 0xb10   : > { %6031 = vmatmul.mubr.msk.bf16.gmra.mxu1 %vm789_vm0, %v3132_v37 }
 0xb11   : > { %3859 = vmatprep.mubr.bf16.mxu1 %v9315_v17 }
 0xba3   : > { %v6020_v12 = vpop.f32.mrf.mxu1 }
 0xba4   : > { %v3268_v30 = vadd.f32 %v6020_v12, %v8206_v14  ;;  %v6664_v14 = vld [vmem:[%s6757_s18 + $0x10] sm:$0xff]  }
 0xba5   : > { %v3203_v15 = vpop.f32.mrf.mxu1  ;;  %v3286_v50 = vunpack.c.l.bf16 %v6664_v14  ;;  %v3287_v36 = vunpack.c.h.bf16 %v6664_v14 }
 0xba6   : > { %v3266_v61 = vadd.f32 %v3203_v15, %v8210_v38  ;;  %v8283_v27 = vadd.f32 %v3284_v21, %v3268_v30 }
 0xba7   : > { %v6021_v22 = vpop.f32.mrf.mxu1 }
 0xba8   : > { %v8279_v55 = vadd.f32 %v3282_v16, %v3266_v61  ;;  %v3269_v38 = vadd.f32 %v6021_v22, %v8214_v34 }
 0xba9   : > { %v3206_v0 = vpop.f32.mrf.mxu1 }
 0xbaa   : > { %v3267_v20 = vadd.f32 %v3206_v0, %v8218_v2  ;;  %3314 = vadd.xlane.f32.xlu1 %v8279_v55  ;;  %v6665_v2 = vld [vmem:[%s6757_s18 + $0x18] sm:$0xff]   ;;  %v8293_v56 = vadd.f32 %v3285_v7, %v3269_v38 }
 0xbab   : > { %v6024_v54 = vpop.f32.mrf.mxu1  ;;  %v3288_v39 = vunpack.c.l.bf16 %v6665_v2  ;;  %v3289_v43 = vunpack.c.h.bf16 %v6665_v2  ;;  %v6131_v7 = vld [vmem:[%s9196_s3 + $0xec] ss:$16 sps:$4 sm:$0xff]  }
 0xbac   : > { %v8286_v31 = vadd.f32 %v3283_v35, %v3267_v20  ;;  %v3272_v57 = vadd.f32 %v6024_v54, %v8222_v60  ;;  %v6128_v20 = vld [vmem:[%s9196_s3 + $0xe4] ss:$16 sps:$4 sm:$0xff]   ;;  %3827 = vmatprep.subr.bf16.mxu1 %v6131_v7  ;;  %v6167_v7 = vld [vmem:[%s9196_s3 + $0x2c] ss:$16 sps:$4 sm:$0xff]  }
 0xbad   : > { %v3219_v47 = vpop.f32.mrf.mxu1  ;;  %3714 = vmatprep.subr.bf16.mxu0 %v6128_v20 }
 0xbae   : > { %v3270_v24 = vadd.f32 %v3219_v47, %v8226_v23  ;;  %3318 = vadd.xlane.f32.xlu1 %v8283_v27  ;;  %3316 = vadd.xlane.f32.xlu0 %v8286_v31  ;;  %v8301_v23 = vadd.f32 %v3288_v39, %v3272_v57 }
 0xbaf   : > { %v6025_v29 = vpop.f32.mrf.mxu1 }
 0xbb0   : > { %v8296_v34 = vadd.f32 %v3286_v50, %v3270_v24  ;;  %v3273_v62 = vadd.f32 %v6025_v29, %v8230_v26 }
 0xbb1   : > { %v3222_v45 = vpop.f32.mrf.mxu1 }
 0xbb2   : > { %v3271_v48 = vadd.f32 %v3222_v45, %v8234_v41  ;;  %3320 = vadd.xlane.f32.xlu0 %v8293_v56  ;;  %3322 = vadd.xlane.f32.xlu1 %v8296_v34  ;;  %v8308_v60 = vadd.f32 %v3289_v43, %v3273_v62 }
 0xbb4   : > { %v8304_v11 = vadd.f32 %v3287_v36, %v3271_v48 }
 0xbb6   : > { %3326 = vadd.xlane.f32.xlu1 %v8301_v23  ;;  %3324 = vadd.xlane.f32.xlu0 %v8304_v11 }
 0xbba   : > { %3328 = vadd.xlane.f32.xlu0 %v8308_v60 }
 0xbc8   : > { %v6028_v41 = vpop.f32.mrf.mxu1 }
 0xbc9   : > { %v3276_v26 = vadd.f32 %v6028_v41, %v8238_v59  ;;  %v6668_v59 = vld [vmem:[%s6757_s18 + $0x30] sm:$0xff]  }
 0xbca   : > { %v3235_v42 = vpop.f32.mrf.mxu1  ;;  %v3294_v19 = vunpack.c.l.bf16 %v6668_v59 }
 0xbcb   : > { %v3274_v51 = vadd.f32 %v3235_v42, %v8242_v32  ;;  %v8319_v58 = vadd.f32 %v3292_v5, %v3276_v26 }
 0xbcc   : > { %v6029_v1 = vpop.f32.mrf.mxu1 }
 0xbcd   : > { %v8315_v13 = vadd.f32 %v3290_v8, %v3274_v51  ;;  %v3277_v32 = vadd.f32 %v6029_v1, %v8246_v44  ;;  %v3295_v44 = vunpack.c.h.bf16 %v6668_v59 }
 0xbce   : > { %v3238_v18 = vpop.f32.mrf.mxu1 }
 0xbcf   : > { %v3275_v49 = vadd.f32 %v3238_v18, %v8248_v53  ;;  %3330 = vadd.xlane.f32.xlu1 %v8315_v13  ;;  %v6669_v53 = vld [vmem:[%s6757_s18 + $0x38] sm:$0xff]   ;;  %v8329_v15 = vadd.f32 %v3293_v28, %v3277_v32 }
 0xbd0   : > { %v6032_v9 = vpop.f32.mrf.mxu1  ;;  %v3296_v33 = vunpack.c.l.bf16 %v6669_v53  ;;  %v3297_v35 = vunpack.c.h.bf16 %v6669_v53  ;;  %v6143_v32 = vld [vmem:[%s9196_s3 + $0xac] ss:$16 sps:$4 sm:$0xff]   ;;  %v6144_v53 = vld [vmem:[%s9196_s3 + $0x80] ss:$16 sps:$4 sm:$0xff]  }
 0xbd1   : > { %v8322_v3 = vadd.f32 %v3291_v10, %v3275_v49  ;;  %v3280_v61 = vadd.f32 %v6032_v9, %v8254_v40  ;;  %v6132_v10 = vld [vmem:[%s9196_s3 + $0xc0] ss:$16 sps:$4 sm:$0xff]   ;;  %v6140_v9 = vld [vmem:[%s9196_s3 + $0xa4] ss:$16 sps:$4 sm:$0xff]  }
 0xbd2   : > { %v3251_v37 = vpop.f32.mrf.mxu1 }
 0xbd3   : > { %v3278_v12 = vadd.f32 %v3251_v37, %v8258_v25  ;;  %3334 = vadd.xlane.f32.xlu1 %v8319_v58  ;;  %3332 = vadd.xlane.f32.xlu0 %v8322_v3  ;;  %v8337_v25 = vadd.f32 %v3296_v33, %v3280_v61  ;;  %v6146_v37 = vld [vmem:[%s9196_s3 + $0x84] ss:$16 sps:$4 sm:$0xff]   ;;  %v6147_v33 = vld [vmem:[%s9196_s3 + $0x88] ss:$16 sps:$4 sm:$0xff]   ;;  %v6155_v61 = vld [vmem:[%s9196_s3 + $0x6c] ss:$16 sps:$4 sm:$0xff]  }
 0xbd4   : > { %v6033_v16 = vpop.f32.mrf.mxu1 }
 0xbd5   : > { %v8332_v22 = vadd.f32 %v3294_v19, %v3278_v12  ;;  %v3281_v21 = vadd.f32 %v6033_v16, %v8262_v63  ;;  %v6129_v63 = vld [vmem:[%s9196_s3 + $0xe8] ss:$16 sps:$4 sm:$0xff]   ;;  %v6138_v19 = vld [vmem:[%s9196_s3 + $0xa0] ss:$16 sps:$4 sm:$0xff]   ;;  %v6149_v12 = vld [vmem:[%s9196_s3 + $0x8c] ss:$16 sps:$4 sm:$0xff]  }
 0xbd6   : > { %v3254_v30 = vpop.f32.mrf.mxu1  ;;  %3828 = vmatpush1.bf16.msra.mxu1 %v6129_v63  ;;  %v6152_v16 = vld [vmem:[%s9196_s3 + $0x64] ss:$16 sps:$4 sm:$0xff]  }
 0xbd7   : > { %v3279_v6 = vadd.f32 %v3254_v30, %v8264_v52  ;;  %3336 = vadd.xlane.f32.xlu0 %v8329_v15  ;;  %3338 = vadd.xlane.f32.xlu1 %v8332_v22  ;;  %v8344_v40 = vadd.f32 %v3297_v35, %v3281_v21  ;;  %v6126_v52 = vld [vmem:[%s9196_s3 + $0xe0] ss:$16 sps:$4 sm:$0xff]   ;;  %v6153_v30 = vld [vmem:[%s9196_s3 + $0x68] ss:$16 sps:$4 sm:$0xff]   ;;  %v6161_v21 = vld [vmem:[%s9196_s3 + $0x4c] ss:$16 sps:$4 sm:$0xff]  }
 0xbd8   : > { %3715 = vmatpush1.bf16.msra.mxu0 %v6126_v52  ;;  %3829 = vmatprep.subr.bf16.mxu1 %v6137_v46  ;;  %v6156_v35 = vld [vmem:[%s9196_s3 + $0x40] ss:$16 sps:$4 sm:$0xff]   ;;  %v6159_v52 = vld [vmem:[%s9196_s3 + $0x48] ss:$16 sps:$4 sm:$0xff]   ;;  %v6164_v63 = vld [vmem:[%s9196_s3 + $0x24] ss:$16 sps:$4 sm:$0xff]  }
 0xbd9   : > { %v8340_v0 = vadd.f32 %v3295_v44, %v3279_v6  ;;  %v6150_v44 = vld [vmem:[%s9196_s3 + $0x60] ss:$16 sps:$4 sm:$0xff]   ;;  %v6158_v6 = vld [vmem:[%s9196_s3 + $0x44] ss:$16 sps:$4 sm:$0xff]  }
 0xbdb   : > { %3342 = vadd.xlane.f32.xlu1 %v8337_v25  ;;  %3340 = vadd.xlane.f32.xlu0 %v8340_v0 }
 0xbdf   : > { %3344 = vadd.xlane.f32.xlu0 %v8344_v40 }
 0xc33   : > { %v3315_v54 = vpop.xlane.xlu1 %3314 }
 0xc34   : > { %v3347_v38 = vmul.f32 0.0078125, %v3315_v54 }
 0xc36   : > { %v8360_v14 = vsub.f32 %v8279_v55, %v3347_v38  ;;  %v6162_v38 = vld [vmem:[%s9196_s3 + $0x20] ss:$16 sps:$4 sm:$0xff]  }
 0xc37   : > { %v3319_v50 = vpop.xlane.xlu1 %3318  ;;  %v3317_v47 = vpop.xlane.xlu0 %3316 }
 0xc38   : > { %v3349_v24 = vmul.f32 0.0078125, %v3319_v50  ;;  %v3348_v2 = vmul.f32 0.0078125, %v3317_v47  ;;  %v3379_v39 = vmul.f32 %v8360_v14, %v8360_v14  ;;  %v6165_v50 = vld [vmem:[%s9196_s3 + $0x28] ss:$16 sps:$4 sm:$0xff]  }
 0xc3a   : > { %v8365_v29 = vsub.f32 %v8283_v27, %v3349_v24  ;;  %v8368_v57 = vsub.f32 %v8286_v31, %v3348_v2  ;;  %3395 = vadd.xlane.f32.xlu1 %v3379_v39  ;;  %v6170_v39 = vld [vmem:[%s9196_s3 + $0x4] ss:$16 sps:$4 sm:$0xff]  }
 0xc3b   : > { %v3321_v36 = vpop.xlane.xlu0 %3320  ;;  %v3323_v45 = vpop.xlane.xlu1 %3322 }
 0xc3c   : > { %v3350_v48 = vmul.f32 0.0078125, %v3321_v36  ;;  %v3351_v62 = vmul.f32 0.0078125, %v3323_v45  ;;  %v3381_v55 = vmul.f32 %v8365_v29, %v8365_v29  ;;  %v3380_v43 = vmul.f32 %v8368_v57, %v8368_v57  ;;  %v6173_v36 = vld [vmem:[%s9196_s3 + $0xc] ss:$16 sps:$4 sm:$0xff]  }
 0xc3e   : > { %v8375_v41 = vsub.f32 %v8293_v56, %v3350_v48  ;;  %v8378_v27 = vsub.f32 %v8296_v34, %v3351_v62  ;;  %3399 = vadd.xlane.f32.xlu1 %v3381_v55  ;;  %3397 = vadd.xlane.f32.xlu0 %v3380_v43  ;;  %v6134_v34 = vld [vmem:[%s9196_s3 + $0xc4] ss:$16 sps:$4 sm:$0xff]   ;;  %v6171_v55 = vld [vmem:[%s9196_s3 + $0x8] ss:$16 sps:$4 sm:$0xff]  }
 0xc3f   : > { %v3327_v31 = vpop.xlane.xlu1 %3326  ;;  %v3325_v4 = vpop.xlane.xlu0 %3324  ;;  %3716 = vmatprep.subr.bf16.mxu0 %v6134_v34 }
 0xc40   : > { %v3353_v8 = vmul.f32 0.0078125, %v3327_v31  ;;  %v3352_v42 = vmul.f32 0.0078125, %v3325_v4  ;;  %v3383_v51 = vmul.f32 %v8378_v27, %v8378_v27  ;;  %v3382_v1 = vmul.f32 %v8375_v41, %v8375_v41  ;;  %3717 = vmatpush1.bf16.msra.mxu0 %v6132_v10 }
 0xc41   : > { %3718 = vmatprep.subr.bf16.mxu0 %v6140_v9 }
 0xc42   : > { %v8385_v26 = vsub.f32 %v8301_v23, %v3353_v8  ;;  %v8388_v56 = vsub.f32 %v8304_v11, %v3352_v42  ;;  %3403 = vadd.xlane.f32.xlu1 %v3383_v51  ;;  %3401 = vadd.xlane.f32.xlu0 %v3382_v1  ;;  %v6135_v23 = vld [vmem:[%s9196_s3 + $0xc8] ss:$16 sps:$4 sm:$0xff]  }
 0xc43   : > { %v3329_v5 = vpop.xlane.xlu0 %3328  ;;  %3830 = vmatpush1.bf16.msra.mxu1 %v6135_v23 }
 0xc44   : > { %v3354_v11 = vmul.f32 0.0078125, %v3329_v5  ;;  %v3385_v18 = vmul.f32 %v8385_v26, %v8385_v26  ;;  %v3384_v49 = vmul.f32 %v8388_v56, %v8388_v56  ;;  %3831 = vmatprep.subr.bf16.mxu1 %v6143_v32  ;;  %3719 = vmatpush1.bf16.msra.mxu0 %v6138_v19 }
 0xc45   : > { %3720 = vmatprep.subr.bf16.mxu0 %v6146_v37 }
 0xc46   : > { %v8407_v28 = vsub.f32 %v8308_v60, %v3354_v11  ;;  %3407 = vadd.xlane.f32.xlu1 %v3385_v18  ;;  %3405 = vadd.xlane.f32.xlu0 %v3384_v49  ;;  %v6141_v60 = vld [vmem:[%s9196_s3 + $0xa8] ss:$16 sps:$4 sm:$0xff]  }
 0xc47   : > { %3832 = vmatpush1.bf16.msra.mxu1 %v6141_v60  ;;  %v6175_v60 = vld [vmem:[%s9197_s4 + $0xf8] sm:$0xff]  }
 0xc48   : > { %v3386_v59 = vmul.f32 %v8407_v28, %v8407_v28  ;;  %3833 = vmatprep.subr.bf16.mxu1 %v6149_v12  ;;  %3721 = vmatpush1.bf16.msra.mxu0 %v6144_v53 }
 0xc49   : > { %3722 = vmatprep.subr.bf16.mxu0 %v6152_v16 }
 0xc4a   : > { %3409 = vadd.xlane.f32.xlu0 %v3386_v59 }
 0xc4b   : > { %3834 = vmatpush1.bf16.msra.mxu1 %v6147_v33 }
 0xc4c   : > { %3835 = vmatprep.subr.bf16.mxu1 %v6155_v61  ;;  %3723 = vmatpush1.bf16.msra.mxu0 %v6150_v44 }
 0xc4d   : > { %3724 = vmatprep.subr.bf16.mxu0 %v6158_v6 }
 0xc4f   : > { %3836 = vmatpush1.bf16.msra.mxu1 %v6153_v30 }
 0xc50   : > { %3837 = vmatprep.subr.bf16.mxu1 %v6161_v21  ;;  %3725 = vmatpush1.bf16.msra.mxu0 %v6156_v35 }
 0xc51   : > { %3726 = vmatprep.subr.bf16.mxu0 %v6164_v63 }
 0xc53   : > { %3838 = vmatpush1.bf16.msra.mxu1 %v6159_v52 }
 0xc54   : > { %3839 = vmatprep.subr.bf16.mxu1 %v6167_v7  ;;  %3727 = vmatpush1.bf16.msra.mxu0 %v6162_v38 }
 0xc55   : > { %3728 = vmatprep.subr.bf16.mxu0 %v6170_v39 }
 0xc57   : > { %3840 = vmatpush1.bf16.msra.mxu1 %v6165_v50 }
 0xc58   : > { %v3331_v20 = vpop.xlane.xlu1 %3330  ;;  %3841 = vmatprep.subr.bf16.mxu1 %v6173_v36 }
 0xc59   : > { %v3355_v54 = vmul.f32 0.0078125, %v3331_v20 }
 0xc5b   : > { %v8472_v47 = vsub.f32 %v8315_v13, %v3355_v54  ;;  %v6168_v13 = vld [vmem:[%s9196_s3] ss:$16 sps:$4 sm:$0xff]   ;;  %3842 = vmatpush1.bf16.msra.mxu1 %v6171_v55 }
 0xc5c   : > { %v3335_v24 = vpop.xlane.xlu1 %3334  ;;  %v3333_v2 = vpop.xlane.xlu0 %3332  ;;  %3729 = vmatpush1.bf16.msra.mxu0 %v6168_v13  ;;  %5602 = vmatprep.subr.bf16.mxu1 %v6175_v60 }
 0xc5d   : > { %v3357_v45 = vmul.f32 0.0078125, %v3335_v24  ;;  %v3356_v48 = vmul.f32 0.0078125, %v3333_v2  ;;  %v3387_v62 = vmul.f32 %v8472_v47, %v8472_v47 }
 0xc5f   : > { %v8489_v43 = vsub.f32 %v8319_v58, %v3357_v45  ;;  %v8492_v31 = vsub.f32 %v8322_v3, %v3356_v48  ;;  %3411 = vadd.xlane.f32.xlu1 %v3387_v62  ;;  %v8533_v62 = vld [vmem:[%s9198_s5] ss:$0 sm:$0xff] }
 0xc60   : > { %v3337_v4 = vpop.xlane.xlu0 %3336  ;;  %v3339_v8 = vpop.xlane.xlu1 %3338 }
 0xc61   : > { %v3358_v42 = vmul.f32 0.0078125, %v3337_v4  ;;  %v3359_v51 = vmul.f32 0.0078125, %v3339_v8  ;;  %v3389_v1 = vmul.f32 %v8489_v43, %v8489_v43  ;;  %v3388_v34 = vmul.f32 %v8492_v31, %v8492_v31 }
 0xc63   : > { %v8499_v46 = vsub.f32 %v8329_v15, %v3358_v42  ;;  %v8502_v58 = vsub.f32 %v8332_v22, %v3359_v51  ;;  %3415 = vadd.xlane.f32.xlu1 %v3389_v1  ;;  %3413 = vadd.xlane.f32.xlu0 %v3388_v34 }
 0xc64   : > { %v3343_v3 = vpop.xlane.xlu1 %3342  ;;  %v3341_v5 = vpop.xlane.xlu0 %3340 }
 0xc65   : > { %v3361_v10 = vmul.f32 0.0078125, %v3343_v3  ;;  %v3360_v23 = vmul.f32 0.0078125, %v3341_v5  ;;  %v3391_v11 = vmul.f32 %v8502_v58, %v8502_v58  ;;  %v3390_v18 = vmul.f32 %v8499_v46, %v8499_v46  ;;  %v6177_v3 = vld [vmem:[%s9197_s4 + $0xb8] sm:$0xff]   ;;  %v6178_v5 = vld [vmem:[%s9197_s4 + $0x70] sm:$0xff]  }
 0xc67   : > { %v8509_v49 = vsub.f32 %v8337_v25, %v3361_v10  ;;  %v8512_v15 = vsub.f32 %v8340_v0, %v3360_v23  ;;  %3419 = vadd.xlane.f32.xlu1 %v3391_v11  ;;  %3417 = vadd.xlane.f32.xlu0 %v3390_v18  ;;  %v6174_v0 = vld [vmem:[%s9197_s4 + $0x78] sm:$0xff]   ;;  %v6179_v10 = vld [vmem:[%s9197_s4 + $0xf0] sm:$0xff]  }
 0xc68   : > { %v3345_v22 = vpop.xlane.xlu0 %3344  ;;  %5538 = vmatprep.subr.bf16.mxu0 %v6174_v0  ;;  %v6180_v11 = vld [vmem:[%s9197_s4 + $0x30] sm:$0xff]  }
 0xc69   : > { %v3362_v9 = vmul.f32 0.0078125, %v3345_v22  ;;  %v3393_v32 = vmul.f32 %v8509_v49, %v8509_v49  ;;  %v3392_v59 = vmul.f32 %v8512_v15, %v8512_v15  ;;  %v6181_v18 = vld [vmem:[%s9197_s4 + $0xb0] sm:$0xff]  }
 0xc6b   : > { %v8519_v19 = vsub.f32 %v8344_v40, %v3362_v9  ;;  %3423 = vadd.xlane.f32.xlu1 %v3393_v32  ;;  %3421 = vadd.xlane.f32.xlu0 %v3392_v59  ;;  %v6183_v9 = vld [vmem:[%s9197_s4 + $0xe8] sm:$0xff]  }
 0xc6d   : > { %v3394_v25 = vmul.f32 %v8519_v19, %v8519_v19 }
 0xc6f   : > { %3425 = vadd.xlane.f32.xlu0 %v3394_v25 }
 0xcc3   : > { %v3396_v37 = vpop.xlane.xlu1 %3395 }
 0xcc4   : > { %v3427_v12 = vmul.f32 0.0078125, %v3396_v37  ;;  %v6184_v37 = vld [vmem:[%s9197_s4 + $0x28] sm:$0xff]  }
 0xcc6   : > { %v3443_v40 = vadd.f32 1e-05, %v3427_v12  ;;  %v6185_v12 = vld [vmem:[%s9197_s4 + $0xa8] sm:$0xff]  }
 0xcc7   : > { %v3400_v53 = vpop.xlane.xlu1 %3399  ;;  %v3398_v33 = vpop.xlane.xlu0 %3397 }
 0xcc8   : > { %v3429_v16 = vmul.f32 0.0078125, %v3400_v53  ;;  %v3428_v61 = vmul.f32 0.0078125, %v3398_v33  ;;  %6470 = vrsqrt.f32 %v3443_v40  ;;  %v6186_v53 = vld [vmem:[%s9197_s4 + $0x60] sm:$0xff]  }
 0xcca   : > { %v3444_v44 = vadd.f32 1e-05, %v3428_v61  ;;  %v3445_v6 = vadd.f32 1e-05, %v3429_v16 }
 0xccb   : > { %v3402_v30 = vpop.xlane.xlu0 %3401  ;;  %v3404_v35 = vpop.xlane.xlu1 %3403 }
 0xccc   : > { %v3430_v21 = vmul.f32 0.0078125, %v3402_v30  ;;  %6472 = vrsqrt.f32 %v3444_v44  ;;  %v3431_v7 = vmul.f32 0.0078125, %v3404_v35 }
 0xccd   : > { %6474 = vrsqrt.f32 %v3445_v6  ;;  %v6188_v6 = vld [vmem:[%s9197_s4 + $0x20] sm:$0xff]  }
 0xcce   : > { %v3446_v52 = vadd.f32 1e-05, %v3430_v21  ;;  %v3447_v50 = vadd.f32 1e-05, %v3431_v7 }
 0xccf   : > { %v3406_v20 = vpop.xlane.xlu0 %3405  ;;  %v3408_v2 = vpop.xlane.xlu1 %3407 }
 0xcd0   : > { %v3432_v63 = vmul.f32 0.0078125, %v3406_v20  ;;  %6476 = vrsqrt.f32 %v3446_v52  ;;  %v3433_v45 = vmul.f32 0.0078125, %v3408_v2 }
 0xcd2   : > { %v3448_v54 = vadd.f32 1e-05, %v3432_v63  ;;  %v3449_v51 = vadd.f32 1e-05, %v3433_v45 }
 0xcd3   : > { %v3410_v38 = vpop.xlane.xlu0 %3409 }
 0xcd4   : > { %6478 = vrsqrt.f32 %v3448_v54  ;;  %v3434_v39 = vmul.f32 0.0078125, %v3410_v38 }
 0xcd5   : > { %v6471_v24 = vpop.eup %6470  ;;  %6480 = vrsqrt.f32 %v3447_v50 }
 0xcd6   : > { %v3475_v36 = vmul.f32 %v6471_v24, %v8360_v14  ;;  %v3450_v55 = vadd.f32 1e-05, %v3434_v39 }
 0xcd8   : > { %v8537_v8 = vmul.f32 %v8533_v62, %v3475_v36  ;;  %6482 = vrsqrt.f32 %v3450_v55 }
 0xcd9   : > { %v6473_v48 = vpop.eup %6472  ;;  %6484 = vrsqrt.f32 %v3449_v51 }
 0xcda   : > { %v3476_v13 = vmul.f32 %v6473_v48, %v8368_v57  ;;  %v6475_v4 = vpop.eup %6474  ;;  %v6176_v57 = vld [vmem:[%s9197_s4 + $0x38] sm:$0xff]  }
 0xcdc   : > { %v8540_v42 = vmul.f32 %v8533_v62, %v3476_v13 }
 0xcdd   : > { %v6477_v14 = vpop.eup %6476 }
 0xcde   : > { %v3514_v1 = vpack.c.bf16 %v8540_v42, %v8537_v8  ;;  %v3478_v34 = vmul.f32 %v6477_v14, %v8375_v41  ;;  %v3477_v41 = vmul.f32 %v6475_v4, %v8365_v29  ;;  %v6182_v29 = vld [vmem:[%s9197_s4 + $0x68] sm:$0xff]  }
 0xce0   : > { %3747 = vmatmul.mubr.bf16.vlgmr.msra.gmra.mxu0 %v3514_v1  ;;  %3860 = vmatmul.mubr.bf16.vlgmr.msra.gmra.mxu1 %v3514_v1  ;;  %v8561_v23 = vmul.f32 %v8533_v62, %v3478_v34  ;;  %v8576_v32 = vmul.f32 %v8533_v62, %v3477_v41 }
 0xce1   : > { %3756 = vmatprep.mubr.bf16.mxu0 %v9315_v17  ;;  %3869 = vmatprep.mubr.bf16.mxu1 %v9315_v17  ;;  %v6479_v22 = vpop.eup %6478 }
 0xce2   : > { %5539 = vmatpush3.bf16.msra.mxu0 %v6176_v57  ;;  %5603 = vmatpush3.bf16.msra.mxu1 %v6177_v3  ;;  %v6481_v59 = vpop.eup %6480  ;;  %v3515_v0 = vpack.c.bf16 %v8561_v23, %v8576_v32  ;;  %v3480_v60 = vmul.f32 %v6479_v22, %v8388_v56  ;;  %v6187_v56 = vld [vmem:[%s9197_s4 + $0xe0] sm:$0xff]  }
 0xce3   : > { %5540 = vmatprep.subr.bf16.mxu0 %v6178_v5  ;;  %5604 = vmatprep.subr.bf16.mxu1 %v6179_v10  ;;  %v3479_v33 = vmul.f32 %v6481_v59, %v8378_v27  ;;  %v6189_v27 = vld [vmem:[%s9197_s4 + $0xa0] sm:$0xff]  }
 0xce4   : > { %v8597_v30 = vmul.f32 %v8533_v62, %v3480_v60 }
 0xce5   : > { %v6483_v21 = vpop.eup %6482  ;;  %v8606_v20 = vmul.f32 %v8533_v62, %v3479_v33 }
 0xce6   : > { %5541 = vmatpush3.bf16.msra.mxu0 %v6180_v11  ;;  %5605 = vmatpush3.bf16.msra.mxu1 %v6181_v18  ;;  %v6485_v63 = vpop.eup %6484  ;;  %v3482_v50 = vmul.f32 %v6483_v21, %v8407_v28 }
 0xce7   : > { %5542 = vmatprep.subr.bf16.mxu0 %v6182_v29  ;;  %5606 = vmatprep.subr.bf16.mxu1 %v6183_v9  ;;  %v3516_v38 = vpack.c.bf16 %v8597_v30, %v8606_v20  ;;  %v3481_v39 = vmul.f32 %v6485_v63, %v8385_v26  ;;  %v6196_v63 = vld [vmem:[%s9197_s4 + $0x10] sm:$0xff]  }
 0xce8   : > { %v3412_v25 = vpop.xlane.xlu1 %3411  ;;  %3757 = vmatmul.mubr.bf16.gmra.mxu0 %v3515_v0  ;;  %3870 = vmatmul.mubr.bf16.gmra.mxu1 %v3515_v0  ;;  %v8615_v13 = vmul.f32 %v8533_v62, %v3482_v50  ;;  %v6200_v50 = vld [vmem:[%s9197_s4 + $0x8] sm:$0xff]  }
 0xce9   : > { %v3435_v40 = vmul.f32 0.0078125, %v3412_v25  ;;  %3766 = vmatprep.mubr.bf16.mxu0 %v9315_v17  ;;  %3879 = vmatprep.mubr.bf16.mxu1 %v9315_v17  ;;  %v8618_v4 = vmul.f32 %v8533_v62, %v3481_v39  ;;  %v6203_v39 = vld [vmem:[%s9197_s4 + $0xc0] sm:$0xff]  }
 0xcea   : > { %5543 = vmatpush3.bf16.msra.mxu0 %v6184_v37  ;;  %5607 = vmatpush3.bf16.msra.mxu1 %v6185_v12  ;;  %9316 = vst [vmem:[#allocation14_spill] sm:$0xff] %v8615_v13 }
 0xceb   : > { %v3451_v16 = vadd.f32 1e-05, %v3435_v40  ;;  %5544 = vmatprep.subr.bf16.mxu0 %v6186_v53  ;;  %5608 = vmatprep.subr.bf16.mxu1 %v6187_v56  ;;  %v3517_v26 = vpack.c.bf16 %v8615_v13, %v8618_v4 }
 0xcec   : > { %v3416_v61 = vpop.xlane.xlu1 %3415  ;;  %v3414_v44 = vpop.xlane.xlu0 %3413 }
 0xced   : > { %v3437_v35 = vmul.f32 0.0078125, %v3416_v61  ;;  %v3436_v52 = vmul.f32 0.0078125, %v3414_v44  ;;  %6486 = vrsqrt.f32 %v3451_v16 }
 0xcee   : > { %5545 = vmatpush3.bf16.msra.mxu0 %v6188_v6  ;;  %5609 = vmatpush3.bf16.msra.mxu1 %v6189_v27 }
 0xcef   : > { %v3452_v7 = vadd.f32 1e-05, %v3436_v52  ;;  %v3453_v24 = vadd.f32 1e-05, %v3437_v35  ;;  %v6194_v35 = vld [vmem:[%s9197_s4 + $0x50] sm:$0xff]  }
 0xcf0   : > { %v3418_v54 = vpop.xlane.xlu0 %3417  ;;  %3767 = vmatmul.mubr.bf16.gmra.mxu0 %v3516_v38  ;;  %3880 = vmatmul.mubr.bf16.gmra.mxu1 %v3516_v38  ;;  %v3420_v36 = vpop.xlane.xlu1 %3419  ;;  %v6195_v52 = vld [vmem:[%s9197_s4 + $0xd0] sm:$0xff]   ;;  %v6199_v38 = vld [vmem:[%s9197_s4 + $0xc8] sm:$0xff]  }
 0xcf1   : > { %v3438_v2 = vmul.f32 0.0078125, %v3418_v54  ;;  %6488 = vrsqrt.f32 %v3452_v7  ;;  %3776 = vmatprep.mubr.bf16.mxu0 %v9315_v17  ;;  %3889 = vmatprep.mubr.bf16.mxu1 %v9315_v17  ;;  %v3439_v55 = vmul.f32 0.0078125, %v3420_v36  ;;  %v6197_v7 = vld [vmem:[%s9197_s4 + $0x90] sm:$0xff]   ;;  %v6198_v54 = vld [vmem:[%s9197_s4 + $0x48] sm:$0xff]   ;;  %v6204_v36 = vld [vmem:[%s9197_s4] sm:$0xff]  }
 0xcf2   : > { %6490 = vrsqrt.f32 %v3453_v24  ;;  %v6201_v24 = vld [vmem:[%s9197_s4 + $0x88] sm:$0xff]  }
 0xcf3   : > { %v3454_v45 = vadd.f32 1e-05, %v3438_v2  ;;  %v3455_v1 = vadd.f32 1e-05, %v3439_v55  ;;  %v6202_v2 = vld [vmem:[%s9197_s4 + $0x40] sm:$0xff]  }
 0xcf4   : > { %v3422_v48 = vpop.xlane.xlu0 %3421  ;;  %v3424_v57 = vpop.xlane.xlu1 %3423 }
 0xcf5   : > { %v3440_v28 = vmul.f32 0.0078125, %v3422_v48  ;;  %6492 = vrsqrt.f32 %v3454_v45  ;;  %v3441_v5 = vmul.f32 0.0078125, %v3424_v57  ;;  %v6205_v45 = vld [vmem:[%s9197_s4 + $0x80] sm:$0xff]  }
 0xcf7   : > { %v3456_v51 = vadd.f32 1e-05, %v3440_v28  ;;  %v3457_v29 = vadd.f32 1e-05, %v3441_v5 }
 0xcf8   : > { %v3426_v14 = vpop.xlane.xlu0 %3425  ;;  %3777 = vmatmul.mubr.bf16.gmra.mxu0 %v3517_v26  ;;  %3890 = vmatmul.mubr.bf16.gmra.mxu1 %v3517_v26 }
 0xcf9   : > { %3786 = vmatprep.mubr.bf16.mxu0 %v9315_v17  ;;  %3899 = vmatprep.mubr.bf16.mxu1 %v9315_v17  ;;  %6494 = vrsqrt.f32 %v3456_v51  ;;  %v3442_v3 = vmul.f32 0.0078125, %v3426_v14 }
 0xcfa   : > { %v6487_v34 = vpop.eup %6486  ;;  %6496 = vrsqrt.f32 %v3455_v1 }
 0xcfb   : > { %v3483_v10 = vmul.f32 %v6487_v34, %v8472_v47  ;;  %v3458_v11 = vadd.f32 1e-05, %v3442_v3 }
 0xcfd   : > { %v8627_v9 = vmul.f32 %v8533_v62, %v3483_v10  ;;  %6498 = vrsqrt.f32 %v3458_v11 }
 0xcfe   : > { %v6489_v41 = vpop.eup %6488  ;;  %6500 = vrsqrt.f32 %v3457_v29 }
 0xcff   : > { %v3484_v18 = vmul.f32 %v6489_v41, %v8492_v31  ;;  %v6491_v22 = vpop.eup %6490  ;;  %9317 = vst [vmem:[#allocation5_spill] sm:$0xff] %v8627_v9 }
 0xd00   : > { %v3485_v47 = vmul.f32 %v6491_v22, %v8489_v43 }
 0xd01   : > { %v8630_v59 = vmul.f32 %v8533_v62, %v3484_v18 }
 0xd02   : > { %v6493_v25 = vpop.eup %6492  ;;  %v8642_v12 = vmul.f32 %v8533_v62, %v3485_v47 }
 0xd03   : > { %9318 = vst [vmem:[#allocation6_spill] sm:$0xff] %v8630_v59  ;;  %v3518_v0 = vpack.c.bf16 %v8630_v59, %v8627_v9  ;;  %v3486_v60 = vmul.f32 %v6493_v25, %v8499_v46 }
 0xd04   : > { %9320 = vst [vmem:[#allocation9_spill] sm:$0xff] %v8642_v12 }
 0xd05   : > { %3787 = vmatmul.mubr.bf16.gmra.mxu0 %v3518_v0  ;;  %3900 = vmatmul.mubr.bf16.gmra.mxu1 %v3518_v0  ;;  %v8639_v31 = vmul.f32 %v8533_v62, %v3486_v60 }
 0xd06   : > { %3796 = vmatprep.mubr.bf16.mxu0 %v9315_v17  ;;  %3909 = vmatprep.mubr.bf16.mxu1 %v9315_v17  ;;  %v6495_v37 = vpop.eup %6494 }
 0xd07   : > { %9319 = vst [vmem:[#allocation3_spill] sm:$0xff] %v8639_v31  ;;  %v6497_v40 = vpop.eup %6496  ;;  %v3519_v46 = vpack.c.bf16 %v8639_v31, %v8642_v12  ;;  %v3488_v53 = vmul.f32 %v6495_v37, %v8512_v15 }
 0xd08   : > { %v3487_v43 = vmul.f32 %v6497_v40, %v8502_v58 }
 0xd09   : > { %v8651_v56 = vmul.f32 %v8533_v62, %v3488_v53 }
 0xd0a   : > { %v6499_v33 = vpop.eup %6498  ;;  %v8654_v16 = vmul.f32 %v8533_v62, %v3487_v43 }
 0xd0b   : > { %9321 = vst [vmem:[#allocation8_spill] sm:$0xff] %v8651_v56  ;;  %v6501_v61 = vpop.eup %6500  ;;  %v3490_v15 = vmul.f32 %v6499_v33, %v8519_v19  ;;  %v6190_v19 = vld [vmem:[%s9197_s4 + $0x58] sm:$0xff]  }
 0xd0c   : > { %9322 = vst [vmem:[#allocation15_spill] sm:$0xff] %v8654_v16  ;;  %v3520_v44 = vpack.c.bf16 %v8651_v56, %v8654_v16  ;;  %v3489_v58 = vmul.f32 %v6501_v61, %v8509_v49  ;;  %v6191_v49 = vld [vmem:[%s9197_s4 + $0xd8] sm:$0xff]   ;;  %5546 = vmatprep.subr.bf16.mxu0 %v6190_v19 }
 0xd0d   : > { %3797 = vmatmul.mubr.bf16.gmra.mxu0 %v3519_v46  ;;  %3910 = vmatmul.mubr.bf16.gmra.mxu1 %v3519_v46  ;;  %v8663_v6 = vmul.f32 %v8533_v62, %v3490_v15 }
 0xd0e   : > { %3806 = vmatprep.mubr.bf16.mxu0 %v9315_v17  ;;  %3919 = vmatprep.mubr.bf16.mxu1 %v9315_v17  ;;  %v8666_v27 = vmul.f32 %v8533_v62, %v3489_v58  ;;  %v6193_v62 = vld [vmem:[%s9197_s4 + $0x98] sm:$0xff]  }
 0xd0f   : > { %9323 = vst [vmem:[#allocation16_spill] sm:$0xff] %v8663_v6  ;;  %5610 = vmatprep.subr.bf16.mxu1 %v6191_v49 }
 0xd10   : > { %9324 = vst [vmem:[#allocation2_spill] sm:$0xff] %v8666_v27  ;;  %v3521_v21 = vpack.c.bf16 %v8663_v6, %v8666_v27  ;;  %5611 = vmatpush3.bf16.msra.mxu1 %v6193_v62 }
 0xd11   : > { %5612 = vmatprep.subr.bf16.mxu1 %v6195_v52 }
 0xd14   : > { %5613 = vmatpush3.bf16.msra.mxu1 %v6197_v7 }
 0xd15   : > { %3807 = vmatmul.mubr.bf16.gmra.mxu0 %v3520_v44  ;;  %3920 = vmatmul.mubr.bf16.gmra.mxu1 %v3520_v44 }
 0xd16   : > { %3816 = vmatprep.mubr.bf16.mxu0 %v9315_v17  ;;  %3929 = vmatprep.mubr.bf16.mxu1 %v9315_v17  ;;  %v6192_v17 = vld [vmem:[%s9197_s4 + $0x18] sm:$0xff]  }
 0xd17   : > { %5547 = vmatpush3.bf16.msra.mxu0 %v6192_v17  ;;  %5614 = vmatprep.subr.bf16.mxu1 %v6199_v38 }
 0xd18   : > { %5548 = vmatprep.subr.bf16.mxu0 %v6194_v35  ;;  %5615 = vmatpush3.bf16.msra.mxu1 %v6201_v24 }
 0xd19   : > { %5616 = vmatprep.subr.bf16.mxu1 %v6203_v39 }
 0xd1b   : > { %5549 = vmatpush3.bf16.msra.mxu0 %v6196_v63 }
 0xd1c   : > { %5550 = vmatprep.subr.bf16.mxu0 %v6198_v54  ;;  %5617 = vmatpush3.bf16.msra.mxu1 %v6205_v45 }
 0xd1d   : > { %3817 = vmatmul.mubr.bf16.gmra.mxu0 %v3521_v21  ;;  %3930 = vmatmul.mubr.bf16.gmra.mxu1 %v3521_v21 }
 0xd1f   : > { %5551 = vmatpush3.bf16.msra.mxu0 %v6200_v50 }
 0xd20   : > { %5552 = vmatprep.subr.bf16.mxu0 %v6202_v2 }
 0xd23   : > { %5553 = vmatpush3.bf16.msra.mxu0 %v6204_v36 }
 0xda0   : > { %v3748_v48 = vpop.f32.mrf.mxu0  ;;  %v3861_v28 = vpop.f32.mrf.mxu1 }
 0xda1   : > { %v4004_v26 = vmul.f32 0.70710677, %v3748_v48  ;;  %v4006_v14 = vmul.f32 0.70710677, %v3861_v28  ;;  %v8726_v52 = vmul.f32 0.5, %v3748_v48  ;;  %v8728_v63 = vmul.f32 0.5, %v3861_v28 }
 0xda2   : > { %v3750_v55 = vpop.f32.mrf.mxu0  ;;  %v3863_v51 = vpop.f32.mrf.mxu1 }
 0xda3   : > { %v4005_v57 = vmul.f32 0.70710677, %v3750_v55  ;;  %v4007_v3 = vmul.f32 0.70710677, %v3863_v51  ;;  %6502 = verf.f32 %v4004_v26  ;;  %v8734_v50 = vmul.f32 0.5, %v3750_v55 }
 0xda4   : > { %v3752_v1 = vpop.f32.mrf.mxu0  ;;  %v3865_v34 = vpop.f32.mrf.mxu1  ;;  %6504 = verf.f32 %v4006_v14  ;;  %v8736_v24 = vmul.f32 0.5, %v3863_v51 }
 0xda5   : > { %v4008_v41 = vmul.f32 0.70710677, %v3752_v1  ;;  %v4010_v11 = vmul.f32 0.70710677, %v3865_v34  ;;  %6506 = verf.f32 %v4005_v57  ;;  %v3944_v36 = vmul.f32 0.5, %v3752_v1 }
 0xda6   : > { %v3754_v5 = vpop.f32.mrf.mxu0  ;;  %v3867_v10 = vpop.f32.mrf.mxu1  ;;  %6508 = verf.f32 %v4007_v3  ;;  %v3946_v45 = vmul.f32 0.5, %v3865_v34 }
 0xda7   : > { %v4009_v29 = vmul.f32 0.70710677, %v3754_v5  ;;  %v4011_v25 = vmul.f32 0.70710677, %v3867_v10  ;;  %6510 = verf.f32 %v4008_v41  ;;  %v3945_v57 = vmul.f32 0.5, %v3754_v5 }
 0xda8   : > { %v3758_v18 = vpop.f32.mrf.mxu0  ;;  %v3871_v22 = vpop.f32.mrf.mxu1  ;;  %6512 = verf.f32 %v4010_v11  ;;  %v3947_v3 = vmul.f32 0.5, %v3867_v10 }
 0xda9   : > { %v4012_v47 = vmul.f32 0.70710677, %v3758_v18  ;;  %6514 = verf.f32 %v4009_v29  ;;  %v4014_v19 = vmul.f32 0.70710677, %v3871_v22  ;;  %v8745_v41 = vmul.f32 0.5, %v3758_v18 }
 0xdaa   : > { %v3760_v0 = vpop.f32.mrf.mxu0  ;;  %v3873_v60 = vpop.f32.mrf.mxu1  ;;  %6516 = verf.f32 %v4011_v25  ;;  %v8747_v11 = vmul.f32 0.5, %v3871_v22 }
 0xdab   : > { %v4013_v46 = vmul.f32 0.70710677, %v3760_v0  ;;  %6518 = verf.f32 %v4012_v47  ;;  %v4015_v61 = vmul.f32 0.70710677, %v3873_v60  ;;  %v8749_v1 = vmul.f32 0.5, %v3760_v0 }
 0xdac   : > { %v3762_v37 = vpop.f32.mrf.mxu0  ;;  %v3875_v40 = vpop.f32.mrf.mxu1 }
 0xdad   : > { %6520 = verf.f32 %v4013_v46  ;;  %v4016_v21 = vmul.f32 0.70710677, %v3762_v37  ;;  %v4018_v62 = vmul.f32 0.70710677, %v3875_v40  ;;  %v8756_v46 = vmul.f32 0.5, %v3873_v60 }
 0xdae   : > { %v3764_v53 = vpop.f32.mrf.mxu0  ;;  %v3877_v43 = vpop.f32.mrf.mxu1  ;;  %v8758_v5 = vmul.f32 0.5, %v3762_v37  ;;  %v8760_v10 = vmul.f32 0.5, %v3875_v40 }
 0xdaf   : > { %v4017_v33 = vmul.f32 0.70710677, %v3764_v53  ;;  %v4019_v44 = vmul.f32 0.70710677, %v3877_v43  ;;  %v8762_v22 = vmul.f32 0.5, %v3764_v53  ;;  %v8764_v0 = vmul.f32 0.5, %v3877_v43 }
 0xdb0   : > { %v8718_v15 = vpop.f32.mrf.mxu0  ;;  %v8720_v58 = vpop.f32.mrf.mxu1 }
 0xdb1   : > { %6522 = verf.f32 %v4017_v33  ;;  %v6503_v35 = vpop.eup %6502  ;;  %v4020_v2 = vmul.f32 0.70710677, %v8718_v15  ;;  %v4022_v48 = vmul.f32 0.70710677, %v8720_v58 }
 0xdb2   : > { %v8722_v49 = vpop.f32.mrf.mxu0  ;;  %v8724_v17 = vpop.f32.mrf.mxu1  ;;  %6524 = verf.f32 %v4019_v44  ;;  %v4132_v33 = vadd.f32 1.0, %v6503_v35 }
 0xdb3   : > { %6526 = verf.f32 %v4015_v61  ;;  %v6505_v38 = vpop.eup %6504  ;;  %v4021_v55 = vmul.f32 0.70710677, %v8722_v49 }
 0xdb4   : > { %v8730_v7 = vpop.f32.mrf.mxu0  ;;  %v8732_v54 = vpop.f32.mrf.mxu1  ;;  %6528 = verf.f32 %v4016_v21  ;;  %v4134_v35 = vadd.f32 1.0, %v6505_v38  ;;  %v8785_v38 = vmul.f32 0.5, %v8720_v58 }
 0xdb5   : > { %v6507_v39 = vpop.eup %6506  ;;  %6530 = verf.f32 %v4014_v19  ;;  %v4024_v34 = vmul.f32 0.70710677, %v8730_v7  ;;  %v4026_v60 = vmul.f32 0.70710677, %v8732_v54 }
 0xdb6   : > { %v8740_v28 = vpop.f32.mrf.mxu0  ;;  %v8742_v26 = vpop.f32.mrf.mxu1  ;;  %6532 = verf.f32 %v4018_v62  ;;  %v4023_v62 = vmul.f32 0.70710677, %v8724_v17 }
 0xdb7   : > { %v6509_v14 = vpop.eup %6508  ;;  %6534 = verf.f32 %v4020_v2  ;;  %v4025_v37 = vmul.f32 0.70710677, %v8740_v28  ;;  %v4027_v53 = vmul.f32 0.70710677, %v8742_v26  ;;  %v4133_v2 = vadd.f32 1.0, %v6507_v39 }
 0xdb8   : > { %v6511_v51 = vpop.eup %6510  ;;  %v8752_v29 = vpop.f32.mrf.mxu0  ;;  %6536 = verf.f32 %v4022_v48  ;;  %v4135_v48 = vadd.f32 1.0, %v6509_v14 }
 0xdb9   : > { %v8754_v25 = vpop.f32.mrf.mxu1  ;;  %v6513_v47 = vpop.eup %6512  ;;  %v4136_v19 = vadd.f32 1.0, %v6511_v51  ;;  %6538 = verf.f32 %v4021_v55  ;;  %v8775_v55 = vmul.f32 0.5, %v8718_v15  ;;  %v4028_v15 = vmul.f32 0.70710677, %v8752_v29 }
 0xdba   : > { %v6515_v18 = vpop.eup %6514  ;;  %v8766_v61 = vpop.f32.mrf.mxu0  ;;  %v4138_v40 = vadd.f32 1.0, %v6513_v47  ;;  %6540 = verf.f32 %v4024_v34  ;;  %v8782_v34 = vmul.f32 %v4132_v33, %v8726_v52  ;;  %v4199_v52 = vmul.f32 %v4135_v48, %v8736_v24 }
 0xdbb   : > { %v8768_v44 = vpop.f32.mrf.mxu1  ;;  %v6517_v21 = vpop.eup %6516  ;;  %6542 = verf.f32 %v4025_v37  ;;  %v4137_v27 = vadd.f32 1.0, %v6515_v18  ;;  %v4200_v31 = vmul.f32 %v4136_v19, %v3944_v36  ;;  %v8788_v18 = vmul.f32 0.5, %v8722_v49 }
 0xdbc   : > { %v6519_v43 = vpop.eup %6518  ;;  %v4139_v56 = vadd.f32 1.0, %v6517_v21  ;;  %6544 = verf.f32 %v4027_v53  ;;  %v8777_v51 = vpop.f32.mrf.mxu0  ;;  %v4202_v14 = vmul.f32 %v4138_v40, %v3946_v45  ;;  %v4198_v37 = vmul.f32 %v4134_v35, %v8728_v63 }
 0xdbd   : > { %v6521_v6 = vpop.eup %6520  ;;  %v8779_v47 = vpop.f32.mrf.mxu1  ;;  %6546 = verf.f32 %v4026_v60  ;;  %v4197_v53 = vmul.f32 %v4133_v2, %v8734_v50  ;;  %v4030_v36 = vmul.f32 0.70710677, %v8754_v25  ;;  %v4201_v33 = vmul.f32 %v4137_v27, %v3945_v57 }
 0xdbe   : > { %v6523_v16 = vpop.eup %6522  ;;  %6548 = verf.f32 %v4023_v62  ;;  %v4203_v19 = vmul.f32 %v4139_v56, %v3947_v3  ;;  %v4029_v45 = vmul.f32 0.70710677, %v8766_v61  ;;  %v8796_v49 = vpop.f32.mrf.mxu0  ;;  %v4260_v12 = vpack.c.bf16 %v4200_v31, %v8782_v34 }
 0xdbf   : > { %v6525_v39 = vpop.eup %6524  ;;  %v4145_v60 = vadd.f32 1.0, %v6523_v16  ;;  %v8798_v40 = vpop.f32.mrf.mxu1  ;;  %v4140_v63 = vadd.f32 1.0, %v6519_v43  ;;  %v4031_v50 = vmul.f32 0.70710677, %v8768_v44  ;;  %v4262_v2 = vpack.c.bf16 %v4202_v14, %v4198_v37 }
 0xdc0   : > { %v6527_v21 = vpop.eup %6526  ;;  %v4147_v35 = vadd.f32 1.0, %v6525_v39  ;;  %v4141_v48 = vadd.f32 1.0, %v6521_v6  ;;  %6550 = verf.f32 %v4028_v15  ;;  %v4032_v56 = vmul.f32 0.70710677, %v8777_v51 }
 0xdc1   : > { %v6529_v58 = vpop.eup %6528  ;;  %v4143_v57 = vadd.f32 1.0, %v6527_v21  ;;  %6552 = verf.f32 %v4030_v36  ;;  %v4034_v59 = vmul.f32 0.70710677, %v8779_v47  ;;  %v4209_v43 = vmul.f32 %v4145_v60, %v8762_v22 }
 0xdc2   : > { %v6531_v62 = vpop.eup %6530  ;;  %v4144_v3 = vadd.f32 1.0, %v6529_v58  ;;  %6554 = verf.f32 %v4029_v45  ;;  %v4261_v34 = vpack.c.bf16 %v4201_v33, %v4197_v53  ;;  %v4263_v39 = vpack.c.bf16 %v4203_v19, %v4199_v52 }
 0xdc3   : > { %v6533_v24 = vpop.eup %6532  ;;  %v4142_v37 = vadd.f32 1.0, %v6531_v62  ;;  %v4211_v13 = vmul.f32 %v4147_v35, %v8764_v0  ;;  %6556 = verf.f32 %v4031_v50  ;;  %v4205_v36 = vmul.f32 %v4141_v48, %v8749_v1 }
 0xdc4   : > { %v6535_v31 = vpop.eup %6534  ;;  %v4146_v9 = vadd.f32 1.0, %v6533_v24  ;;  %6558 = verf.f32 %v4032_v56  ;;  %4580 = vmatprep.mubr.bf16.mxu0 %v4261_v34  ;;  %4677 = vmatprep.mubr.bf16.mxu1 %v4263_v39  ;;  %v4033_v22 = vmul.f32 0.70710677, %v8796_v49  ;;  %v4035_v53 = vmul.f32 0.70710677, %v8798_v40 }
 0xdc5   : > { %v8803_v16 = vpop.f32.mrf.mxu0  ;;  %v8805_v27 = vpop.f32.mrf.mxu1  ;;  %v4207_v19 = vmul.f32 %v4143_v57, %v8756_v46  ;;  %v8823_v0 = vmul.f32 0.5, %v8724_v17  ;;  %v3960_v60 = vmul.f32 0.5, %v8730_v7  ;;  %6560 = verf.f32 %v4034_v59  ;;  %4581 = vmatmul.mubr.bf16.vlgmr.msra.gmra.mxu0 %v4260_v12  ;;  %4678 = vmatmul.mubr.bf16.vlgmr.msra.gmra.mxu1 %v4262_v2 }
 0xdc6   : > { %v6537_v15 = vpop.eup %6536  ;;  %v4208_v45 = vmul.f32 %v4144_v3, %v8758_v5  ;;  %v3962_v62 = vmul.f32 0.5, %v8732_v54  ;;  %6562 = verf.f32 %v4033_v22  ;;  %v4265_v35 = vpack.c.bf16 %v4209_v43, %v4205_v36 }
 0xdc7   : > { %v8809_v14 = vpop.f32.mrf.mxu0  ;;  %v8811_v6 = vpop.f32.mrf.mxu1  ;;  %v4204_v17 = vmul.f32 %v4140_v63, %v8745_v41  ;;  %v4210_v48 = vmul.f32 %v4146_v9, %v8760_v10  ;;  %6564 = verf.f32 %v4035_v53  ;;  %v4267_v59 = vpack.c.bf16 %v4211_v13, %v4207_v19 }
 0xdc8   : > { %v6539_v21 = vpop.eup %6538  ;;  %v4206_v7 = vmul.f32 %v4142_v37, %v8747_v11  ;;  %v4148_v2 = vadd.f32 1.0, %v6535_v31  ;;  %v3961_v5 = vmul.f32 0.5, %v8740_v28  ;;  %v3963_v54 = vmul.f32 0.5, %v8742_v26  ;;  %4588 = vmatprep.mubr.bf16.mxu0 %v4265_v35 }
 0xdc9   : > { %v8817_v52 = vpop.f32.mrf.mxu0  ;;  %v8819_v58 = vpop.f32.mrf.mxu1  ;;  %v8842_v41 = vmul.f32 0.5, %v8752_v29  ;;  %v8845_v13 = vmul.f32 0.5, %v8754_v25  ;;  %v8848_v9 = vmul.f32 0.5, %v8766_v61  ;;  %4685 = vmatprep.mubr.bf16.mxu1 %v4267_v59  ;;  %v4264_v28 = vpack.c.bf16 %v4208_v45, %v4204_v17 }
 0xdca   : > { %v6541_v33 = vpop.eup %6540  ;;  %v4149_v11 = vadd.f32 1.0, %v6539_v21  ;;  %v4036_v10 = vmul.f32 0.70710677, %v8803_v16  ;;  %v4266_v34 = vpack.c.bf16 %v4210_v48, %v4206_v7  ;;  %v4038_v37 = vmul.f32 0.70710677, %v8805_v27 }
 0xdcb   : > { %v6543_v1 = vpop.eup %6542  ;;  %v8828_v50 = vpop.f32.mrf.mxu0  ;;  %v4152_v39 = vadd.f32 1.0, %v6541_v33  ;;  %v4212_v25 = vmul.f32 %v4148_v2, %v8775_v55  ;;  %v4150_v36 = vadd.f32 1.0, %v6537_v15  ;;  %v4037_v22 = vmul.f32 0.70710677, %v8809_v14 }
 0xdcc   : > { %v8830_v24 = vpop.f32.mrf.mxu1  ;;  %v6545_v46 = vpop.eup %6544  ;;  %v4153_v43 = vadd.f32 1.0, %v6543_v1  ;;  %v8863_v45 = vmul.f32 0.5, %v8768_v44  ;;  %v3968_v33 = vmul.f32 0.5, %v8777_v51  ;;  %v4040_v35 = vmul.f32 0.70710677, %v8817_v52 }
 0xdcd   : > { %v6547_v12 = vpop.eup %6546  ;;  %v8837_v56 = vpop.f32.mrf.mxu0  ;;  %v4155_v26 = vadd.f32 1.0, %v6545_v46  ;;  %4589 = vmatmul.mubr.bf16.gmra.mxu0 %v4264_v28  ;;  %4686 = vmatmul.mubr.bf16.gmra.mxu1 %v4266_v34  ;;  %v4213_v15 = vmul.f32 %v4149_v11, %v8788_v18  ;;  %6566 = verf.f32 %v4036_v10  ;;  %v4042_v17 = vmul.f32 0.70710677, %v8819_v58 }
 0xdce   : > { %v8839_v57 = vpop.f32.mrf.mxu1  ;;  %v6549_v3 = vpop.eup %6548  ;;  %v4154_v29 = vadd.f32 1.0, %v6547_v12  ;;  %v4217_v1 = vmul.f32 %v4153_v43, %v3961_v5  ;;  %v4216_v44 = vmul.f32 %v4152_v39, %v3960_v60  ;;  %6568 = verf.f32 %v4038_v37 }
 0xdcf   : > { %v8851_v63 = vpop.f32.mrf.mxu0  ;;  %v4151_v61 = vadd.f32 1.0, %v6549_v3  ;;  %v6551_v19 = vpop.eup %6550  ;;  %v4219_v46 = vmul.f32 %v4155_v26, %v3963_v54  ;;  %v4039_v51 = vmul.f32 0.70710677, %v8811_v6  ;;  %v4214_v5 = vmul.f32 %v4150_v36, %v8785_v38 }
 0xdd0   : > { %v8853_v31 = vpop.f32.mrf.mxu1  ;;  %v6553_v55 = vpop.eup %6552  ;;  %v4218_v7 = vmul.f32 %v4154_v29, %v3962_v62  ;;  %6570 = verf.f32 %v4037_v22  ;;  %v4041_v18 = vmul.f32 0.70710677, %v8828_v50  ;;  %v3970_v11 = vmul.f32 0.5, %v8779_v47 }
 0xdd1   : > { %v8858_v53 = vpop.f32.mrf.mxu0  ;;  %v6555_v12 = vpop.eup %6554  ;;  %v4215_v3 = vmul.f32 %v4151_v61, %v8823_v0  ;;  %6572 = verf.f32 %v4040_v35  ;;  %v4043_v60 = vmul.f32 0.70710677, %v8830_v24  ;;  %v4269_v62 = vpack.c.bf16 %v4217_v1, %v4213_v15 }
 0xdd2   : > { %v8860_v21 = vpop.f32.mrf.mxu1  ;;  %v6557_v2 = vpop.eup %6556  ;;  %v3969_v10 = vmul.f32 0.5, %v8796_v49  ;;  %v3971_v38 = vmul.f32 0.5, %v8798_v40  ;;  %6574 = verf.f32 %v4042_v17  ;;  %v4268_v39 = vpack.c.bf16 %v4216_v44, %v4212_v25 }
 0xdd3   : > { %v8869_v48 = vpop.f32.mrf.mxu0  ;;  %v6559_v28 = vpop.eup %6558  ;;  %v4271_v0 = vpack.c.bf16 %v4219_v46, %v4215_v3  ;;  %v4270_v29 = vpack.c.bf16 %v4218_v7, %v4214_v5  ;;  %6576 = verf.f32 %v4039_v51  ;;  %4596 = vmatprep.mubr.bf16.mxu0 %v4269_v62  ;;  %v4045_v37 = vmul.f32 0.70710677, %v8851_v63 }
 0xdd4   : > { %v8871_v59 = vpop.f32.mrf.mxu1  ;;  %v6561_v26 = vpop.eup %6560  ;;  %v4160_v61 = vadd.f32 1.0, %v6559_v28  ;;  %v8889_v1 = vmul.f32 0.5, %v8803_v16  ;;  %6578 = verf.f32 %v4041_v18  ;;  %v8894_v25 = vmul.f32 0.5, %v8805_v27 }
 0xdd5   : > { %v8877_v54 = vpop.f32.mrf.mxu0  ;;  %v6563_v34 = vpop.eup %6562  ;;  %4693 = vmatprep.mubr.bf16.mxu1 %v4271_v0  ;;  %6580 = verf.f32 %v4043_v60  ;;  %v4047_v35 = vmul.f32 0.70710677, %v8853_v31  ;;  %4597 = vmatmul.mubr.bf16.gmra.mxu0 %v4268_v39  ;;  %v4157_v15 = vadd.f32 1.0, %v6555_v12  ;;  %v4162_v46 = vadd.f32 1.0, %v6561_v26 }
 0xdd6   : > { %v8879_v43 = vpop.f32.mrf.mxu1  ;;  %v6565_v47 = vpop.eup %6564  ;;  %v4161_v22 = vadd.f32 1.0, %v6563_v34  ;;  %4694 = vmatmul.mubr.bf16.gmra.mxu1 %v4270_v29  ;;  %v8898_v17 = vmul.f32 0.5, %v8809_v14  ;;  %v8901_v16 = vmul.f32 0.5, %v8811_v6  ;;  %v4156_v44 = vadd.f32 1.0, %v6551_v19 }
 0xdd7   : > { %v8886_v36 = vpop.f32.mrf.mxu0  ;;  %v4163_v40 = vadd.f32 1.0, %v6565_v47  ;;  %v4158_v7 = vadd.f32 1.0, %v6553_v55  ;;  %v4159_v51 = vadd.f32 1.0, %v6557_v2  ;;  %6582 = verf.f32 %v4045_v37 }
 0xdd8   : > { %v8891_v49 = vpop.f32.mrf.mxu1  ;;  %v4224_v27 = vmul.f32 %v4160_v61, %v3968_v33  ;;  %v4225_v3 = vmul.f32 %v4161_v22, %v3969_v10  ;;  %v4044_v18 = vmul.f32 0.70710677, %v8837_v56  ;;  %v4049_v28 = vmul.f32 0.70710677, %v8869_v48 }
 0xdd9   : > { %v8903_v5 = vpop.f32.mrf.mxu0  ;;  %v4227_v60 = vmul.f32 %v4163_v40, %v3971_v38  ;;  %6584 = verf.f32 %v4047_v35  ;;  %v4048_v14 = vmul.f32 0.70710677, %v8858_v53  ;;  %v4051_v6 = vmul.f32 0.70710677, %v8871_v59 }
 0xdda   : > { %v8907_v12 = vpop.f32.mrf.mxu1  ;;  %v4221_v19 = vmul.f32 %v4157_v15, %v8848_v9  ;;  %v4226_v55 = vmul.f32 %v4162_v46, %v3970_v11  ;;  %v4050_v2 = vmul.f32 0.70710677, %v8860_v21  ;;  %6586 = verf.f32 %v4049_v28  ;;  %v6567_v33 = vpop.eup %6566 }
 0xddb   : > { %v4220_v62 = vmul.f32 %v4156_v44, %v8842_v41  ;;  %v4223_v26 = vmul.f32 %v4159_v51, %v8863_v45  ;;  %v4046_v10 = vmul.f32 0.70710677, %v8839_v57  ;;  %6588 = verf.f32 %v4051_v6  ;;  %v8916_v38 = vpop.f32.mrf.mxu0  ;;  %v6569_v0 = vpop.eup %6568 }
 0xddc   : > { %v4222_v34 = vmul.f32 %v4158_v7, %v8845_v13  ;;  %v3976_v39 = vmul.f32 0.5, %v8817_v52  ;;  %6590 = verf.f32 %v4044_v18  ;;  %v4273_v9 = vpack.c.bf16 %v4225_v3, %v4221_v19  ;;  %v8920_v11 = vpop.f32.mrf.mxu1 }
 0xddd   : > { %v6571_v29 = vpop.eup %6570  ;;  %v4272_v37 = vpack.c.bf16 %v4224_v27, %v4220_v62  ;;  %6592 = verf.f32 %v4048_v14  ;;  %v4052_v41 = vmul.f32 0.70710677, %v8877_v54  ;;  %v4275_v45 = vpack.c.bf16 %v4227_v60, %v4223_v26  ;;  %v8927_v46 = vpop.f32.mrf.mxu0 }
 0xdde   : > { %v6573_v47 = vpop.eup %6572  ;;  %v4274_v61 = vpack.c.bf16 %v4226_v55, %v4222_v34  ;;  %v3978_v22 = vmul.f32 0.5, %v8819_v58  ;;  %6594 = verf.f32 %v4050_v2  ;;  %4604 = vmatprep.mubr.bf16.mxu0 %v4273_v9  ;;  %v4053_v13 = vmul.f32 0.70710677, %v8886_v36  ;;  %v8936_v3 = vpop.f32.mrf.mxu1 }
 0xddf   : > { %v6575_v40 = vpop.eup %6574  ;;  %v4164_v52 = vadd.f32 1.0, %v6567_v33  ;;  %v3977_v35 = vmul.f32 0.5, %v8828_v50  ;;  %v3979_v15 = vmul.f32 0.5, %v8830_v24  ;;  %6596 = verf.f32 %v4046_v10  ;;  %4701 = vmatprep.mubr.bf16.mxu1 %v4275_v45  ;;  %4605 = vmatmul.mubr.bf16.gmra.mxu0 %v4272_v37 }
 0xde0   : > { %v6577_v44 = vpop.eup %6576  ;;  %v4166_v7 = vadd.f32 1.0, %v6569_v0  ;;  %v3981_v51 = vmul.f32 0.5, %v8851_v63  ;;  %v8931_v58 = vmul.f32 0.5, %v8853_v31  ;;  %v8934_v27 = vmul.f32 0.5, %v8858_v53  ;;  %4702 = vmatmul.mubr.bf16.gmra.mxu1 %v4274_v61  ;;  %v8951_v26 = vpop.f32.mrf.mxu1 }
 0xde1   : > { %v6579_v50 = vpop.eup %6578  ;;  %v3985_v24 = vmul.f32 0.5, %v8869_v48  ;;  %6598 = verf.f32 %v4052_v41  ;;  %v4055_v18 = vmul.f32 0.70710677, %v8891_v49  ;;  %v4056_v28 = vmul.f32 0.70710677, %v8903_v5  ;;  %v8947_v48 = vpop.f32.mrf.mxu0 }
 0xde2   : > { %v6581_v60 = vpop.eup %6580  ;;  %v4168_v14 = vadd.f32 1.0, %v6573_v47  ;;  %v4170_v63 = vadd.f32 1.0, %v6575_v40  ;;  %6600 = verf.f32 %v4053_v13  ;;  %v4058_v31 = vmul.f32 0.70710677, %v8907_v12 }
 0xde3   : > { %v8943_v53 = vmul.f32 %v4164_v52, %v8889_v1  ;;  %v3987_v6 = vmul.f32 0.5, %v8871_v59  ;;  %6602 = verf.f32 %v4055_v18  ;;  %v4057_v19 = vmul.f32 0.70710677, %v8916_v38  ;;  %v8956_v61 = vpop.f32.mrf.mxu0 }
 0xde4   : > { %v6583_v55 = vpop.eup %6582  ;;  %v4165_v2 = vadd.f32 1.0, %v6571_v29  ;;  %v4054_v33 = vmul.f32 0.70710677, %v8879_v43  ;;  %6604 = verf.f32 %v4056_v28  ;;  %v4059_v62 = vmul.f32 0.70710677, %v8920_v11 }
 0xde5   : > { %v4167_v10 = vadd.f32 1.0, %v6577_v44  ;;  %v4169_v0 = vadd.f32 1.0, %v6579_v50  ;;  %v4171_v1 = vadd.f32 1.0, %v6581_v60  ;;  %6606 = verf.f32 %v4058_v31 }
 0xde6   : > { %v6585_v34 = vpop.eup %6584  ;;  %v4232_v59 = vmul.f32 %v4168_v14, %v3976_v39  ;;  %v4234_v9 = vmul.f32 %v4170_v63, %v3978_v22  ;;  %6608 = verf.f32 %v4057_v19  ;;  %v4060_v37 = vmul.f32 0.70710677, %v8927_v46  ;;  %v8960_v22 = vpop.f32.mrf.mxu1 }
 0xde7   : > { %v6587_v41 = vpop.eup %6586  ;;  %v4230_v29 = vmul.f32 %v4166_v7, %v8894_v25  ;;  %v4173_v45 = vadd.f32 1.0, %v6583_v55  ;;  %6610 = verf.f32 %v4059_v62  ;;  %v4062_v47 = vmul.f32 0.70710677, %v8936_v3 }
 0xde8   : > { %v6589_v13 = vpop.eup %6588  ;;  %v4229_v40 = vmul.f32 %v4165_v2, %v8898_v17  ;;  %v4177_v52 = vadd.f32 1.0, %v6587_v41  ;;  %6612 = verf.f32 %v4054_v33  ;;  %v4061_v39 = vmul.f32 0.70710677, %v8947_v48  ;;  %v8965_v2 = vpop.f32.mrf.mxu0 }
 0xde9   : > { %v6591_v44 = vpop.eup %6590  ;;  %v4231_v50 = vmul.f32 %v4167_v10, %v8901_v16  ;;  %v4233_v18 = vmul.f32 %v4169_v0, %v3977_v35  ;;  %v4235_v25 = vmul.f32 %v4171_v1, %v3979_v15  ;;  %v4179_v7 = vadd.f32 1.0, %v6589_v13  ;;  %v8969_v15 = vpop.f32.mrf.mxu1 }
 0xdea   : > { %v6593_v28 = vpop.eup %6592  ;;  %v4276_v60 = vpack.c.bf16 %v4232_v59, %v8943_v53  ;;  %v4278_v14 = vpack.c.bf16 %v4234_v9, %v4230_v29  ;;  %v4175_v63 = vadd.f32 1.0, %v6585_v34  ;;  %6614 = verf.f32 %v4060_v37 }
 0xdeb   : > { %v6595_v31 = vpop.eup %6594  ;;  %v4237_v17 = vmul.f32 %v4173_v45, %v3981_v51  ;;  %v4241_v19 = vmul.f32 %v4177_v52, %v3985_v24  ;;  %6616 = verf.f32 %v4062_v47  ;;  %v4063_v55 = vmul.f32 0.70710677, %v8951_v26 }
 0xdec   : > { %v6597_v33 = vpop.eup %6596  ;;  %v4243_v62 = vmul.f32 %v4179_v7, %v3987_v6  ;;  %6618 = verf.f32 %v4061_v39  ;;  %v4064_v16 = vmul.f32 0.70710677, %v8956_v61  ;;  %v4066_v35 = vmul.f32 0.70710677, %v8960_v22 }
 0xded   : > { %v4176_v53 = vadd.f32 1.0, %v6593_v28  ;;  %6620 = verf.f32 %v4063_v55  ;;  %v4277_v10 = vpack.c.bf16 %v4233_v18, %v4229_v40  ;;  %v4279_v0 = vpack.c.bf16 %v4235_v25, %v4231_v50 }
 0xdee   : > { %v6599_v51 = vpop.eup %6598  ;;  %v4239_v24 = vmul.f32 %v4175_v63, %v8931_v58  ;;  %v4178_v1 = vadd.f32 1.0, %v6595_v31  ;;  %6622 = verf.f32 %v4064_v16  ;;  %v4065_v34 = vmul.f32 0.70710677, %v8965_v2 }
 0xdef   : > { %v6601_v59 = vpop.eup %6600  ;;  %v4172_v6 = vadd.f32 1.0, %v6591_v44  ;;  %6624 = verf.f32 %v4066_v35  ;;  %4612 = vmatprep.mubr.bf16.mxu0 %v4277_v10  ;;  %4709 = vmatprep.mubr.bf16.mxu1 %v4279_v0  ;;  %v4067_v9 = vmul.f32 0.70710677, %v8969_v15  ;;  %v4281_v37 = vpack.c.bf16 %v4241_v19, %v4237_v17 }
 0xdf0   : > { %v6603_v41 = vpop.eup %6602  ;;  %v4174_v29 = vadd.f32 1.0, %v6597_v33  ;;  %v3986_v45 = vmul.f32 0.5, %v8860_v21  ;;  %6626 = verf.f32 %v4065_v34  ;;  %4613 = vmatmul.mubr.bf16.gmra.mxu0 %v4276_v60  ;;  %4710 = vmatmul.mubr.bf16.gmra.mxu1 %v4278_v14  ;;  %v4283_v58 = vpack.c.bf16 %v4243_v62, %v4239_v24 }
 0xdf1   : > { %v6605_v47 = vpop.eup %6604  ;;  %v3980_v13 = vmul.f32 0.5, %v8837_v56  ;;  %v4240_v40 = vmul.f32 %v4176_v53, %v8934_v27  ;;  %6628 = verf.f32 %v4067_v9  ;;  %4620 = vmatprep.mubr.bf16.mxu0 %v4281_v37  ;;  %v3982_v39 = vmul.f32 0.5, %v8839_v57 }
 0xdf2   : > { %v6607_v52 = vpop.eup %6606  ;;  %v4242_v44 = vmul.f32 %v4178_v1, %v3986_v45  ;;  %v4181_v50 = vadd.f32 1.0, %v6601_v59  ;;  %4717 = vmatprep.mubr.bf16.mxu1 %v4283_v58  ;;  %v3989_v21 = vmul.f32 0.5, %v8886_v36  ;;  %v4183_v7 = vadd.f32 1.0, %v6603_v41 }
 0xdf3   : > { %v6609_v18 = vpop.eup %6608  ;;  %v4236_v25 = vmul.f32 %v4172_v6, %v3980_v13  ;;  %v4238_v60 = vmul.f32 %v4174_v29, %v3982_v39  ;;  %v3991_v14 = vmul.f32 0.5, %v8891_v49  ;;  %v3993_v56 = vmul.f32 0.5, %v8916_v38 }
 0xdf4   : > { %v6611_v28 = vpop.eup %6610  ;;  %v4185_v27 = vadd.f32 1.0, %v6609_v18  ;;  %v4184_v17 = vadd.f32 1.0, %v6605_v47  ;;  %v3995_v57 = vmul.f32 0.5, %v8920_v11  ;;  %v4245_v33 = vmul.f32 %v4181_v50, %v3989_v21 }
 0xdf5   : > { %v6613_v63 = vpop.eup %6612  ;;  %v4280_v31 = vpack.c.bf16 %v4240_v40, %v4236_v25  ;;  %v4187_v19 = vadd.f32 1.0, %v6611_v28  ;;  %v4282_v55 = vpack.c.bf16 %v4242_v44, %v4238_v60  ;;  %v4186_v62 = vadd.f32 1.0, %v6607_v52 }
 0xdf6   : > { %v4249_v16 = vmul.f32 %v4185_v27, %v3993_v56  ;;  %v4180_v36 = vadd.f32 1.0, %v6599_v51  ;;  %v4247_v53 = vmul.f32 %v4183_v7, %v3991_v14  ;;  %v3992_v10 = vmul.f32 0.5, %v8903_v5 }
 0xdf7   : > { %v6615_v35 = vpop.eup %6614  ;;  %v4251_v0 = vmul.f32 %v4187_v19, %v3995_v57  ;;  %v4182_v24 = vadd.f32 1.0, %v6613_v63  ;;  %v3994_v38 = vmul.f32 0.5, %v8907_v12  ;;  %v3988_v11 = vmul.f32 0.5, %v8877_v54 }
 0xdf8   : > { %v6617_v49 = vpop.eup %6616  ;;  %4621 = vmatmul.mubr.bf16.gmra.mxu0 %v4280_v31  ;;  %4718 = vmatmul.mubr.bf16.gmra.mxu1 %v4282_v55  ;;  %v4285_v1 = vpack.c.bf16 %v4249_v16, %v4245_v33  ;;  %v4248_v59 = vmul.f32 %v4184_v17, %v3992_v10  ;;  %v3990_v37 = vmul.f32 0.5, %v8879_v43  ;;  %v3997_v12 = vmul.f32 0.5, %v8947_v48 }
 0xdf9   : > { %v6619_v34 = vpop.eup %6618  ;;  %v4287_v6 = vpack.c.bf16 %v4251_v0, %v4247_v53  ;;  %v4250_v51 = vmul.f32 %v4186_v62, %v3994_v38  ;;  %v4244_v5 = vmul.f32 %v4180_v36, %v3988_v11  ;;  %v3999_v40 = vmul.f32 0.5, %v8951_v26 }
 0xdfa   : > { %v6621_v9 = vpop.eup %6620  ;;  %4628 = vmatprep.mubr.bf16.mxu0 %v4285_v1  ;;  %v4246_v45 = vmul.f32 %v4182_v24, %v3990_v37  ;;  %v4189_v58 = vadd.f32 1.0, %v6619_v34  ;;  %v4001_v52 = vmul.f32 0.5, %v8965_v2  ;;  %v4000_v25 = vmul.f32 0.5, %v8956_v61 }
 0xdfb   : > { %v6623_v41 = vpop.eup %6622  ;;  %4725 = vmatprep.mubr.bf16.mxu1 %v4287_v6  ;;  %v4284_v13 = vpack.c.bf16 %v4248_v59, %v4244_v5  ;;  %v4191_v54 = vadd.f32 1.0, %v6621_v9  ;;  %v4002_v21 = vmul.f32 0.5, %v8960_v22  ;;  %v4003_v7 = vmul.f32 0.5, %v8969_v15 }
 0xdfc   : > { %v6625_v29 = vpop.eup %6624  ;;  %v4286_v44 = vpack.c.bf16 %v4250_v51, %v4246_v45  ;;  %v4192_v43 = vadd.f32 1.0, %v6623_v41  ;;  %v4188_v28 = vadd.f32 1.0, %v6615_v35  ;;  %v4190_v60 = vadd.f32 1.0, %v6617_v49 }
 0xdfd   : > { %v6627_v47 = vpop.eup %6626  ;;  %v4194_v50 = vadd.f32 1.0, %v6625_v29  ;;  %v4253_v14 = vmul.f32 %v4189_v58, %v3997_v12  ;;  %v3996_v26 = vmul.f32 0.5, %v8927_v46  ;;  %v4255_v2 = vmul.f32 %v4191_v54, %v3999_v40 }
 0xdfe   : > { %v6629_v39 = vpop.eup %6628  ;;  %v4193_v18 = vadd.f32 1.0, %v6627_v47  ;;  %v3998_v63 = vmul.f32 0.5, %v8936_v3  ;;  %v4256_v31 = vmul.f32 %v4192_v43, %v4000_v25 }
 0xdff   : > { %v4195_v48 = vadd.f32 1.0, %v6629_v39  ;;  %v4258_v17 = vmul.f32 %v4194_v50, %v4002_v21  ;;  %v4252_v22 = vmul.f32 %v4188_v28, %v3996_v26 }
 0xe00   : > { %v4257_v56 = vmul.f32 %v4193_v18, %v4001_v52  ;;  %4629 = vmatmul.mubr.bf16.gmra.mxu0 %v4284_v13  ;;  %4726 = vmatmul.mubr.bf16.gmra.mxu1 %v4286_v44  ;;  %v4254_v19 = vmul.f32 %v4190_v60, %v3998_v63 }
 0xe01   : > { %v4259_v27 = vmul.f32 %v4195_v48, %v4003_v7  ;;  %v4288_v15 = vpack.c.bf16 %v4256_v31, %v4252_v22 }
 0xe02   : > { %v4289_v61 = vpack.c.bf16 %v4257_v56, %v4253_v14  ;;  %v4290_v55 = vpack.c.bf16 %v4258_v17, %v4254_v19 }
 0xe03   : > { %v4291_v57 = vpack.c.bf16 %v4259_v27, %v4255_v2 }
 0xe04   : > { %4636 = vmatprep.mubr.bf16.mxu0 %v4289_v61 }
 0xe05   : > { %4733 = vmatprep.mubr.bf16.mxu1 %v4291_v57 }
 0xe08   : > { %4637 = vmatmul.mubr.bf16.gmra.mxu0 %v4288_v15  ;;  %4734 = vmatmul.mubr.bf16.gmra.mxu1 %v4290_v55 }
 0xe85   : > { %v5554_v33 = vpop.f32.mrf.mxu0  ;;  %v5618_v62 = vpop.f32.mrf.mxu1 }
 0xe87   : > { %v5555_v16 = vpop.f32.mrf.mxu0  ;;  %v5619_v46 = vpop.f32.mrf.mxu1 }
 0xe88   : > { %v5556_v35 = vadd.f32 %v5555_v16, %v5554_v33  ;;  %v5620_v36 = vadd.f32 %v5619_v46, %v5618_v62 }
 0xe89   : > { %v5557_v53 = vpop.f32.mrf.mxu0  ;;  %v5621_v3 = vpop.f32.mrf.mxu1 }
 0xe8a   : > { %v4680_v10 = vadd.f32 %v5620_v36, %v5556_v35 }
 0xe8b   : > { %v5558_v0 = vpop.f32.mrf.mxu0  ;;  %v5622_v49 = vpop.f32.mrf.mxu1 }
 0xe8c   : > { %v5559_v24 = vadd.f32 %v5558_v0, %v5557_v53  ;;  %v5623_v38 = vadd.f32 %v5622_v49, %v5621_v3  ;;  %v8995_v1 = vadd.f32 %v4680_v10, %v8537_v8 }
 0xe8d   : > { %v5560_v34 = vpop.f32.mrf.mxu0  ;;  %v5624_v11 = vpop.f32.mrf.mxu1 }
 0xe8e   : > { %v4683_v59 = vadd.f32 %v5623_v38, %v5559_v24  ;;  %4758 = vadd.xlane.f32.xlu1 %v8995_v1 }
 0xe8f   : > { %v5561_v6 = vpop.f32.mrf.mxu0  ;;  %v5625_v9 = vpop.f32.mrf.mxu1 }
 0xe90   : > { %v5562_v37 = vadd.f32 %v5561_v6, %v5560_v34  ;;  %v5626_v51 = vadd.f32 %v5625_v9, %v5624_v11  ;;  %v8999_v41 = vadd.f32 %v4683_v59, %v8540_v42  ;;  %v9326_v11 = vld [vmem:[#allocation5_spill] sm:$0xff] }
 0xe91   : > { %v5563_v5 = vpop.f32.mrf.mxu0  ;;  %v5627_v29 = vpop.f32.mrf.mxu1 }
 0xe92   : > { %v4688_v45 = vadd.f32 %v5626_v51, %v5562_v37  ;;  %4760 = vadd.xlane.f32.xlu0 %v8999_v41 }
 0xe93   : > { %v5564_v12 = vpop.f32.mrf.mxu0  ;;  %v5628_v8 = vpop.f32.mrf.mxu1 }
 0xe94   : > { %v5565_v58 = vadd.f32 %v5564_v12, %v5563_v5  ;;  %v5629_v47 = vadd.f32 %v5628_v8, %v5627_v29  ;;  %v9003_v13 = vadd.f32 %v4688_v45, %v8576_v32  ;;  %v9327_v12 = vld [vmem:[#allocation6_spill] sm:$0xff] }
 0xe95   : > { %v5566_v40 = vpop.f32.mrf.mxu0 }
 0xe96   : > { %v5630_v54 = vpop.f32.mrf.mxu1  ;;  %v4691_v52 = vadd.f32 %v5629_v47, %v5565_v58  ;;  %4762 = vadd.xlane.f32.xlu1 %v9003_v13 }
 0xe97   : > { %v5567_v39 = vpop.f32.mrf.mxu0 }
 0xe98   : > { %v5631_v42 = vpop.f32.mrf.mxu1  ;;  %v5568_v44 = vadd.f32 %v5567_v39, %v5566_v40  ;;  %v9007_v50 = vadd.f32 %v4691_v52, %v8561_v23 }
 0xe99   : > { %v5632_v43 = vadd.f32 %v5631_v42, %v5630_v54  ;;  %v5569_v18 = vpop.f32.mrf.mxu0 }
 0xe9a   : > { %v5633_v25 = vpop.f32.mrf.mxu1  ;;  %4764 = vadd.xlane.f32.xlu0 %v9007_v50 }
 0xe9b   : > { %v4696_v21 = vadd.f32 %v5632_v43, %v5568_v44  ;;  %v5570_v7 = vpop.f32.mrf.mxu0  ;;  %v9328_v44 = vld [vmem:[#allocation9_spill] sm:$0xff] }
 0xe9c   : > { %v5634_v32 = vpop.f32.mrf.mxu1  ;;  %v5571_v48 = vadd.f32 %v5570_v7, %v5569_v18 }
 0xe9d   : > { %v5635_v28 = vadd.f32 %v5634_v32, %v5633_v25  ;;  %v9011_v60 = vadd.f32 %v4696_v21, %v8606_v20 }
 0xe9f   : > { %v4699_v14 = vadd.f32 %v5635_v28, %v5571_v48  ;;  %4766 = vadd.xlane.f32.xlu1 %v9011_v60  ;;  %v5572_v56 = vpop.f32.mrf.mxu0 }
 0xea0   : > { %v5636_v26 = vpop.f32.mrf.mxu1 }
 0xea1   : > { %v9015_v23 = vadd.f32 %v4699_v14, %v8597_v30  ;;  %v5573_v2 = vpop.f32.mrf.mxu0  ;;  %v9325_v30 = vld [vmem:[#allocation14_spill] sm:$0xff]  ;;  %v9329_v14 = vld [vmem:[#allocation3_spill] sm:$0xff] }
 0xea2   : > { %v5574_v27 = vadd.f32 %v5573_v2, %v5572_v56  ;;  %v5637_v63 = vpop.f32.mrf.mxu1 }
 0xea3   : > { %4768 = vadd.xlane.f32.xlu0 %v9015_v23  ;;  %v5638_v31 = vadd.f32 %v5637_v63, %v5636_v26  ;;  %v5575_v17 = vpop.f32.mrf.mxu0 }
 0xea4   : > { %v5639_v61 = vpop.f32.mrf.mxu1 }
 0xea5   : > { %v4704_v57 = vadd.f32 %v5638_v31, %v5574_v27  ;;  %v5576_v22 = vpop.f32.mrf.mxu0 }
 0xea6   : > { %v5577_v20 = vadd.f32 %v5576_v22, %v5575_v17  ;;  %v5640_v19 = vpop.f32.mrf.mxu1 }
 0xea7   : > { %v5641_v15 = vadd.f32 %v5640_v19, %v5639_v61  ;;  %v9019_v55 = vadd.f32 %v4704_v57, %v8618_v4  ;;  %v9330_v57 = vld [vmem:[#allocation15_spill] sm:$0xff] }
 0xea9   : > { %v4707_v33 = vadd.f32 %v5641_v15, %v5577_v20  ;;  %4770 = vadd.xlane.f32.xlu1 %v9019_v55 }
 0xeab   : > { %v9023_v62 = vadd.f32 %v4707_v33, %v9325_v30 }
 0xead   : > { %4772 = vadd.xlane.f32.xlu0 %v9023_v62 }
 0xeb0   : > { %v5578_v16 = vpop.f32.mrf.mxu0  ;;  %v5642_v46 = vpop.f32.mrf.mxu1 }
 0xeb2   : > { %v5579_v35 = vpop.f32.mrf.mxu0  ;;  %v5643_v36 = vpop.f32.mrf.mxu1 }
 0xeb3   : > { %v5580_v53 = vadd.f32 %v5579_v35, %v5578_v16  ;;  %v5644_v3 = vadd.f32 %v5643_v36, %v5642_v46  ;;  %v9331_v35 = vld [vmem:[#allocation8_spill] sm:$0xff] }
 0xeb4   : > { %v5581_v10 = vpop.f32.mrf.mxu0  ;;  %v5645_v0 = vpop.f32.mrf.mxu1 }
 0xeb5   : > { %v4712_v49 = vadd.f32 %v5644_v3, %v5580_v53 }
 0xeb6   : > { %v5582_v24 = vpop.f32.mrf.mxu0  ;;  %v5646_v4 = vpop.f32.mrf.mxu1 }
 0xeb7   : > { %v5583_v38 = vadd.f32 %v5582_v24, %v5581_v10  ;;  %v5647_v34 = vadd.f32 %v5646_v4, %v5645_v0  ;;  %v9027_v59 = vadd.f32 %v4712_v49, %v9326_v11 }
 0xeb8   : > { %v5584_v6 = vpop.f32.mrf.mxu0  ;;  %v5648_v9 = vpop.f32.mrf.mxu1 }
 0xeb9   : > { %v4715_v37 = vadd.f32 %v5647_v34, %v5583_v38  ;;  %4774 = vadd.xlane.f32.xlu1 %v9027_v59  ;;  %v9332_v38 = vld [vmem:[#allocation2_spill] sm:$0xff] }
 0xeba   : > { %v5585_v51 = vpop.f32.mrf.mxu0  ;;  %v5649_v5 = vpop.f32.mrf.mxu1 }
 0xebb   : > { %v5586_v29 = vadd.f32 %v5585_v51, %v5584_v6  ;;  %v5650_v45 = vadd.f32 %v5649_v5, %v5648_v9  ;;  %v9031_v8 = vadd.f32 %v4715_v37, %v9327_v12  ;;  %v9333_v6 = vld [vmem:[#allocation16_spill] sm:$0xff] }
 0xebc   : > { %v5587_v58 = vpop.f32.mrf.mxu0  ;;  %v5651_v47 = vpop.f32.mrf.mxu1 }
 0xebd   : > { %v4720_v40 = vadd.f32 %v5650_v45, %v5586_v29  ;;  %4776 = vadd.xlane.f32.xlu0 %v9031_v8 }
 0xebe   : > { %v5588_v54 = vpop.f32.mrf.mxu0  ;;  %v5652_v52 = vpop.f32.mrf.mxu1 }
 0xebf   : > { %v5589_v39 = vadd.f32 %v5588_v54, %v5587_v58  ;;  %v5653_v42 = vadd.f32 %v5652_v52, %v5651_v47  ;;  %v9035_v43 = vadd.f32 %v4720_v40, %v9328_v44 }
 0xec0   : > { %v5590_v18 = vpop.f32.mrf.mxu0  ;;  %v5654_v25 = vpop.f32.mrf.mxu1 }
 0xec1   : > { %v4723_v21 = vadd.f32 %v5653_v42, %v5589_v39  ;;  %4778 = vadd.xlane.f32.xlu1 %v9035_v43 }
 0xec2   : > { %v5591_v7 = vpop.f32.mrf.mxu0  ;;  %v5655_v32 = vpop.f32.mrf.mxu1 }
 0xec3   : > { %v5592_v48 = vadd.f32 %v5591_v7, %v5590_v18  ;;  %v5656_v28 = vadd.f32 %v5655_v32, %v5654_v25  ;;  %v9039_v56 = vadd.f32 %v4723_v21, %v9329_v14 }
 0xec4   : > { %v5593_v26 = vpop.f32.mrf.mxu0  ;;  %v5657_v2 = vpop.f32.mrf.mxu1 }
 0xec5   : > { %v4728_v27 = vadd.f32 %v5656_v28, %v5592_v48  ;;  %4780 = vadd.xlane.f32.xlu0 %v9039_v56 }
 0xec6   : > { %v5594_v63 = vpop.f32.mrf.mxu0  ;;  %v5658_v31 = vpop.f32.mrf.mxu1 }
 0xec7   : > { %v5595_v17 = vadd.f32 %v5594_v63, %v5593_v26  ;;  %v5659_v61 = vadd.f32 %v5658_v31, %v5657_v2  ;;  %v9043_v22 = vadd.f32 %v4728_v27, %v9330_v57 }
 0xec8   : > { %v5596_v20 = vpop.f32.mrf.mxu0  ;;  %v5660_v19 = vpop.f32.mrf.mxu1 }
 0xec9   : > { %v4731_v15 = vadd.f32 %v5659_v61, %v5595_v17  ;;  %4782 = vadd.xlane.f32.xlu1 %v9043_v22 }
 0xeca   : > { %v5597_v33 = vpop.f32.mrf.mxu0  ;;  %v5661_v30 = vpop.f32.mrf.mxu1 }
 0xecb   : > { %v5598_v16 = vadd.f32 %v5597_v33, %v5596_v20  ;;  %v5662_v46 = vadd.f32 %v5661_v30, %v5660_v19  ;;  %v9047_v36 = vadd.f32 %v4731_v15, %v9331_v35 }
 0xecc   : > { %v5599_v53 = vpop.f32.mrf.mxu0  ;;  %v5663_v3 = vpop.f32.mrf.mxu1 }
 0xecd   : > { %v4736_v10 = vadd.f32 %v5662_v46, %v5598_v16  ;;  %4784 = vadd.xlane.f32.xlu0 %v9047_v36 }
 0xece   : > { %v5600_v0 = vpop.f32.mrf.mxu0  ;;  %v5664_v49 = vpop.f32.mrf.mxu1 }
 0xecf   : > { %v5601_v24 = vadd.f32 %v5600_v0, %v5599_v53  ;;  %v5665_v4 = vadd.f32 %v5664_v49, %v5663_v3  ;;  %v9051_v34 = vadd.f32 %v4736_v10, %v9332_v38 }
 0xed1   : > { %v4739_v11 = vadd.f32 %v5665_v4, %v5601_v24  ;;  %4786 = vadd.xlane.f32.xlu1 %v9051_v34 }
 0xed3   : > { %v9055_v9 = vadd.f32 %v4739_v11, %v9333_v6 }
 0xed5   : > { %4788 = vadd.xlane.f32.xlu0 %v9055_v9 }
 0xf17   : > { %v4759_v37 = vpop.xlane.xlu1 %4758 }
 0xf18   : > { %v4790_v51 = vmul.f32 0.0078125, %v4759_v37 }
 0xf1a   : > { %v9059_v5 = vsub.f32 %v8995_v1, %v4790_v51 }
 0xf1b   : > { %v4761_v29 = vpop.xlane.xlu0 %4760 }
 0xf1c   : > { %v4791_v45 = vmul.f32 0.0078125, %v4761_v29  ;;  %v4822_v12 = vmul.f32 %v9059_v5, %v9059_v5 }
 0xf1e   : > { %v9064_v58 = vsub.f32 %v8999_v41, %v4791_v45  ;;  %4838 = vadd.xlane.f32.xlu1 %v4822_v12 }
 0xf1f   : > { %v4763_v47 = vpop.xlane.xlu1 %4762 }
 0xf20   : > { %v4792_v40 = vmul.f32 0.0078125, %v4763_v47  ;;  %v4823_v54 = vmul.f32 %v9064_v58, %v9064_v58 }
 0xf22   : > { %v9069_v52 = vsub.f32 %v9003_v13, %v4792_v40  ;;  %4840 = vadd.xlane.f32.xlu0 %v4823_v54 }
 0xf23   : > { %v4765_v1 = vpop.xlane.xlu0 %4764 }
 0xf24   : > { %v4793_v39 = vmul.f32 0.0078125, %v4765_v1  ;;  %v4824_v42 = vmul.f32 %v9069_v52, %v9069_v52 }
 0xf26   : > { %v9074_v44 = vsub.f32 %v9007_v50, %v4793_v39  ;;  %4842 = vadd.xlane.f32.xlu1 %v4824_v42 }
 0xf28   : > { %v4767_v41 = vpop.xlane.xlu1 %4766  ;;  %v4825_v25 = vmul.f32 %v9074_v44, %v9074_v44 }
 0xf29   : > { %v4794_v18 = vmul.f32 0.0078125, %v4767_v41 }
 0xf2a   : > { %4844 = vadd.xlane.f32.xlu0 %v4825_v25 }
 0xf2b   : > { %v9079_v21 = vsub.f32 %v9011_v60, %v4794_v18 }
 0xf2c   : > { %v4769_v13 = vpop.xlane.xlu0 %4768 }
 0xf2d   : > { %v4795_v7 = vmul.f32 0.0078125, %v4769_v13  ;;  %v4826_v32 = vmul.f32 %v9079_v21, %v9079_v21 }
 0xf2f   : > { %v9084_v48 = vsub.f32 %v9015_v23, %v4795_v7  ;;  %4846 = vadd.xlane.f32.xlu1 %v4826_v32 }
 0xf31   : > { %v4827_v50 = vmul.f32 %v9084_v48, %v9084_v48 }
 0xf32   : > { %v4771_v28 = vpop.xlane.xlu1 %4770 }
 0xf33   : > { %4848 = vadd.xlane.f32.xlu0 %v4827_v50  ;;  %v4796_v14 = vmul.f32 0.0078125, %v4771_v28 }
 0xf35   : > { %v9089_v26 = vsub.f32 %v9019_v55, %v4796_v14 }
 0xf36   : > { %v4773_v60 = vpop.xlane.xlu0 %4772 }
 0xf37   : > { %v4797_v2 = vmul.f32 0.0078125, %v4773_v60  ;;  %v4828_v27 = vmul.f32 %v9089_v26, %v9089_v26  ;;  %v9142_v60 = vld [vmem:[%s9199_s6] ss:$0 sm:$0xff] }
 0xf39   : > { %v9094_v63 = vsub.f32 %v9023_v62, %v4797_v2  ;;  %4850 = vadd.xlane.f32.xlu1 %v4828_v27 }
 0xf3b   : > { %v4829_v23 = vmul.f32 %v9094_v63, %v9094_v63 }
 0xf3d   : > { %4852 = vadd.xlane.f32.xlu0 %v4829_v23 }
 0xf42   : > { %v4775_v31 = vpop.xlane.xlu1 %4774 }
 0xf43   : > { %v4798_v17 = vmul.f32 0.0078125, %v4775_v31 }
 0xf45   : > { %v9099_v61 = vsub.f32 %v9027_v59, %v4798_v17 }
 0xf46   : > { %v4777_v55 = vpop.xlane.xlu0 %4776 }
 0xf47   : > { %v4799_v57 = vmul.f32 0.0078125, %v4777_v55  ;;  %v4830_v20 = vmul.f32 %v9099_v61, %v9099_v61 }
 0xf49   : > { %v9104_v19 = vsub.f32 %v9031_v8, %v4799_v57  ;;  %4854 = vadd.xlane.f32.xlu1 %v4830_v20 }
 0xf4a   : > { %v4779_v62 = vpop.xlane.xlu1 %4778 }
 0xf4b   : > { %v4800_v15 = vmul.f32 0.0078125, %v4779_v62  ;;  %v4831_v33 = vmul.f32 %v9104_v19, %v9104_v19 }
 0xf4d   : > { %v9109_v30 = vsub.f32 %v9035_v43, %v4800_v15  ;;  %4856 = vadd.xlane.f32.xlu0 %v4831_v33 }
 0xf4e   : > { %v4781_v59 = vpop.xlane.xlu0 %4780 }
 0xf4f   : > { %v4801_v16 = vmul.f32 0.0078125, %v4781_v59  ;;  %v4832_v46 = vmul.f32 %v9109_v30, %v9109_v30 }
 0xf51   : > { %v9114_v35 = vsub.f32 %v9039_v56, %v4801_v16  ;;  %4858 = vadd.xlane.f32.xlu1 %v4832_v46 }
 0xf52   : > { %v4783_v8 = vpop.xlane.xlu1 %4782 }
 0xf53   : > { %v4802_v53 = vmul.f32 0.0078125, %v4783_v8  ;;  %v4833_v3 = vmul.f32 %v9114_v35, %v9114_v35 }
 0xf55   : > { %v9119_v10 = vsub.f32 %v9043_v22, %v4802_v53  ;;  %4860 = vadd.xlane.f32.xlu0 %v4833_v3 }
 0xf56   : > { %v4785_v43 = vpop.xlane.xlu0 %4784 }
 0xf57   : > { %v4803_v0 = vmul.f32 0.0078125, %v4785_v43  ;;  %v4834_v49 = vmul.f32 %v9119_v10, %v9119_v10 }
 0xf59   : > { %v9124_v24 = vsub.f32 %v9047_v36, %v4803_v0  ;;  %4862 = vadd.xlane.f32.xlu1 %v4834_v49 }
 0xf5a   : > { %v4787_v56 = vpop.xlane.xlu1 %4786 }
 0xf5b   : > { %v4804_v4 = vmul.f32 0.0078125, %v4787_v56  ;;  %v4835_v38 = vmul.f32 %v9124_v24, %v9124_v24 }
 0xf5d   : > { %v9129_v11 = vsub.f32 %v9051_v34, %v4804_v4  ;;  %4864 = vadd.xlane.f32.xlu0 %v4835_v38 }
 0xf5e   : > { %v4789_v22 = vpop.xlane.xlu0 %4788 }
 0xf5f   : > { %v4805_v6 = vmul.f32 0.0078125, %v4789_v22  ;;  %v4836_v37 = vmul.f32 %v9129_v11, %v9129_v11 }
 0xf61   : > { %v9134_v51 = vsub.f32 %v9055_v9, %v4805_v6  ;;  %4866 = vadd.xlane.f32.xlu1 %v4836_v37 }
 0xf63   : > { %v4837_v36 = vmul.f32 %v9134_v51, %v9134_v51 }
 0xf65   : > { %4868 = vadd.xlane.f32.xlu0 %v4837_v36 }
 0xfa7   : > { %v4839_v29 = vpop.xlane.xlu1 %4838 }
 0xfa8   : > { %v4870_v45 = vmul.f32 0.0078125, %v4839_v29 }
 0xfaa   : > { %v4886_v12 = vadd.f32 1e-05, %v4870_v45 }
 0xfab   : > { %v4841_v47 = vpop.xlane.xlu0 %4840 }
 0xfac   : > { %6630 = vrsqrt.f32 %v4886_v12  ;;  %v4871_v34 = vmul.f32 0.0078125, %v4841_v47 }
 0xfae   : > { %v4887_v40 = vadd.f32 1e-05, %v4871_v34 }
 0xfaf   : > { %v4843_v54 = vpop.xlane.xlu1 %4842 }
 0xfb0   : > { %6632 = vrsqrt.f32 %v4887_v40  ;;  %v4872_v1 = vmul.f32 0.0078125, %v4843_v54 }
 0xfb2   : > { %v4888_v39 = vadd.f32 1e-05, %v4872_v1 }
 0xfb3   : > { %v4845_v42 = vpop.xlane.xlu0 %4844 }
 0xfb4   : > { %6634 = vrsqrt.f32 %v4888_v39  ;;  %v4873_v9 = vmul.f32 0.0078125, %v4845_v42 }
 0xfb6   : > { %v4889_v41 = vadd.f32 1e-05, %v4873_v9 }
 0xfb8   : > { %v4847_v18 = vpop.xlane.xlu1 %4846  ;;  %6636 = vrsqrt.f32 %v4889_v41 }
 0xfb9   : > { %v4874_v25 = vmul.f32 0.0078125, %v4847_v18  ;;  %v6631_v13 = vpop.eup %6630 }
 0xfba   : > { %v4918_v50 = vmul.f32 %v6631_v13, %v9059_v5 }
 0xfbb   : > { %v4890_v7 = vadd.f32 1e-05, %v4874_v25 }
 0xfbc   : > { %v4849_v32 = vpop.xlane.xlu0 %4848  ;;  %v4941_v23 = vmul.f32 %v9142_v60, %v4918_v50 }
 0xfbd   : > { %6638 = vrsqrt.f32 %v4890_v7  ;;  %v4875_v28 = vmul.f32 0.0078125, %v4849_v32  ;;  %v6633_v14 = vpop.eup %6632 }
 0xfbe   : > { %v4919_v2 = vmul.f32 %v6633_v14, %v9064_v58 }
 0xfbf   : > { %v4891_v27 = vadd.f32 1e-05, %v4875_v28 }
 0xfc0   : > { %v4942_v31 = vmul.f32 %v9142_v60, %v4919_v2 }
 0xfc1   : > { %6640 = vrsqrt.f32 %v4891_v27  ;;  %v6635_v17 = vpop.eup %6634 }
 0xfc2   : > { %v5310_v5 = vpack.c.bf16 %v4942_v31, %v4941_v23  ;;  %v4851_v55 = vpop.xlane.xlu1 %4850  ;;  %v4920_v58 = vmul.f32 %v6635_v17, %v9069_v52 }
 0xfc3   : > { %v4876_v57 = vmul.f32 0.0078125, %v4851_v55 }
 0xfc4   : > { %5311 = vst [vmem:[%s9152_s9] sm:$0xff] %v5310_v5   ;;  %v4943_v16 = vmul.f32 %v9142_v60, %v4920_v58 }
 0xfc5   : > { %v6637_v20 = vpop.eup %6636  ;;  %v4892_v62 = vadd.f32 1e-05, %v4876_v57 }
 0xfc6   : > { %v4921_v15 = vmul.f32 %v6637_v20, %v9074_v44  ;;  %v4853_v33 = vpop.xlane.xlu0 %4852 }
 0xfc7   : > { %6642 = vrsqrt.f32 %v4892_v62  ;;  %v4877_v59 = vmul.f32 0.0078125, %v4853_v33 }
 0xfc8   : > { %v4944_v46 = vmul.f32 %v9142_v60, %v4921_v15 }
 0xfc9   : > { %v4893_v53 = vadd.f32 1e-05, %v4877_v59 }
 0xfca   : > { %v6639_v8 = vpop.eup %6638  ;;  %v5315_v3 = vpack.c.bf16 %v4944_v46, %v4943_v16 }
 0xfcb   : > { %6644 = vrsqrt.f32 %v4893_v53  ;;  %v4922_v43 = vmul.f32 %v6639_v8, %v9079_v21 }
 0xfcc   : > { %5347 = vst [vmem:[%s9152_s9 + $0x8] sm:$0xff] %v5315_v3  }
 0xfcd   : > { %v4945_v44 = vmul.f32 %v9142_v60, %v4922_v43 }
 0xfce   : > { %v6641_v52 = vpop.eup %6640 }
 0xfcf   : > { %v4923_v0 = vmul.f32 %v6641_v52, %v9084_v48 }
 0xfd1   : > { %v4946_v49 = vmul.f32 %v9142_v60, %v4923_v0 }
 0xfd2   : > { %v4855_v4 = vpop.xlane.xlu1 %4854 }
 0xfd3   : > { %v5320_v56 = vpack.c.bf16 %v4946_v49, %v4945_v44  ;;  %v4878_v38 = vmul.f32 0.0078125, %v4855_v4 }
 0xfd4   : > { %v6643_v22 = vpop.eup %6642 }
 0xfd5   : > { %5348 = vst [vmem:[%s9152_s9 + $0x10] sm:$0xff] %v5320_v56   ;;  %v4894_v6 = vadd.f32 1e-05, %v4878_v38  ;;  %v4924_v36 = vmul.f32 %v6643_v22, %v9089_v26 }
 0xfd6   : > { %v4857_v37 = vpop.xlane.xlu0 %4856 }
 0xfd7   : > { %6646 = vrsqrt.f32 %v4894_v6  ;;  %v4879_v29 = vmul.f32 0.0078125, %v4857_v37  ;;  %v4947_v47 = vmul.f32 %v9142_v60, %v4924_v36 }
 0xfd8   : > { %v6645_v21 = vpop.eup %6644 }
 0xfd9   : > { %v4925_v45 = vmul.f32 %v6645_v21, %v9094_v63  ;;  %v4895_v48 = vadd.f32 1e-05, %v4879_v29 }
 0xfda   : > { %v4859_v12 = vpop.xlane.xlu1 %4858 }
 0xfdb   : > { %v4948_v34 = vmul.f32 %v9142_v60, %v4925_v45  ;;  %6648 = vrsqrt.f32 %v4895_v48  ;;  %v4880_v40 = vmul.f32 0.0078125, %v4859_v12 }
 0xfdd   : > { %v5325_v54 = vpack.c.bf16 %v4948_v34, %v4947_v47  ;;  %v4896_v1 = vadd.f32 1e-05, %v4880_v40 }
 0xfde   : > { %v4861_v39 = vpop.xlane.xlu0 %4860 }
 0xfdf   : > { %5349 = vst [vmem:[%s9152_s9 + $0x18] sm:$0xff] %v5325_v54   ;;  %6650 = vrsqrt.f32 %v4896_v1  ;;  %v4881_v42 = vmul.f32 0.0078125, %v4861_v39 }
 0xfe1   : > { %v4897_v26 = vadd.f32 1e-05, %v4881_v42 }
 0xfe2   : > { %v4863_v9 = vpop.xlane.xlu1 %4862 }
 0xfe3   : > { %6652 = vrsqrt.f32 %v4897_v26  ;;  %v4882_v41 = vmul.f32 0.0078125, %v4863_v9 }
 0xfe4   : > { %v6647_v18 = vpop.eup %6646 }
 0xfe5   : > { %v4898_v63 = vadd.f32 1e-05, %v4882_v41  ;;  %v4926_v13 = vmul.f32 %v6647_v18, %v9099_v61 }
 0xfe6   : > { %v4865_v25 = vpop.xlane.xlu0 %4864 }
 0xfe7   : > { %6654 = vrsqrt.f32 %v4898_v63  ;;  %v4883_v7 = vmul.f32 0.0078125, %v4865_v25  ;;  %v4949_v2 = vmul.f32 %v9142_v60, %v4926_v13 }
 0xfe8   : > { %v6649_v32 = vpop.eup %6648 }
 0xfe9   : > { %v4927_v50 = vmul.f32 %v6649_v32, %v9104_v19  ;;  %v4899_v28 = vadd.f32 1e-05, %v4883_v7 }
 0xfea   : > { %v4867_v14 = vpop.xlane.xlu1 %4866 }
 0xfeb   : > { %v4950_v27 = vmul.f32 %v9142_v60, %v4927_v50  ;;  %6656 = vrsqrt.f32 %v4899_v28  ;;  %v4884_v23 = vmul.f32 0.0078125, %v4867_v14 }
 0xfec   : > { %v6651_v31 = vpop.eup %6650 }
 0xfed   : > { %v5330_v17 = vpack.c.bf16 %v4950_v27, %v4949_v2  ;;  %v4900_v5 = vadd.f32 1e-05, %v4884_v23  ;;  %v4928_v61 = vmul.f32 %v6651_v31, %v9109_v30 }
 0xfee   : > { %v4869_v55 = vpop.xlane.xlu0 %4868 }
 0xfef   : > { %5350 = vst [vmem:[%s9152_s9 + $0x20] sm:$0xff] %v5330_v17   ;;  %6658 = vrsqrt.f32 %v4900_v5  ;;  %v4885_v57 = vmul.f32 0.0078125, %v4869_v55  ;;  %v4951_v62 = vmul.f32 %v9142_v60, %v4928_v61 }
 0xff0   : > { %v6653_v58 = vpop.eup %6652 }
 0xff1   : > { %v4929_v19 = vmul.f32 %v6653_v58, %v9114_v35  ;;  %v4901_v20 = vadd.f32 1e-05, %v4885_v57 }
 0xff3   : > { %v4952_v15 = vmul.f32 %v9142_v60, %v4929_v19  ;;  %6660 = vrsqrt.f32 %v4901_v20 }
 0xff4   : > { %v6655_v33 = vpop.eup %6654 }
 0xff5   : > { %v5335_v59 = vpack.c.bf16 %v4952_v15, %v4951_v62  ;;  %v4930_v16 = vmul.f32 %v6655_v33, %v9119_v10 }
 0xff7   : > { %5351 = vst [vmem:[%s9152_s9 + $0x28] sm:$0xff] %v5335_v59   ;;  %v4953_v8 = vmul.f32 %v9142_v60, %v4930_v16 }
 0xff8   : > { %v6657_v46 = vpop.eup %6656 }
 0xff9   : > { %v4931_v30 = vmul.f32 %v6657_v46, %v9124_v24 }
 0xffb   : > { %v4954_v53 = vmul.f32 %v9142_v60, %v4931_v30 }
 0xffc   : > { %v6659_v35 = vpop.eup %6658 }
 0xffd   : > { %v5340_v3 = vpack.c.bf16 %v4954_v53, %v4953_v8  ;;  %v4932_v43 = vmul.f32 %v6659_v35, %v9129_v11 }
 0xfff   : > { %5352 = vst [vmem:[%s9152_s9 + $0x30] sm:$0xff] %v5340_v3   ;;  %v4955_v44 = vmul.f32 %v9142_v60, %v4932_v43 }
0x1000   : > { %v6661_v52 = vpop.eup %6660 }
0x1001   : > { %v4933_v0 = vmul.f32 %v6661_v52, %v9134_v51 }
0x1003   : > { %v4956_v49 = vmul.f32 %v9142_v60, %v4933_v0 }
0x1005   : > { %v5345_v10 = vpack.c.bf16 %v4956_v49, %v4955_v44 }
0x1007   : > { %5353 = vst [vmem:[%s9152_s9 + $0x38] sm:$0xff] %v5345_v10  }
0x1008 PF: > { %s17_s24 = sadd.s32 1, %s6676_s24  }
0x1009   : > { %p14_p4 = scmp.ge.s32.totalorder %s17_s24, 4  }
0x100b   :  { %16 = sbr.rel (!%p14_p4) target bundleno = 1 (0x1), region = 78 }

</bundles_post_ra>
